<compile_context>
chip_gen: v7x
topology: tpu7x:2x2x1
jax: 0.10.0
libtpu: 0.0.40
codegen_flags: <defaults>
</compile_context>

<pallas_src>
import functools
import math

import jax
import jax.numpy as jnp
import numpy as np
from jax.experimental import pallas as pl
from jax.experimental.pallas import tpu as pltpu

# ----------------------------- config ---------------------------------------
ENTITY_EMBEDDING_DIM = 32   # cfg.model.entity_embedding_dim
KEY_DIM = 32                # cfg.model.key_dim
INPUT_DIM = 32              # cfg.model.input_dim
FUNC_DIM = 32               # cfg.model.func_dim
LSTM_HIDDEN_DIM = 32        # cfg.model.lstm_hidden_dim (== KEY_DIM)
LSTM_NUM_LAYERS = 1         # cfg.model.lstm_num_layers
MAX_ENTITY_NUM = 512        # cfg.agent.features.max_entity_num
MAX_SELECTED_UNITS_NUM = 8  # cfg.agent.features.max_selected_units_num
NEG_INF = -1e9
LANE = 128


def _round_up(x, m):
    return ((x + m - 1) // m) * m


# ------------------------- shared math helpers -------------------------------
def _layer_norm(x, g, b, eps=1e-5):
    mu = jnp.mean(x, axis=-1, keepdims=True)
    var = jnp.mean(jnp.square(x - mu), axis=-1, keepdims=True)
    return (x - mu) * jax.lax.rsqrt(var + eps) * g + b


def _lnlstm_step(pre_i, hx, cx, whh, lig, lib_, lhg, lhb, lcg, lcb):
    """LayerNorm-LSTM cell given the (already computed) input pre-activation.

    Gate activations use ONE wide sigmoid over the full 4H vector (single EUP
    push on the latency-critical serial chain) + a narrow tanh for g.
    """
    H = hx.shape[-1]
    ig = _layer_norm(pre_i, lig, lib_)
    hg = _layer_norm(jnp.dot(hx, whh, preferred_element_type=jnp.float32), lhg, lhb)
    gates = ig + hg
    sig = jax.nn.sigmoid(gates)                      # (1, 4H) wide EUP push
    i_g = sig[:, 0:H]
    f_g = sig[:, H:2 * H]
    o_g = sig[:, 3 * H:4 * H]
    g_g = jnp.tanh(gates[:, 2 * H:3 * H])
    cy = _layer_norm(f_g * cx + i_g * g_g, lcg, lcb)
    hy = o_g * jnp.tanh(cy)
    return hy, cy


def _lnlstm_cell(x, hx, cx, wih, whh, lig, lib_, lhg, lhb, lcg, lcb):
    pre_i = jnp.dot(x, wih, preferred_element_type=jnp.float32)
    return _lnlstm_step(pre_i, hx, cx, whh, lig, lib_, lhg, lhb, lcg, lcb)


# --------------------------- the fused kernel --------------------------------
def _pointer_kernel(ee_ref,                         # (1, Np1p, E) padded entities
                    ae0_ref,                        # (1, 1, D)
                    ent_ref, sun_ref, sel_ref,      # (1,1,1), (1,1,1), (1,T,1) int32
                    wk_ref, bk_ref, end_ref,        # key_fc + end embedding
                    we1_ref, be1_ref, we2_ref, be2_ref,   # embed_mlp
                    wq1_ref, bq1_ref,               # query_mlp fc1
                    wx_ref, bx0_ref,                # folded fc2@Wih[0]; Wih[l>0]
                    whh_ref,                        # (L, H, 4H)
                    lig_ref, lib_ref, lhg_ref, lhb_ref,   # (L, 1, 4H)
                    lcg_ref, lcb_ref,               # (L, 1, H)
                    logits_ref,                     # out (1, T, Np1p)
                    ae_out_ref,                     # out (1, 1, D)
                    key_vmem,                       # scratch (Np1p, K)
                    q_vmem,                         # scratch (T, H)
                    *, num_layers, num_steps, n_real, inv_temp):
    Np1p, K = key_vmem.shape
    T = num_steps
    H = whh_ref.shape[1]
    D = ae0_ref.shape[2]

    ent_v = ent_ref[0, :, :]                         # (1, 1) int32
    sun_v = sun_ref[0, :, :]                         # (1, 1) int32
    sel_v = sel_ref[0, :, :]                         # (T, 1) int32

    # ---- key_fc + pad/end masking (entity axis on sublanes here) ------------
    x = ee_ref[0]                                              # (Np1p, E)
    kraw = jnp.dot(x, wk_ref[...],
                   preferred_element_type=jnp.float32) + bk_ref[...]
    row = jax.lax.broadcasted_iota(jnp.int32, (Np1p, K), 0)
    key = jnp.where(row >= n_real, 0.0, kraw)        # concat zero row + padding
    key = jnp.where(row == ent_v, end_ref[...], key)  # end embedding row
    key_vmem[...] = key        # park in VMEM; re-read after the serial loop

    # ---- one-hot of teacher-forced selections, (T, Np1p), entity on lanes ---
    lane = jax.lax.broadcasted_iota(jnp.int32, (T, Np1p), 1)
    onehot = (lane == sel_v).astype(jnp.float32)               # (T, Np1p)

    # ---- embed_mlp only for the T selected rows (MXU one-hot gather) --------
    key_sel = jnp.dot(onehot, key, preferred_element_type=jnp.float32)  # (T, K)
    kr = key_sel * (1.0 / MAX_ENTITY_NUM)            # entity_reduce_type='constant'
    h1 = jnp.maximum(
        jnp.dot(kr, we1_ref[...], preferred_element_type=jnp.float32)
        + be1_ref[...], 0.0)
    kemb = (jnp.dot(h1, we2_ref[...], preferred_element_type=jnp.float32)
            + be2_ref[...])                                    # (T, D)
    step_idx = jax.lax.broadcasted_iota(jnp.int32, (T, D), 0)
    gate = (step_idx + 1 < sun_v).astype(jnp.float32)          # (T, D)
    delta = kemb * gate

    # ---- teacher-forced autoregressive embedding: ae_i = ae0 + sum_{j<i} d_j -
    ri = jax.lax.broadcasted_iota(jnp.int32, (T, T), 0)
    cj = jax.lax.broadcasted_iota(jnp.int32, (T, T), 1)
    tri = (cj < ri).astype(jnp.float32)                        # strict lower-tri
    ae0v = ae0_ref[0]                                          # (1, D)
    ae_seq = ae0v + jnp.dot(tri, delta, preferred_element_type=jnp.float32)
    ae_out_ref[0] = ae0v + jnp.sum(delta, axis=0, keepdims=True)

    # ---- hoisted query path: one batched fc1 + folded fc2@Wih0 --------------
    hq = jnp.maximum(
        jnp.dot(ae_seq, wq1_ref[...], preferred_element_type=jnp.float32)
        + bq1_ref[...], 0.0)                                   # (T, F)
    pre0 = (jnp.dot(hq, wx_ref[0], preferred_element_type=jnp.float32)
            + bx0_ref[...])                                    # (T, 4H)

    # ---- serial LN-LSTM recurrence (the only truly sequential work) ---------
    hs = [jnp.zeros((1, H), jnp.float32) for _ in range(num_layers)]
    cs = [jnp.zeros((1, H), jnp.float32) for _ in range(num_layers)]
    for i in range(T):                       # static unroll, T = 8
        xin = None
        for l in range(num_layers):
            if l == 0:
                pre = pre0[i:i + 1, :]
            else:
                pre = jnp.dot(xin, wx_ref[l], preferred_element_type=jnp.float32)
            # loop-invariant weights / LN params re-read from VMEM each step
            # (cheap vld; keeps vreg pressure low across the unroll)
            hy, cy = _lnlstm_step(pre, hs[l], cs[l], whh_ref[l],
                                  lig_ref[l], lib_ref[l],
                                  lhg_ref[l], lhb_ref[l],
                                  lcg_ref[l], lcb_ref[l])
            hs[l], cs[l] = hy, cy
            xin = hy
        q_vmem[i:i + 1, :] = xin

    # ---- batched pointer logits + mask: one dense lane-dense store ----------
    q_all = q_vmem[...]                                        # (T, H)
    raw = jax.lax.dot_general(
        q_all, key_vmem[...],
        dimension_numbers=(((1,), (1,)), ((), ())),
        preferred_element_type=jnp.float32) * inv_temp          # (T, Np1p)

    valid = lane < (ent_v + 1)
    blocked = jnp.dot(tri, onehot, preferred_element_type=jnp.float32) > 0.0
    row2 = jax.lax.broadcasted_iota(jnp.int32, (T, Np1p), 0)
    end0 = jnp.logical_and(row2 == 0, lane == ent_v)           # end row blocked @ i=0
    mask = jnp.logical_and(valid,
                           jnp.logical_not(jnp.logical_or(blocked, end0)))
    logits_ref[0] = jnp.where(mask, raw, NEG_INF)


# ----------------------------- forward wrapper --------------------------------
def pointer_network_forward(params, embedding, entity_embedding, entity_num,
                            selected_units, selected_units_num, temperature=1.0):
    """PointerNetwork.forward (teacher-forced path).

    Runs a static T = selected_units.shape[1] decode steps (no host sync);
    the first `selected_units_num.max()` steps match the PyTorch module
    exactly, the remaining steps follow the same update rule and can be
    masked out by the caller.
    """
    B, N, E = entity_embedding.shape
    Np1 = N + 1
    Np1p = _round_up(Np1, LANE)
    T = selected_units.shape[1]
    D = embedding.shape[1]
    K = params['Wk'].shape[1]
    F = params['Wq1'].shape[1]
    L = params['Wih'].shape[0]
    H = params['Whh'].shape[1]

    # host-side layout plumbing (vectorized, no device->host syncs)
    ee_pad = jnp.pad(entity_embedding.astype(jnp.float32),
                     ((0, 0), (0, Np1p - N), (0, 0)))          # (B, Np1p, E)
    ae0 = embedding.astype(jnp.float32).reshape(B, 1, D)
    ent = entity_num.astype(jnp.int32).reshape(B, 1, 1)
    sun = selected_units_num.astype(jnp.int32).reshape(B, 1, 1)
    sel = selected_units.astype(jnp.int32).reshape(B, T, 1)

    # fold query_mlp fc2 into the layer-0 LSTM input weights:
    #   q @ Wih0 = hq @ (Wq2 @ Wih0) + bq2 @ Wih0   (func_dim == key_dim here)
    wx0 = jnp.matmul(params['Wq2'], params['Wih'][0])           # (F, 4H)
    bx0 = jnp.matmul(params['bq2'], params['Wih'][0])           # (1, 4H)
    wx = jnp.concatenate([wx0[None], params['Wih'][1:]], axis=0)

    kernel = functools.partial(_pointer_kernel, num_layers=L, num_steps=T,
                               n_real=N, inv_temp=float(1.0 / temperature))

    b3 = lambda b: (b, 0, 0)
    c2 = lambda b: (0, 0)
    c3 = lambda b: (0, 0, 0)

    in_specs = [
        pl.BlockSpec((1, Np1p, E), b3),        # ee_pad
        pl.BlockSpec((1, 1, D), b3),           # ae0
        pl.BlockSpec((1, 1, 1), b3),           # entity_num
        pl.BlockSpec((1, 1, 1), b3),           # selected_units_num
        pl.BlockSpec((1, T, 1), b3),           # selected_units
        pl.BlockSpec((E, K), c2),              # Wk
        pl.BlockSpec((1, K), c2),              # bk
        pl.BlockSpec((1, K), c2),              # end embedding
        pl.BlockSpec((K, F), c2),              # We1
        pl.BlockSpec((1, F), c2),              # be1
        pl.BlockSpec((F, D), c2),              # We2
        pl.BlockSpec((1, D), c2),              # be2
        pl.BlockSpec((D, F), c2),              # Wq1
        pl.BlockSpec((1, F), c2),              # bq1
        pl.BlockSpec((L, F, 4 * H), c3),       # wx (layer-0 folded)
        pl.BlockSpec((1, 4 * H), c2),          # bx0
        pl.BlockSpec((L, H, 4 * H), c3),       # Whh
        pl.BlockSpec((L, 1, 4 * H), c3),       # ln_ig
        pl.BlockSpec((L, 1, 4 * H), c3),       # ln_ib
        pl.BlockSpec((L, 1, 4 * H), c3),       # ln_hg
        pl.BlockSpec((L, 1, 4 * H), c3),       # ln_hb
        pl.BlockSpec((L, 1, H), c3),           # ln_cg
        pl.BlockSpec((L, 1, H), c3),           # ln_cb
    ]
    out_specs = [
        pl.BlockSpec((1, T, Np1p), b3),        # logits (lane-dense entity axis)
        pl.BlockSpec((1, 1, D), b3),           # final autoregressive embedding
    ]
    out_shape = [jax.ShapeDtypeStruct((B, T, Np1p), jnp.float32),
                 jax.ShapeDtypeStruct((B, 1, D), jnp.float32)]

    logits_pad, ae3 = pl.pallas_call(
        kernel,
        grid=(B,),                              # batch-parallel grid (v7x: 2 TCs)
        in_specs=in_specs,
        out_specs=out_specs,
        out_shape=out_shape,
        scratch_shapes=[pltpu.VMEM((Np1p, K), jnp.float32),
                        pltpu.VMEM((T, H), jnp.float32)],
        compiler_params=pltpu.CompilerParams(dimension_semantics=("parallel",)),
    )(ee_pad, ae0, ent, sun, sel,
      params['Wk'], params['bk'], params['end'],
      params['We1'], params['be1'], params['We2'], params['be2'],
      params['Wq1'], params['bq1'], wx, bx0, params['Whh'],
      params['ln_ig'], params['ln_ib'], params['ln_hg'], params['ln_hb'],
      params['ln_cg'], params['ln_cb'])

    logits = logits_pad[:, :, :Np1]             # drop entity-axis lane padding
    ae = ae3.reshape(B, D)
    return logits, None, ae, selected_units_num


# ----------------------------- pure-JAX reference ------------------------------
def reference_forward(params, embedding, entity_embedding, entity_num,
                      selected_units, selected_units_num, temperature=1.0):
    B, N, _ = entity_embedding.shape
    Np1 = N + 1
    key = jnp.einsum('bne,ek->bnk', entity_embedding, params['Wk']) + params['bk']
    key = jnp.concatenate([key, jnp.zeros((B, 1, key.shape[-1]), jnp.float32)], 1)
    col = jnp.arange(Np1)[None, :]
    key = jnp.where((col == entity_num[:, None])[..., None], params['end'][None], key)
    entity_mask = col < (entity_num + 1)[:, None]
    kr = key / MAX_ENTITY_NUM
    h = jnp.maximum(jnp.einsum('bnk,kf->bnf', kr, params['We1']) + params['be1'], 0.0)
    kemb = jnp.einsum('bnf,fd->bnd', h, params['We2']) + params['be2']

    T = selected_units.shape[1]
    m = entity_mask.at[jnp.arange(B), entity_num].set(False)
    ae = embedding
    L = params['Wih'].shape[0]
    H = params['Whh'].shape[1]
    hs = [jnp.zeros((B, H), jnp.float32) for _ in range(L)]
    cs = [jnp.zeros((B, H), jnp.float32) for _ in range(L)]
    logits_list = []
    for i in range(T):
        if i > 0:
            if i == 1:
                m = m.at[jnp.arange(B), entity_num].set(True)
            m = m.at[jnp.arange(B), selected_units[:, i - 1]].set(False)
        q = (jnp.maximum(ae @ params['Wq1'] + params['bq1'], 0.0)
             @ params['Wq2'] + params['bq2'])
        x = q
        for l in range(L):
            hy, cy = _lnlstm_cell(x, hs[l], cs[l], params['Wih'][l], params['Whh'][l],
                                  params['ln_ig'][l], params['ln_ib'][l],
                                  params['ln_hg'][l], params['ln_hb'][l],
                                  params['ln_cg'][l], params['ln_cb'][l])
            hs[l], cs[l] = hy, cy
            x = hy
        step_logits = jnp.sum(x[:, None, :] * key, axis=-1) / temperature
        step_logits = jnp.where(m, step_logits, NEG_INF)
        logits_list.append(step_logits)
        gathered = kemb[jnp.arange(B), selected_units[:, i]]
        gate = ((i + 1) < selected_units_num).astype(jnp.float32)[:, None]
        ae = ae + gathered * gate
    return jnp.stack(logits_list, axis=1), ae


# ---------------------------------- main ---------------------------------------
if __name__ == "__main__":
    B, N = 2, 16
    E, K, D, F = ENTITY_EMBEDDING_DIM, KEY_DIM, INPUT_DIM, FUNC_DIM
    H, L = LSTM_HIDDEN_DIM, LSTM_NUM_LAYERS

    rng = jax.random.PRNGKey(0)
    ks = jax.random.split(rng, 16)

    def u(k, shape, fan_in):
        s = 1.0 / math.sqrt(fan_in)
        return jax.random.uniform(k, shape, jnp.float32, -s, s)

    params = {
        'Wk': u(ks[0], (E, K), E), 'bk': u(ks[1], (1, K), E),
        'end': u(ks[2], (1, K), K),
        'We1': u(ks[3], (K, F), K), 'be1': u(ks[4], (1, F), K),
        'We2': u(ks[5], (F, D), F), 'be2': u(ks[6], (1, D), F),
        'Wq1': u(ks[7], (D, F), D), 'bq1': u(ks[8], (1, F), D),
        'Wq2': u(ks[9], (F, K), F), 'bq2': u(ks[10], (1, K), F),
        'Wih': u(ks[11], (L, K, 4 * H), K),
        'Whh': u(ks[12], (L, H, 4 * H), H),
        'ln_ig': jnp.ones((L, 1, 4 * H), jnp.float32),
        'ln_ib': jnp.zeros((L, 1, 4 * H), jnp.float32),
        'ln_hg': jnp.ones((L, 1, 4 * H), jnp.float32),
        'ln_hb': jnp.zeros((L, 1, 4 * H), jnp.float32),
        'ln_cg': jnp.ones((L, 1, H), jnp.float32),
        'ln_cb': jnp.zeros((L, 1, H), jnp.float32),
    }

    embedding = jax.random.normal(ks[13], (B, D), jnp.float32)
    entity_embedding = jax.random.normal(ks[14], (B, N, E), jnp.float32)
    entity_num = jnp.array([10, 16], jnp.int32)
    selected_units = jnp.array([[3, 7, 1, 10, 0, 0, 0, 0],
                                [0, 5, 2, 9, 14, 16, 0, 0]], jnp.int32)
    selected_units_num = jnp.array([4, 6], jnp.int32)

    logits, units, ae, sun = pointer_network_forward(
        params, embedding, entity_embedding, entity_num,
        selected_units, selected_units_num, temperature=1.0)
    jax.block_until_ready((logits, ae))

    ref_logits, ref_ae = reference_forward(
        params, embedding, entity_embedding, entity_num,
        selected_units, selected_units_num, temperature=1.0)

    np.testing.assert_allclose(np.asarray(logits), np.asarray(ref_logits),
                               rtol=5e-3, atol=5e-3)
    np.testing.assert_allclose(np.asarray(ae), np.asarray(ref_ae),
                               rtol=5e-3, atol=5e-3)
    print("KERNEL_OK")
</pallas_src>

<mosaic_0001>
module attributes {stable_mosaic.version = 11 : i64} {
  func.func @_pointer_kernel(%arg0: i32, %arg1: memref<1x128x32xf32, #tpu.memory_space<vmem>>, %arg2: memref<1x1x32xf32, #tpu.memory_space<vmem>>, %arg3: memref<1x1x1xi32, #tpu.memory_space<vmem>>, %arg4: memref<1x1x1xi32, #tpu.memory_space<vmem>>, %arg5: memref<1x8x1xi32, #tpu.memory_space<vmem>>, %arg6: memref<32x32xf32, #tpu.memory_space<vmem>>, %arg7: memref<1x32xf32, #tpu.memory_space<vmem>>, %arg8: memref<1x32xf32, #tpu.memory_space<vmem>>, %arg9: memref<32x32xf32, #tpu.memory_space<vmem>>, %arg10: memref<1x32xf32, #tpu.memory_space<vmem>>, %arg11: memref<32x32xf32, #tpu.memory_space<vmem>>, %arg12: memref<1x32xf32, #tpu.memory_space<vmem>>, %arg13: memref<32x32xf32, #tpu.memory_space<vmem>>, %arg14: memref<1x32xf32, #tpu.memory_space<vmem>>, %arg15: memref<1x32x128xf32, #tpu.memory_space<vmem>>, %arg16: memref<1x128xf32, #tpu.memory_space<vmem>>, %arg17: memref<1x32x128xf32, #tpu.memory_space<vmem>>, %arg18: memref<1x1x128xf32, #tpu.memory_space<vmem>>, %arg19: memref<1x1x128xf32, #tpu.memory_space<vmem>>, %arg20: memref<1x1x128xf32, #tpu.memory_space<vmem>>, %arg21: memref<1x1x128xf32, #tpu.memory_space<vmem>>, %arg22: memref<1x1x32xf32, #tpu.memory_space<vmem>>, %arg23: memref<1x1x32xf32, #tpu.memory_space<vmem>>, %arg24: memref<1x8x128xf32, #tpu.memory_space<vmem>>, %arg25: memref<1x1x32xf32, #tpu.memory_space<vmem>>, %arg26: memref<128x32xf32, #tpu.memory_space<vmem>>, %arg27: memref<8x32xf32, #tpu.memory_space<vmem>>) attributes {dimension_semantics = [#tpu.dimension_semantics<parallel>], iteration_bounds = array<i64: 2>, scalar_prefetch = 0 : i64, scratch_operands = 2 : i64, tpu.core_type = #tpu.core_type<tc>, window_params = [{transform_indices = @transform_0, window_bounds = array<i64: 1, 128, 32>}, {transform_indices = @transform_1, window_bounds = array<i64: 1, 1, 32>}, {transform_indices = @transform_2, window_bounds = array<i64: 1, 1, 1>}, {transform_indices = @transform_3, window_bounds = array<i64: 1, 1, 1>}, {transform_indices = @transform_4, window_bounds = array<i64: 1, 8, 1>}, {pipeline_mode = #tpu.pipeline_mode<synchronous>, transform_indices = @transform_5, window_bounds = array<i64: 32, 32>}, {pipeline_mode = #tpu.pipeline_mode<synchronous>, transform_indices = @transform_6, window_bounds = array<i64: 1, 32>}, {pipeline_mode = #tpu.pipeline_mode<synchronous>, transform_indices = @transform_7, window_bounds = array<i64: 1, 32>}, {pipeline_mode = #tpu.pipeline_mode<synchronous>, transform_indices = @transform_8, window_bounds = array<i64: 32, 32>}, {pipeline_mode = #tpu.pipeline_mode<synchronous>, transform_indices = @transform_9, window_bounds = array<i64: 1, 32>}, {pipeline_mode = #tpu.pipeline_mode<synchronous>, transform_indices = @transform_10, window_bounds = array<i64: 32, 32>}, {pipeline_mode = #tpu.pipeline_mode<synchronous>, transform_indices = @transform_11, window_bounds = array<i64: 1, 32>}, {pipeline_mode = #tpu.pipeline_mode<synchronous>, transform_indices = @transform_12, window_bounds = array<i64: 32, 32>}, {pipeline_mode = #tpu.pipeline_mode<synchronous>, transform_indices = @transform_13, window_bounds = array<i64: 1, 32>}, {pipeline_mode = #tpu.pipeline_mode<synchronous>, transform_indices = @transform_14, window_bounds = array<i64: 1, 32, 128>}, {pipeline_mode = #tpu.pipeline_mode<synchronous>, transform_indices = @transform_15, window_bounds = array<i64: 1, 128>}, {pipeline_mode = #tpu.pipeline_mode<synchronous>, transform_indices = @transform_16, window_bounds = array<i64: 1, 32, 128>}, {pipeline_mode = #tpu.pipeline_mode<synchronous>, transform_indices = @transform_17, window_bounds = array<i64: 1, 1, 128>}, {pipeline_mode = #tpu.pipeline_mode<synchronous>, transform_indices = @transform_18, window_bounds = array<i64: 1, 1, 128>}, {pipeline_mode = #tpu.pipeline_mode<synchronous>, transform_indices = @transform_19, window_bounds = array<i64: 1, 1, 128>}, {pipeline_mode = #tpu.pipeline_mode<synchronous>, transform_indices = @transform_20, window_bounds = array<i64: 1, 1, 128>}, {pipeline_mode = #tpu.pipeline_mode<synchronous>, transform_indices = @transform_21, window_bounds = array<i64: 1, 1, 32>}, {pipeline_mode = #tpu.pipeline_mode<synchronous>, transform_indices = @transform_22, window_bounds = array<i64: 1, 1, 32>}, {transform_indices = @transform_23, window_bounds = array<i64: 1, 8, 128>}, {transform_indices = @transform_24, window_bounds = array<i64: 1, 1, 32>}]} {
    %c0 = arith.constant 0 : index
    %c0_0 = arith.constant 0 : index
    %c0_1 = arith.constant 0 : index
    %0 = vector.load %arg3[%c0, %c0_0, %c0_1] : memref<1x1x1xi32, #tpu.memory_space<vmem>>, vector<1x1x1xi32>
    %1 = vector.shape_cast %0 : vector<1x1x1xi32> to vector<1x1xi32>
    %c0_2 = arith.constant 0 : index
    %c0_3 = arith.constant 0 : index
    %c0_4 = arith.constant 0 : index
    %2 = vector.load %arg4[%c0_2, %c0_3, %c0_4] : memref<1x1x1xi32, #tpu.memory_space<vmem>>, vector<1x1x1xi32>
    %3 = vector.shape_cast %2 : vector<1x1x1xi32> to vector<1x1xi32>
    %c0_5 = arith.constant 0 : index
    %c0_6 = arith.constant 0 : index
    %c0_7 = arith.constant 0 : index
    %4 = vector.load %arg5[%c0_5, %c0_6, %c0_7] : memref<1x8x1xi32, #tpu.memory_space<vmem>>, vector<1x8x1xi32>
    %5 = vector.shape_cast %4 : vector<1x8x1xi32> to vector<8x1xi32>
    %c0_8 = arith.constant 0 : index
    %c0_9 = arith.constant 0 : index
    %c0_10 = arith.constant 0 : index
    %6 = vector.load %arg1[%c0_8, %c0_9, %c0_10] : memref<1x128x32xf32, #tpu.memory_space<vmem>>, vector<1x128x32xf32>
    %7 = vector.shape_cast %6 : vector<1x128x32xf32> to vector<128x32xf32>
    %c0_11 = arith.constant 0 : index
    %c0_12 = arith.constant 0 : index
    %8 = vector.load %arg6[%c0_11, %c0_12] : memref<32x32xf32, #tpu.memory_space<vmem>>, vector<32x32xf32>
    %cst = arith.constant dense<0.000000e+00> : vector<128x32xf32>
    %9 = tpu.matmul %7, %8, %cst {dimension_numbers = #tpu.dot_dimension_numbers<[1], [0], [0], [1], [0, 0, 1, 1], [], []>} : vector<128x32xf32>, vector<32x32xf32>, vector<128x32xf32> -> vector<128x32xf32>
    %c0_13 = arith.constant 0 : index
    %c0_14 = arith.constant 0 : index
    %10 = vector.load %arg7[%c0_13, %c0_14] : memref<1x32xf32, #tpu.memory_space<vmem>>, vector<1x32xf32>
    %11 = vector.broadcast %10 : vector<1x32xf32> to vector<128x32xf32>
    %12 = arith.addf %9, %11 : vector<128x32xf32>
    %13 = tpu.iota {dimensions = array<i32: 0>} : vector<128x32xi32>
    %c16_i32 = arith.constant 16 : i32
    %14 = vector.broadcast %c16_i32 : i32 to vector<128x32xi32>
    %15 = arith.cmpi sge, %13, %14 : vector<128x32xi32>
    %cst_15 = arith.constant 0.000000e+00 : f32
    %16 = vector.broadcast %cst_15 : f32 to vector<128x32xf32>
    %17 = arith.select %15, %16, %12 : vector<128x32xi1>, vector<128x32xf32>
    %18 = vector.broadcast %1 : vector<1x1xi32> to vector<128x32xi32>
    %19 = arith.cmpi eq, %13, %18 : vector<128x32xi32>
    %c0_16 = arith.constant 0 : index
    %c0_17 = arith.constant 0 : index
    %20 = vector.load %arg8[%c0_16, %c0_17] : memref<1x32xf32, #tpu.memory_space<vmem>>, vector<1x32xf32>
    %21 = vector.shape_cast %20 : vector<1x32xf32> to vector<1x32xf32>
    %22 = vector.broadcast %21 : vector<1x32xf32> to vector<128x32xf32>
    %23 = arith.select %19, %22, %17 : vector<128x32xi1>, vector<128x32xf32>
    %c0_18 = arith.constant 0 : index
    %c0_19 = arith.constant 0 : index
    %24 = vector.load %arg26[%c0_18, %c0_19] : memref<128x32xf32, #tpu.memory_space<vmem>>, vector<128x32xf32>
    tpu.vector_store %arg26[%c0_18, %c0_19], %23 {strides = array<i32>} : memref<128x32xf32, #tpu.memory_space<vmem>>, vector<128x32xf32>,
    %25 = tpu.iota {dimensions = array<i32: 1>} : vector<8x128xi32>
    %26 = vector.broadcast %5 : vector<8x1xi32> to vector<8x128xi32>
    %27 = arith.cmpi eq, %25, %26 : vector<8x128xi32>
    %28 = arith.extui %27 : vector<8x128xi1> to vector<8x128xi32>
    %29 = arith.sitofp %28 : vector<8x128xi32> to vector<8x128xf32>
    %cst_20 = arith.constant dense<0.000000e+00> : vector<8x32xf32>
    %30 = tpu.matmul %29, %23, %cst_20 {dimension_numbers = #tpu.dot_dimension_numbers<[1], [0], [0], [1], [0, 0, 1, 1], [], []>} : vector<8x128xf32>, vector<128x32xf32>, vector<8x32xf32> -> vector<8x32xf32>
    %cst_21 = arith.constant 0.001953125 : f32
    %31 = vector.broadcast %cst_21 : f32 to vector<8x32xf32>
    %32 = arith.mulf %30, %31 : vector<8x32xf32>
    %c0_22 = arith.constant 0 : index
    %c0_23 = arith.constant 0 : index
    %33 = vector.load %arg9[%c0_22, %c0_23] : memref<32x32xf32, #tpu.memory_space<vmem>>, vector<32x32xf32>
    %cst_24 = arith.constant dense<0.000000e+00> : vector<8x32xf32>
    %34 = tpu.matmul %32, %33, %cst_24 {dimension_numbers = #tpu.dot_dimension_numbers<[1], [0], [0], [1], [0, 0, 1, 1], [], []>} : vector<8x32xf32>, vector<32x32xf32>, vector<8x32xf32> -> vector<8x32xf32>
    %c0_25 = arith.constant 0 : index
    %c0_26 = arith.constant 0 : index
    %35 = vector.load %arg10[%c0_25, %c0_26] : memref<1x32xf32, #tpu.memory_space<vmem>>, vector<1x32xf32>
    %36 = vector.broadcast %35 : vector<1x32xf32> to vector<8x32xf32>
    %37 = arith.addf %34, %36 : vector<8x32xf32>
    %cst_27 = arith.constant 0.000000e+00 : f32
    %38 = vector.broadcast %cst_27 : f32 to vector<8x32xf32>
    %39 = arith.maximumf %37, %38 : vector<8x32xf32>
    %c0_28 = arith.constant 0 : index
    %c0_29 = arith.constant 0 : index
    %40 = vector.load %arg11[%c0_28, %c0_29] : memref<32x32xf32, #tpu.memory_space<vmem>>, vector<32x32xf32>
    %cst_30 = arith.constant dense<0.000000e+00> : vector<8x32xf32>
    %41 = tpu.matmul %39, %40, %cst_30 {dimension_numbers = #tpu.dot_dimension_numbers<[1], [0], [0], [1], [0, 0, 1, 1], [], []>} : vector<8x32xf32>, vector<32x32xf32>, vector<8x32xf32> -> vector<8x32xf32>
    %c0_31 = arith.constant 0 : index
    %c0_32 = arith.constant 0 : index
    %42 = vector.load %arg12[%c0_31, %c0_32] : memref<1x32xf32, #tpu.memory_space<vmem>>, vector<1x32xf32>
    %43 = vector.broadcast %42 : vector<1x32xf32> to vector<8x32xf32>
    %44 = arith.addf %41, %43 : vector<8x32xf32>
    %45 = tpu.iota {dimensions = array<i32: 0>} : vector<8x32xi32>
    %c1_i32 = arith.constant 1 : i32
    %46 = vector.broadcast %c1_i32 : i32 to vector<8x32xi32>
    %47 = arith.addi %45, %46 : vector<8x32xi32>
    %48 = vector.broadcast %3 : vector<1x1xi32> to vector<8x32xi32>
    %49 = arith.cmpi slt, %47, %48 : vector<8x32xi32>
    %50 = arith.extui %49 : vector<8x32xi1> to vector<8x32xi32>
    %51 = arith.sitofp %50 : vector<8x32xi32> to vector<8x32xf32>
    %52 = arith.mulf %44, %51 : vector<8x32xf32>
    %53 = tpu.iota {dimensions = array<i32: 0>} : vector<8x8xi32>
    %54 = tpu.iota {dimensions = array<i32: 1>} : vector<8x8xi32>
    %55 = arith.cmpi slt, %54, %53 : vector<8x8xi32>
    %56 = arith.extui %55 : vector<8x8xi1> to vector<8x8xi32>
    %57 = arith.sitofp %56 : vector<8x8xi32> to vector<8x8xf32>
    %c0_33 = arith.constant 0 : index
    %c0_34 = arith.constant 0 : index
    %c0_35 = arith.constant 0 : index
    %58 = vector.load %arg2[%c0_33, %c0_34, %c0_35] : memref<1x1x32xf32, #tpu.memory_space<vmem>>, vector<1x1x32xf32>
    %59 = vector.shape_cast %58 : vector<1x1x32xf32> to vector<1x32xf32>
    %cst_36 = arith.constant dense<0.000000e+00> : vector<8x32xf32>
    %60 = tpu.matmul %57, %52, %cst_36 {dimension_numbers = #tpu.dot_dimension_numbers<[1], [0], [0], [1], [0, 0, 1, 1], [], []>} : vector<8x8xf32>, vector<8x32xf32>, vector<8x32xf32> -> vector<8x32xf32>
    %61 = vector.broadcast %59 : vector<1x32xf32> to vector<8x32xf32>
    %62 = arith.addf %61, %60 : vector<8x32xf32>
    %cst_37 = arith.constant dense<0.000000e+00> : vector<32xf32>
    %63 = vector.multi_reduction <add>, %52, %cst_37 [0] : vector<8x32xf32> to vector<32xf32>
    %64 = vector.shape_cast %63 : vector<32xf32> to vector<1x32xf32>
    %65 = arith.addf %59, %64 : vector<1x32xf32>
    %c0_38 = arith.constant 0 : index
    %c0_39 = arith.constant 0 : index
    %c0_40 = arith.constant 0 : index
    %66 = vector.load %arg25[%c0_38, %c0_39, %c0_40] : memref<1x1x32xf32, #tpu.memory_space<vmem>>, vector<1x1x32xf32>
    %67 = vector.shape_cast %66 : vector<1x1x32xf32> to vector<1x32xf32>
    %68 = vector.shape_cast %65 : vector<1x32xf32> to vector<1x1x32xf32>
    tpu.vector_store %arg25[%c0_38, %c0_39, %c0_40], %68 {strides = array<i32>} : memref<1x1x32xf32, #tpu.memory_space<vmem>>, vector<1x1x32xf32>,
    %c0_41 = arith.constant 0 : index
    %c0_42 = arith.constant 0 : index
    %69 = vector.load %arg13[%c0_41, %c0_42] : memref<32x32xf32, #tpu.memory_space<vmem>>, vector<32x32xf32>
    %cst_43 = arith.constant dense<0.000000e+00> : vector<8x32xf32>
    %70 = tpu.matmul %62, %69, %cst_43 {dimension_numbers = #tpu.dot_dimension_numbers<[1], [0], [0], [1], [0, 0, 1, 1], [], []>} : vector<8x32xf32>, vector<32x32xf32>, vector<8x32xf32> -> vector<8x32xf32>
    %c0_44 = arith.constant 0 : index
    %c0_45 = arith.constant 0 : index
    %71 = vector.load %arg14[%c0_44, %c0_45] : memref<1x32xf32, #tpu.memory_space<vmem>>, vector<1x32xf32>
    %72 = vector.broadcast %71 : vector<1x32xf32> to vector<8x32xf32>
    %73 = arith.addf %70, %72 : vector<8x32xf32>
    %cst_46 = arith.constant 0.000000e+00 : f32
    %74 = vector.broadcast %cst_46 : f32 to vector<8x32xf32>
    %75 = arith.maximumf %73, %74 : vector<8x32xf32>
    %c0_47 = arith.constant 0 : index
    %c0_48 = arith.constant 0 : index
    %c0_49 = arith.constant 0 : index
    %76 = vector.load %arg15[%c0_47, %c0_48, %c0_49] : memref<1x32x128xf32, #tpu.memory_space<vmem>>, vector<1x32x128xf32>
    %77 = vector.shape_cast %76 : vector<1x32x128xf32> to vector<32x128xf32>
    %cst_50 = arith.constant dense<0.000000e+00> : vector<8x128xf32>
    %78 = tpu.matmul %75, %77, %cst_50 {dimension_numbers = #tpu.dot_dimension_numbers<[1], [0], [0], [1], [0, 0, 1, 1], [], []>} : vector<8x32xf32>, vector<32x128xf32>, vector<8x128xf32> -> vector<8x128xf32>
    %c0_51 = arith.constant 0 : index
    %c0_52 = arith.constant 0 : index
    %79 = vector.load %arg16[%c0_51, %c0_52] : memref<1x128xf32, #tpu.memory_space<vmem>>, vector<1x128xf32>
    %80 = vector.broadcast %79 : vector<1x128xf32> to vector<8x128xf32>
    %81 = arith.addf %78, %80 : vector<8x128xf32>
    %cst_53 = arith.constant 0.000000e+00 : f32
    %82 = vector.broadcast %cst_53 : f32 to vector<1x32xf32>
    %cst_54 = arith.constant 0.000000e+00 : f32
    %83 = vector.broadcast %cst_54 : f32 to vector<1x32xf32>
    %84 = vector.extract_strided_slice %81 {offsets = [0, 0], sizes = [1, 128], strides = [1, 1]} : vector<8x128xf32> to vector<1x128xf32>
    %c0_55 = arith.constant 0 : index
    %c0_56 = arith.constant 0 : index
    %c0_57 = arith.constant 0 : index
    %85 = vector.load %arg17[%c0_55, %c0_56, %c0_57] : memref<1x32x128xf32, #tpu.memory_space<vmem>>, vector<1x32x128xf32>
    %86 = vector.shape_cast %85 : vector<1x32x128xf32> to vector<32x128xf32>
    %c0_58 = arith.constant 0 : index
    %c0_59 = arith.constant 0 : index
    %c0_60 = arith.constant 0 : index
    %87 = vector.load %arg18[%c0_58, %c0_59, %c0_60] : memref<1x1x128xf32, #tpu.memory_space<vmem>>, vector<1x1x128xf32>
    %88 = vector.shape_cast %87 : vector<1x1x128xf32> to vector<1x128xf32>
    %c0_61 = arith.constant 0 : index
    %c0_62 = arith.constant 0 : index
    %c0_63 = arith.constant 0 : index
    %89 = vector.load %arg19[%c0_61, %c0_62, %c0_63] : memref<1x1x128xf32, #tpu.memory_space<vmem>>, vector<1x1x128xf32>
    %90 = vector.shape_cast %89 : vector<1x1x128xf32> to vector<1x128xf32>
    %c0_64 = arith.constant 0 : index
    %c0_65 = arith.constant 0 : index
    %c0_66 = arith.constant 0 : index
    %91 = vector.load %arg20[%c0_64, %c0_65, %c0_66] : memref<1x1x128xf32, #tpu.memory_space<vmem>>, vector<1x1x128xf32>
    %92 = vector.shape_cast %91 : vector<1x1x128xf32> to vector<1x128xf32>
    %c0_67 = arith.constant 0 : index
    %c0_68 = arith.constant 0 : index
    %c0_69 = arith.constant 0 : index
    %93 = vector.load %arg21[%c0_67, %c0_68, %c0_69] : memref<1x1x128xf32, #tpu.memory_space<vmem>>, vector<1x1x128xf32>
    %94 = vector.shape_cast %93 : vector<1x1x128xf32> to vector<1x128xf32>
    %c0_70 = arith.constant 0 : index
    %c0_71 = arith.constant 0 : index
    %c0_72 = arith.constant 0 : index
    %95 = vector.load %arg22[%c0_70, %c0_71, %c0_72] : memref<1x1x32xf32, #tpu.memory_space<vmem>>, vector<1x1x32xf32>
    %96 = vector.shape_cast %95 : vector<1x1x32xf32> to vector<1x32xf32>
    %c0_73 = arith.constant 0 : index
    %c0_74 = arith.constant 0 : index
    %c0_75 = arith.constant 0 : index
    %97 = vector.load %arg23[%c0_73, %c0_74, %c0_75] : memref<1x1x32xf32, #tpu.memory_space<vmem>>, vector<1x1x32xf32>
    %98 = vector.shape_cast %97 : vector<1x1x32xf32> to vector<1x32xf32>
    %cst_76 = arith.constant dense<0.000000e+00> : vector<1xf32>
    %99 = vector.multi_reduction <add>, %84, %cst_76 [1] : vector<1x128xf32> to vector<1xf32>
    %100 = vector.shape_cast %99 : vector<1xf32> to vector<1x1xf32>
    %cst_77 = arith.constant 1.280000e+02 : f32
    %101 = vector.broadcast %cst_77 : f32 to vector<1x1xf32>
    %102 = arith.divf %100, %101 : vector<1x1xf32>
    %103 = vector.broadcast %102 : vector<1x1xf32> to vector<1x128xf32>
    %104 = arith.subf %84, %103 : vector<1x128xf32>
    %105 = arith.mulf %104, %104 : vector<1x128xf32>
    %cst_78 = arith.constant dense<0.000000e+00> : vector<1xf32>
    %106 = vector.multi_reduction <add>, %105, %cst_78 [1] : vector<1x128xf32> to vector<1xf32>
    %107 = vector.shape_cast %106 : vector<1xf32> to vector<1x1xf32>
    %cst_79 = arith.constant 1.280000e+02 : f32
    %108 = vector.broadcast %cst_79 : f32 to vector<1x1xf32>
    %109 = arith.divf %107, %108 : vector<1x1xf32>
    %110 = vector.broadcast %102 : vector<1x1xf32> to vector<1x128xf32>
    %111 = arith.subf %84, %110 : vector<1x128xf32>
    %cst_80 = arith.constant 9.99999974E-6 : f32
    %112 = vector.broadcast %cst_80 : f32 to vector<1x1xf32>
    %113 = arith.addf %109, %112 : vector<1x1xf32>
    %114 = math.rsqrt %113 : vector<1x1xf32>
    %115 = vector.broadcast %114 : vector<1x1xf32> to vector<1x128xf32>
    %116 = arith.mulf %111, %115 : vector<1x128xf32>
    %117 = arith.mulf %116, %88 : vector<1x128xf32>
    %118 = arith.addf %117, %90 : vector<1x128xf32>
    %cst_81 = arith.constant dense<0.000000e+00> : vector<1x128xf32>
    %119 = tpu.matmul %82, %86, %cst_81 {dimension_numbers = #tpu.dot_dimension_numbers<[1], [0], [0], [1], [0, 0, 1, 1], [], []>} : vector<1x32xf32>, vector<32x128xf32>, vector<1x128xf32> -> vector<1x128xf32>
    %cst_82 = arith.constant dense<0.000000e+00> : vector<1xf32>
    %120 = vector.multi_reduction <add>, %119, %cst_82 [1] : vector<1x128xf32> to vector<1xf32>
    %121 = vector.shape_cast %120 : vector<1xf32> to vector<1x1xf32>
    %cst_83 = arith.constant 1.280000e+02 : f32
    %122 = vector.broadcast %cst_83 : f32 to vector<1x1xf32>
    %123 = arith.divf %121, %122 : vector<1x1xf32>
    %124 = vector.broadcast %123 : vector<1x1xf32> to vector<1x128xf32>
    %125 = arith.subf %119, %124 : vector<1x128xf32>
    %126 = arith.mulf %125, %125 : vector<1x128xf32>
    %cst_84 = arith.constant dense<0.000000e+00> : vector<1xf32>
    %127 = vector.multi_reduction <add>, %126, %cst_84 [1] : vector<1x128xf32> to vector<1xf32>
    %128 = vector.shape_cast %127 : vector<1xf32> to vector<1x1xf32>
    %cst_85 = arith.constant 1.280000e+02 : f32
    %129 = vector.broadcast %cst_85 : f32 to vector<1x1xf32>
    %130 = arith.divf %128, %129 : vector<1x1xf32>
    %131 = vector.broadcast %123 : vector<1x1xf32> to vector<1x128xf32>
    %132 = arith.subf %119, %131 : vector<1x128xf32>
    %cst_86 = arith.constant 9.99999974E-6 : f32
    %133 = vector.broadcast %cst_86 : f32 to vector<1x1xf32>
    %134 = arith.addf %130, %133 : vector<1x1xf32>
    %135 = math.rsqrt %134 : vector<1x1xf32>
    %136 = vector.broadcast %135 : vector<1x1xf32> to vector<1x128xf32>
    %137 = arith.mulf %132, %136 : vector<1x128xf32>
    %138 = arith.mulf %137, %92 : vector<1x128xf32>
    %139 = arith.addf %138, %94 : vector<1x128xf32>
    %140 = arith.addf %118, %139 : vector<1x128xf32>
    %141 = arith.negf %140 : vector<1x128xf32>
    %142 = math.exp %141 : vector<1x128xf32>
    %cst_87 = arith.constant 1.000000e+00 : f32
    %143 = vector.broadcast %cst_87 : f32 to vector<1x128xf32>
    %144 = arith.addf %143, %142 : vector<1x128xf32>
    %145 = arith.divf %143, %144 : vector<1x128xf32>
    %146 = vector.extract_strided_slice %145 {offsets = [0, 0], sizes = [1, 32], strides = [1, 1]} : vector<1x128xf32> to vector<1x32xf32>
    %147 = vector.extract_strided_slice %145 {offsets = [0, 32], sizes = [1, 32], strides = [1, 1]} : vector<1x128xf32> to vector<1x32xf32>
    %148 = vector.extract_strided_slice %145 {offsets = [0, 96], sizes = [1, 32], strides = [1, 1]} : vector<1x128xf32> to vector<1x32xf32>
    %149 = vector.extract_strided_slice %140 {offsets = [0, 64], sizes = [1, 32], strides = [1, 1]} : vector<1x128xf32> to vector<1x32xf32>
    %150 = math.tanh %149 : vector<1x32xf32>
    %151 = arith.mulf %147, %83 : vector<1x32xf32>
    %152 = arith.mulf %146, %150 : vector<1x32xf32>
    %153 = arith.addf %151, %152 : vector<1x32xf32>
    %cst_88 = arith.constant dense<0.000000e+00> : vector<1xf32>
    %154 = vector.multi_reduction <add>, %153, %cst_88 [1] : vector<1x32xf32> to vector<1xf32>
    %155 = vector.shape_cast %154 : vector<1xf32> to vector<1x1xf32>
    %cst_89 = arith.constant 3.200000e+01 : f32
    %156 = vector.broadcast %cst_89 : f32 to vector<1x1xf32>
    %157 = arith.divf %155, %156 : vector<1x1xf32>
    %158 = vector.broadcast %157 : vector<1x1xf32> to vector<1x32xf32>
    %159 = arith.subf %153, %158 : vector<1x32xf32>
    %160 = arith.mulf %159, %159 : vector<1x32xf32>
    %cst_90 = arith.constant dense<0.000000e+00> : vector<1xf32>
    %161 = vector.multi_reduction <add>, %160, %cst_90 [1] : vector<1x32xf32> to vector<1xf32>
    %162 = vector.shape_cast %161 : vector<1xf32> to vector<1x1xf32>
    %cst_91 = arith.constant 3.200000e+01 : f32
    %163 = vector.broadcast %cst_91 : f32 to vector<1x1xf32>
    %164 = arith.divf %162, %163 : vector<1x1xf32>
    %165 = vector.broadcast %157 : vector<1x1xf32> to vector<1x32xf32>
    %166 = arith.subf %153, %165 : vector<1x32xf32>
    %cst_92 = arith.constant 9.99999974E-6 : f32
    %167 = vector.broadcast %cst_92 : f32 to vector<1x1xf32>
    %168 = arith.addf %164, %167 : vector<1x1xf32>
    %169 = math.rsqrt %168 : vector<1x1xf32>
    %170 = vector.broadcast %169 : vector<1x1xf32> to vector<1x32xf32>
    %171 = arith.mulf %166, %170 : vector<1x32xf32>
    %172 = arith.mulf %171, %96 : vector<1x32xf32>
    %173 = arith.addf %172, %98 : vector<1x32xf32>
    %174 = math.tanh %173 : vector<1x32xf32>
    %175 = arith.mulf %148, %174 : vector<1x32xf32>
    %c0_93 = arith.constant 0 : index
    %c0_94 = arith.constant 0 : index
    %176 = vector.load %arg27[%c0_93, %c0_94] : memref<8x32xf32, #tpu.memory_space<vmem>>, vector<1x32xf32>
    tpu.vector_store %arg27[%c0_93, %c0_94], %175 {strides = array<i32>} : memref<8x32xf32, #tpu.memory_space<vmem>>, vector<1x32xf32>,
    %177 = vector.extract_strided_slice %81 {offsets = [1, 0], sizes = [1, 128], strides = [1, 1]} : vector<8x128xf32> to vector<1x128xf32>
    %c0_95 = arith.constant 0 : index
    %c0_96 = arith.constant 0 : index
    %c0_97 = arith.constant 0 : index
    %178 = vector.load %arg17[%c0_95, %c0_96, %c0_97] : memref<1x32x128xf32, #tpu.memory_space<vmem>>, vector<1x32x128xf32>
    %179 = vector.shape_cast %178 : vector<1x32x128xf32> to vector<32x128xf32>
    %c0_98 = arith.constant 0 : index
    %c0_99 = arith.constant 0 : index
    %c0_100 = arith.constant 0 : index
    %180 = vector.load %arg18[%c0_98, %c0_99, %c0_100] : memref<1x1x128xf32, #tpu.memory_space<vmem>>, vector<1x1x128xf32>
    %181 = vector.shape_cast %180 : vector<1x1x128xf32> to vector<1x128xf32>
    %c0_101 = arith.constant 0 : index
    %c0_102 = arith.constant 0 : index
    %c0_103 = arith.constant 0 : index
    %182 = vector.load %arg19[%c0_101, %c0_102, %c0_103] : memref<1x1x128xf32, #tpu.memory_space<vmem>>, vector<1x1x128xf32>
    %183 = vector.shape_cast %182 : vector<1x1x128xf32> to vector<1x128xf32>
    %c0_104 = arith.constant 0 : index
    %c0_105 = arith.constant 0 : index
    %c0_106 = arith.constant 0 : index
    %184 = vector.load %arg20[%c0_104, %c0_105, %c0_106] : memref<1x1x128xf32, #tpu.memory_space<vmem>>, vector<1x1x128xf32>
    %185 = vector.shape_cast %184 : vector<1x1x128xf32> to vector<1x128xf32>
    %c0_107 = arith.constant 0 : index
    %c0_108 = arith.constant 0 : index
    %c0_109 = arith.constant 0 : index
    %186 = vector.load %arg21[%c0_107, %c0_108, %c0_109] : memref<1x1x128xf32, #tpu.memory_space<vmem>>, vector<1x1x128xf32>
    %187 = vector.shape_cast %186 : vector<1x1x128xf32> to vector<1x128xf32>
    %c0_110 = arith.constant 0 : index
    %c0_111 = arith.constant 0 : index
    %c0_112 = arith.constant 0 : index
    %188 = vector.load %arg22[%c0_110, %c0_111, %c0_112] : memref<1x1x32xf32, #tpu.memory_space<vmem>>, vector<1x1x32xf32>
    %189 = vector.shape_cast %188 : vector<1x1x32xf32> to vector<1x32xf32>
    %c0_113 = arith.constant 0 : index
    %c0_114 = arith.constant 0 : index
    %c0_115 = arith.constant 0 : index
    %190 = vector.load %arg23[%c0_113, %c0_114, %c0_115] : memref<1x1x32xf32, #tpu.memory_space<vmem>>, vector<1x1x32xf32>
    %191 = vector.shape_cast %190 : vector<1x1x32xf32> to vector<1x32xf32>
    %cst_116 = arith.constant dense<0.000000e+00> : vector<1xf32>
    %192 = vector.multi_reduction <add>, %177, %cst_116 [1] : vector<1x128xf32> to vector<1xf32>
    %193 = vector.shape_cast %192 : vector<1xf32> to vector<1x1xf32>
    %cst_117 = arith.constant 1.280000e+02 : f32
    %194 = vector.broadcast %cst_117 : f32 to vector<1x1xf32>
    %195 = arith.divf %193, %194 : vector<1x1xf32>
    %196 = vector.broadcast %195 : vector<1x1xf32> to vector<1x128xf32>
    %197 = arith.subf %177, %196 : vector<1x128xf32>
    %198 = arith.mulf %197, %197 : vector<1x128xf32>
    %cst_118 = arith.constant dense<0.000000e+00> : vector<1xf32>
    %199 = vector.multi_reduction <add>, %198, %cst_118 [1] : vector<1x128xf32> to vector<1xf32>
    %200 = vector.shape_cast %199 : vector<1xf32> to vector<1x1xf32>
    %cst_119 = arith.constant 1.280000e+02 : f32
    %201 = vector.broadcast %cst_119 : f32 to vector<1x1xf32>
    %202 = arith.divf %200, %201 : vector<1x1xf32>
    %203 = vector.broadcast %195 : vector<1x1xf32> to vector<1x128xf32>
    %204 = arith.subf %177, %203 : vector<1x128xf32>
    %cst_120 = arith.constant 9.99999974E-6 : f32
    %205 = vector.broadcast %cst_120 : f32 to vector<1x1xf32>
    %206 = arith.addf %202, %205 : vector<1x1xf32>
    %207 = math.rsqrt %206 : vector<1x1xf32>
    %208 = vector.broadcast %207 : vector<1x1xf32> to vector<1x128xf32>
    %209 = arith.mulf %204, %208 : vector<1x128xf32>
    %210 = arith.mulf %209, %181 : vector<1x128xf32>
    %211 = arith.addf %210, %183 : vector<1x128xf32>
    %cst_121 = arith.constant dense<0.000000e+00> : vector<1x128xf32>
    %212 = tpu.matmul %175, %179, %cst_121 {dimension_numbers = #tpu.dot_dimension_numbers<[1], [0], [0], [1], [0, 0, 1, 1], [], []>} : vector<1x32xf32>, vector<32x128xf32>, vector<1x128xf32> -> vector<1x128xf32>
    %cst_122 = arith.constant dense<0.000000e+00> : vector<1xf32>
    %213 = vector.multi_reduction <add>, %212, %cst_122 [1] : vector<1x128xf32> to vector<1xf32>
    %214 = vector.shape_cast %213 : vector<1xf32> to vector<1x1xf32>
    %cst_123 = arith.constant 1.280000e+02 : f32
    %215 = vector.broadcast %cst_123 : f32 to vector<1x1xf32>
    %216 = arith.divf %214, %215 : vector<1x1xf32>
    %217 = vector.broadcast %216 : vector<1x1xf32> to vector<1x128xf32>
    %218 = arith.subf %212, %217 : vector<1x128xf32>
    %219 = arith.mulf %218, %218 : vector<1x128xf32>
    %cst_124 = arith.constant dense<0.000000e+00> : vector<1xf32>
    %220 = vector.multi_reduction <add>, %219, %cst_124 [1] : vector<1x128xf32> to vector<1xf32>
    %221 = vector.shape_cast %220 : vector<1xf32> to vector<1x1xf32>
    %cst_125 = arith.constant 1.280000e+02 : f32
    %222 = vector.broadcast %cst_125 : f32 to vector<1x1xf32>
    %223 = arith.divf %221, %222 : vector<1x1xf32>
    %224 = vector.broadcast %216 : vector<1x1xf32> to vector<1x128xf32>
    %225 = arith.subf %212, %224 : vector<1x128xf32>
    %cst_126 = arith.constant 9.99999974E-6 : f32
    %226 = vector.broadcast %cst_126 : f32 to vector<1x1xf32>
    %227 = arith.addf %223, %226 : vector<1x1xf32>
    %228 = math.rsqrt %227 : vector<1x1xf32>
    %229 = vector.broadcast %228 : vector<1x1xf32> to vector<1x128xf32>
    %230 = arith.mulf %225, %229 : vector<1x128xf32>
    %231 = arith.mulf %230, %185 : vector<1x128xf32>
    %232 = arith.addf %231, %187 : vector<1x128xf32>
    %233 = arith.addf %211, %232 : vector<1x128xf32>
    %234 = arith.negf %233 : vector<1x128xf32>
    %235 = math.exp %234 : vector<1x128xf32>
    %cst_127 = arith.constant 1.000000e+00 : f32
    %236 = vector.broadcast %cst_127 : f32 to vector<1x128xf32>
    %237 = arith.addf %236, %235 : vector<1x128xf32>
    %238 = arith.divf %236, %237 : vector<1x128xf32>
    %239 = vector.extract_strided_slice %238 {offsets = [0, 0], sizes = [1, 32], strides = [1, 1]} : vector<1x128xf32> to vector<1x32xf32>
    %240 = vector.extract_strided_slice %238 {offsets = [0, 32], sizes = [1, 32], strides = [1, 1]} : vector<1x128xf32> to vector<1x32xf32>
    %241 = vector.extract_strided_slice %238 {offsets = [0, 96], sizes = [1, 32], strides = [1, 1]} : vector<1x128xf32> to vector<1x32xf32>
    %242 = vector.extract_strided_slice %233 {offsets = [0, 64], sizes = [1, 32], strides = [1, 1]} : vector<1x128xf32> to vector<1x32xf32>
    %243 = math.tanh %242 : vector<1x32xf32>
    %244 = arith.mulf %240, %173 : vector<1x32xf32>
    %245 = arith.mulf %239, %243 : vector<1x32xf32>
    %246 = arith.addf %244, %245 : vector<1x32xf32>
    %cst_128 = arith.constant dense<0.000000e+00> : vector<1xf32>
    %247 = vector.multi_reduction <add>, %246, %cst_128 [1] : vector<1x32xf32> to vector<1xf32>
    %248 = vector.shape_cast %247 : vector<1xf32> to vector<1x1xf32>
    %cst_129 = arith.constant 3.200000e+01 : f32
    %249 = vector.broadcast %cst_129 : f32 to vector<1x1xf32>
    %250 = arith.divf %248, %249 : vector<1x1xf32>
    %251 = vector.broadcast %250 : vector<1x1xf32> to vector<1x32xf32>
    %252 = arith.subf %246, %251 : vector<1x32xf32>
    %253 = arith.mulf %252, %252 : vector<1x32xf32>
    %cst_130 = arith.constant dense<0.000000e+00> : vector<1xf32>
    %254 = vector.multi_reduction <add>, %253, %cst_130 [1] : vector<1x32xf32> to vector<1xf32>
    %255 = vector.shape_cast %254 : vector<1xf32> to vector<1x1xf32>
    %cst_131 = arith.constant 3.200000e+01 : f32
    %256 = vector.broadcast %cst_131 : f32 to vector<1x1xf32>
    %257 = arith.divf %255, %256 : vector<1x1xf32>
    %258 = vector.broadcast %250 : vector<1x1xf32> to vector<1x32xf32>
    %259 = arith.subf %246, %258 : vector<1x32xf32>
    %cst_132 = arith.constant 9.99999974E-6 : f32
    %260 = vector.broadcast %cst_132 : f32 to vector<1x1xf32>
    %261 = arith.addf %257, %260 : vector<1x1xf32>
    %262 = math.rsqrt %261 : vector<1x1xf32>
    %263 = vector.broadcast %262 : vector<1x1xf32> to vector<1x32xf32>
    %264 = arith.mulf %259, %263 : vector<1x32xf32>
    %265 = arith.mulf %264, %189 : vector<1x32xf32>
    %266 = arith.addf %265, %191 : vector<1x32xf32>
    %267 = math.tanh %266 : vector<1x32xf32>
    %268 = arith.mulf %241, %267 : vector<1x32xf32>
    %c1 = arith.constant 1 : index
    %c0_133 = arith.constant 0 : index
    %269 = vector.load %arg27[%c1, %c0_133] : memref<8x32xf32, #tpu.memory_space<vmem>>, vector<1x32xf32>
    tpu.vector_store %arg27[%c1, %c0_133], %268 {strides = array<i32>} : memref<8x32xf32, #tpu.memory_space<vmem>>, vector<1x32xf32>,
    %270 = vector.extract_strided_slice %81 {offsets = [2, 0], sizes = [1, 128], strides = [1, 1]} : vector<8x128xf32> to vector<1x128xf32>
    %c0_134 = arith.constant 0 : index
    %c0_135 = arith.constant 0 : index
    %c0_136 = arith.constant 0 : index
    %271 = vector.load %arg17[%c0_134, %c0_135, %c0_136] : memref<1x32x128xf32, #tpu.memory_space<vmem>>, vector<1x32x128xf32>
    %272 = vector.shape_cast %271 : vector<1x32x128xf32> to vector<32x128xf32>
    %c0_137 = arith.constant 0 : index
    %c0_138 = arith.constant 0 : index
    %c0_139 = arith.constant 0 : index
    %273 = vector.load %arg18[%c0_137, %c0_138, %c0_139] : memref<1x1x128xf32, #tpu.memory_space<vmem>>, vector<1x1x128xf32>
    %274 = vector.shape_cast %273 : vector<1x1x128xf32> to vector<1x128xf32>
    %c0_140 = arith.constant 0 : index
    %c0_141 = arith.constant 0 : index
    %c0_142 = arith.constant 0 : index
    %275 = vector.load %arg19[%c0_140, %c0_141, %c0_142] : memref<1x1x128xf32, #tpu.memory_space<vmem>>, vector<1x1x128xf32>
    %276 = vector.shape_cast %275 : vector<1x1x128xf32> to vector<1x128xf32>
    %c0_143 = arith.constant 0 : index
    %c0_144 = arith.constant 0 : index
    %c0_145 = arith.constant 0 : index
    %277 = vector.load %arg20[%c0_143, %c0_144, %c0_145] : memref<1x1x128xf32, #tpu.memory_space<vmem>>, vector<1x1x128xf32>
    %278 = vector.shape_cast %277 : vector<1x1x128xf32> to vector<1x128xf32>
    %c0_146 = arith.constant 0 : index
    %c0_147 = arith.constant 0 : index
    %c0_148 = arith.constant 0 : index
    %279 = vector.load %arg21[%c0_146, %c0_147, %c0_148] : memref<1x1x128xf32, #tpu.memory_space<vmem>>, vector<1x1x128xf32>
    %280 = vector.shape_cast %279 : vector<1x1x128xf32> to vector<1x128xf32>
    %c0_149 = arith.constant 0 : index
    %c0_150 = arith.constant 0 : index
    %c0_151 = arith.constant 0 : index
    %281 = vector.load %arg22[%c0_149, %c0_150, %c0_151] : memref<1x1x32xf32, #tpu.memory_space<vmem>>, vector<1x1x32xf32>
    %282 = vector.shape_cast %281 : vector<1x1x32xf32> to vector<1x32xf32>
    %c0_152 = arith.constant 0 : index
    %c0_153 = arith.constant 0 : index
    %c0_154 = arith.constant 0 : index
    %283 = vector.load %arg23[%c0_152, %c0_153, %c0_154] : memref<1x1x32xf32, #tpu.memory_space<vmem>>, vector<1x1x32xf32>
    %284 = vector.shape_cast %283 : vector<1x1x32xf32> to vector<1x32xf32>
    %cst_155 = arith.constant dense<0.000000e+00> : vector<1xf32>
    %285 = vector.multi_reduction <add>, %270, %cst_155 [1] : vector<1x128xf32> to vector<1xf32>
    %286 = vector.shape_cast %285 : vector<1xf32> to vector<1x1xf32>
    %cst_156 = arith.constant 1.280000e+02 : f32
    %287 = vector.broadcast %cst_156 : f32 to vector<1x1xf32>
    %288 = arith.divf %286, %287 : vector<1x1xf32>
    %289 = vector.broadcast %288 : vector<1x1xf32> to vector<1x128xf32>
    %290 = arith.subf %270, %289 : vector<1x128xf32>
    %291 = arith.mulf %290, %290 : vector<1x128xf32>
    %cst_157 = arith.constant dense<0.000000e+00> : vector<1xf32>
    %292 = vector.multi_reduction <add>, %291, %cst_157 [1] : vector<1x128xf32> to vector<1xf32>
    %293 = vector.shape_cast %292 : vector<1xf32> to vector<1x1xf32>
    %cst_158 = arith.constant 1.280000e+02 : f32
    %294 = vector.broadcast %cst_158 : f32 to vector<1x1xf32>
    %295 = arith.divf %293, %294 : vector<1x1xf32>
    %296 = vector.broadcast %288 : vector<1x1xf32> to vector<1x128xf32>
    %297 = arith.subf %270, %296 : vector<1x128xf32>
    %cst_159 = arith.constant 9.99999974E-6 : f32
    %298 = vector.broadcast %cst_159 : f32 to vector<1x1xf32>
    %299 = arith.addf %295, %298 : vector<1x1xf32>
    %300 = math.rsqrt %299 : vector<1x1xf32>
    %301 = vector.broadcast %300 : vector<1x1xf32> to vector<1x128xf32>
    %302 = arith.mulf %297, %301 : vector<1x128xf32>
    %303 = arith.mulf %302, %274 : vector<1x128xf32>
    %304 = arith.addf %303, %276 : vector<1x128xf32>
    %cst_160 = arith.constant dense<0.000000e+00> : vector<1x128xf32>
    %305 = tpu.matmul %268, %272, %cst_160 {dimension_numbers = #tpu.dot_dimension_numbers<[1], [0], [0], [1], [0, 0, 1, 1], [], []>} : vector<1x32xf32>, vector<32x128xf32>, vector<1x128xf32> -> vector<1x128xf32>
    %cst_161 = arith.constant dense<0.000000e+00> : vector<1xf32>
    %306 = vector.multi_reduction <add>, %305, %cst_161 [1] : vector<1x128xf32> to vector<1xf32>
    %307 = vector.shape_cast %306 : vector<1xf32> to vector<1x1xf32>
    %cst_162 = arith.constant 1.280000e+02 : f32
    %308 = vector.broadcast %cst_162 : f32 to vector<1x1xf32>
    %309 = arith.divf %307, %308 : vector<1x1xf32>
    %310 = vector.broadcast %309 : vector<1x1xf32> to vector<1x128xf32>
    %311 = arith.subf %305, %310 : vector<1x128xf32>
    %312 = arith.mulf %311, %311 : vector<1x128xf32>
    %cst_163 = arith.constant dense<0.000000e+00> : vector<1xf32>
    %313 = vector.multi_reduction <add>, %312, %cst_163 [1] : vector<1x128xf32> to vector<1xf32>
    %314 = vector.shape_cast %313 : vector<1xf32> to vector<1x1xf32>
    %cst_164 = arith.constant 1.280000e+02 : f32
    %315 = vector.broadcast %cst_164 : f32 to vector<1x1xf32>
    %316 = arith.divf %314, %315 : vector<1x1xf32>
    %317 = vector.broadcast %309 : vector<1x1xf32> to vector<1x128xf32>
    %318 = arith.subf %305, %317 : vector<1x128xf32>
    %cst_165 = arith.constant 9.99999974E-6 : f32
    %319 = vector.broadcast %cst_165 : f32 to vector<1x1xf32>
    %320 = arith.addf %316, %319 : vector<1x1xf32>
    %321 = math.rsqrt %320 : vector<1x1xf32>
    %322 = vector.broadcast %321 : vector<1x1xf32> to vector<1x128xf32>
    %323 = arith.mulf %318, %322 : vector<1x128xf32>
    %324 = arith.mulf %323, %278 : vector<1x128xf32>
    %325 = arith.addf %324, %280 : vector<1x128xf32>
    %326 = arith.addf %304, %325 : vector<1x128xf32>
    %327 = arith.negf %326 : vector<1x128xf32>
    %328 = math.exp %327 : vector<1x128xf32>
    %cst_166 = arith.constant 1.000000e+00 : f32
    %329 = vector.broadcast %cst_166 : f32 to vector<1x128xf32>
    %330 = arith.addf %329, %328 : vector<1x128xf32>
    %331 = arith.divf %329, %330 : vector<1x128xf32>
    %332 = vector.extract_strided_slice %331 {offsets = [0, 0], sizes = [1, 32], strides = [1, 1]} : vector<1x128xf32> to vector<1x32xf32>
    %333 = vector.extract_strided_slice %331 {offsets = [0, 32], sizes = [1, 32], strides = [1, 1]} : vector<1x128xf32> to vector<1x32xf32>
    %334 = vector.extract_strided_slice %331 {offsets = [0, 96], sizes = [1, 32], strides = [1, 1]} : vector<1x128xf32> to vector<1x32xf32>
    %335 = vector.extract_strided_slice %326 {offsets = [0, 64], sizes = [1, 32], strides = [1, 1]} : vector<1x128xf32> to vector<1x32xf32>
    %336 = math.tanh %335 : vector<1x32xf32>
    %337 = arith.mulf %333, %266 : vector<1x32xf32>
    %338 = arith.mulf %332, %336 : vector<1x32xf32>
    %339 = arith.addf %337, %338 : vector<1x32xf32>
    %cst_167 = arith.constant dense<0.000000e+00> : vector<1xf32>
    %340 = vector.multi_reduction <add>, %339, %cst_167 [1] : vector<1x32xf32> to vector<1xf32>
    %341 = vector.shape_cast %340 : vector<1xf32> to vector<1x1xf32>
    %cst_168 = arith.constant 3.200000e+01 : f32
    %342 = vector.broadcast %cst_168 : f32 to vector<1x1xf32>
    %343 = arith.divf %341, %342 : vector<1x1xf32>
    %344 = vector.broadcast %343 : vector<1x1xf32> to vector<1x32xf32>
    %345 = arith.subf %339, %344 : vector<1x32xf32>
    %346 = arith.mulf %345, %345 : vector<1x32xf32>
    %cst_169 = arith.constant dense<0.000000e+00> : vector<1xf32>
    %347 = vector.multi_reduction <add>, %346, %cst_169 [1] : vector<1x32xf32> to vector<1xf32>
    %348 = vector.shape_cast %347 : vector<1xf32> to vector<1x1xf32>
    %cst_170 = arith.constant 3.200000e+01 : f32
    %349 = vector.broadcast %cst_170 : f32 to vector<1x1xf32>
    %350 = arith.divf %348, %349 : vector<1x1xf32>
    %351 = vector.broadcast %343 : vector<1x1xf32> to vector<1x32xf32>
    %352 = arith.subf %339, %351 : vector<1x32xf32>
    %cst_171 = arith.constant 9.99999974E-6 : f32
    %353 = vector.broadcast %cst_171 : f32 to vector<1x1xf32>
    %354 = arith.addf %350, %353 : vector<1x1xf32>
    %355 = math.rsqrt %354 : vector<1x1xf32>
    %356 = vector.broadcast %355 : vector<1x1xf32> to vector<1x32xf32>
    %357 = arith.mulf %352, %356 : vector<1x32xf32>
    %358 = arith.mulf %357, %282 : vector<1x32xf32>
    %359 = arith.addf %358, %284 : vector<1x32xf32>
    %360 = math.tanh %359 : vector<1x32xf32>
    %361 = arith.mulf %334, %360 : vector<1x32xf32>
    %c2 = arith.constant 2 : index
    %c0_172 = arith.constant 0 : index
    %362 = vector.load %arg27[%c2, %c0_172] : memref<8x32xf32, #tpu.memory_space<vmem>>, vector<1x32xf32>
    tpu.vector_store %arg27[%c2, %c0_172], %361 {strides = array<i32>} : memref<8x32xf32, #tpu.memory_space<vmem>>, vector<1x32xf32>,
    %363 = vector.extract_strided_slice %81 {offsets = [3, 0], sizes = [1, 128], strides = [1, 1]} : vector<8x128xf32> to vector<1x128xf32>
    %c0_173 = arith.constant 0 : index
    %c0_174 = arith.constant 0 : index
    %c0_175 = arith.constant 0 : index
    %364 = vector.load %arg17[%c0_173, %c0_174, %c0_175] : memref<1x32x128xf32, #tpu.memory_space<vmem>>, vector<1x32x128xf32>
    %365 = vector.shape_cast %364 : vector<1x32x128xf32> to vector<32x128xf32>
    %c0_176 = arith.constant 0 : index
    %c0_177 = arith.constant 0 : index
    %c0_178 = arith.constant 0 : index
    %366 = vector.load %arg18[%c0_176, %c0_177, %c0_178] : memref<1x1x128xf32, #tpu.memory_space<vmem>>, vector<1x1x128xf32>
    %367 = vector.shape_cast %366 : vector<1x1x128xf32> to vector<1x128xf32>
    %c0_179 = arith.constant 0 : index
    %c0_180 = arith.constant 0 : index
    %c0_181 = arith.constant 0 : index
    %368 = vector.load %arg19[%c0_179, %c0_180, %c0_181] : memref<1x1x128xf32, #tpu.memory_space<vmem>>, vector<1x1x128xf32>
    %369 = vector.shape_cast %368 : vector<1x1x128xf32> to vector<1x128xf32>
    %c0_182 = arith.constant 0 : index
    %c0_183 = arith.constant 0 : index
    %c0_184 = arith.constant 0 : index
    %370 = vector.load %arg20[%c0_182, %c0_183, %c0_184] : memref<1x1x128xf32, #tpu.memory_space<vmem>>, vector<1x1x128xf32>
    %371 = vector.shape_cast %370 : vector<1x1x128xf32> to vector<1x128xf32>
    %c0_185 = arith.constant 0 : index
    %c0_186 = arith.constant 0 : index
    %c0_187 = arith.constant 0 : index
    %372 = vector.load %arg21[%c0_185, %c0_186, %c0_187] : memref<1x1x128xf32, #tpu.memory_space<vmem>>, vector<1x1x128xf32>
    %373 = vector.shape_cast %372 : vector<1x1x128xf32> to vector<1x128xf32>
    %c0_188 = arith.constant 0 : index
    %c0_189 = arith.constant 0 : index
    %c0_190 = arith.constant 0 : index
    %374 = vector.load %arg22[%c0_188, %c0_189, %c0_190] : memref<1x1x32xf32, #tpu.memory_space<vmem>>, vector<1x1x32xf32>
    %375 = vector.shape_cast %374 : vector<1x1x32xf32> to vector<1x32xf32>
    %c0_191 = arith.constant 0 : index
    %c0_192 = arith.constant 0 : index
    %c0_193 = arith.constant 0 : index
    %376 = vector.load %arg23[%c0_191, %c0_192, %c0_193] : memref<1x1x32xf32, #tpu.memory_space<vmem>>, vector<1x1x32xf32>
    %377 = vector.shape_cast %376 : vector<1x1x32xf32> to vector<1x32xf32>
    %cst_194 = arith.constant dense<0.000000e+00> : vector<1xf32>
    %378 = vector.multi_reduction <add>, %363, %cst_194 [1] : vector<1x128xf32> to vector<1xf32>
    %379 = vector.shape_cast %378 : vector<1xf32> to vector<1x1xf32>
    %cst_195 = arith.constant 1.280000e+02 : f32
    %380 = vector.broadcast %cst_195 : f32 to vector<1x1xf32>
    %381 = arith.divf %379, %380 : vector<1x1xf32>
    %382 = vector.broadcast %381 : vector<1x1xf32> to vector<1x128xf32>
    %383 = arith.subf %363, %382 : vector<1x128xf32>
    %384 = arith.mulf %383, %383 : vector<1x128xf32>
    %cst_196 = arith.constant dense<0.000000e+00> : vector<1xf32>
    %385 = vector.multi_reduction <add>, %384, %cst_196 [1] : vector<1x128xf32> to vector<1xf32>
    %386 = vector.shape_cast %385 : vector<1xf32> to vector<1x1xf32>
    %cst_197 = arith.constant 1.280000e+02 : f32
    %387 = vector.broadcast %cst_197 : f32 to vector<1x1xf32>
    %388 = arith.divf %386, %387 : vector<1x1xf32>
    %389 = vector.broadcast %381 : vector<1x1xf32> to vector<1x128xf32>
    %390 = arith.subf %363, %389 : vector<1x128xf32>
    %cst_198 = arith.constant 9.99999974E-6 : f32
    %391 = vector.broadcast %cst_198 : f32 to vector<1x1xf32>
    %392 = arith.addf %388, %391 : vector<1x1xf32>
    %393 = math.rsqrt %392 : vector<1x1xf32>
    %394 = vector.broadcast %393 : vector<1x1xf32> to vector<1x128xf32>
    %395 = arith.mulf %390, %394 : vector<1x128xf32>
    %396 = arith.mulf %395, %367 : vector<1x128xf32>
    %397 = arith.addf %396, %369 : vector<1x128xf32>
    %cst_199 = arith.constant dense<0.000000e+00> : vector<1x128xf32>
    %398 = tpu.matmul %361, %365, %cst_199 {dimension_numbers = #tpu.dot_dimension_numbers<[1], [0], [0], [1], [0, 0, 1, 1], [], []>} : vector<1x32xf32>, vector<32x128xf32>, vector<1x128xf32> -> vector<1x128xf32>
    %cst_200 = arith.constant dense<0.000000e+00> : vector<1xf32>
    %399 = vector.multi_reduction <add>, %398, %cst_200 [1] : vector<1x128xf32> to vector<1xf32>
    %400 = vector.shape_cast %399 : vector<1xf32> to vector<1x1xf32>
    %cst_201 = arith.constant 1.280000e+02 : f32
    %401 = vector.broadcast %cst_201 : f32 to vector<1x1xf32>
    %402 = arith.divf %400, %401 : vector<1x1xf32>
    %403 = vector.broadcast %402 : vector<1x1xf32> to vector<1x128xf32>
    %404 = arith.subf %398, %403 : vector<1x128xf32>
    %405 = arith.mulf %404, %404 : vector<1x128xf32>
    %cst_202 = arith.constant dense<0.000000e+00> : vector<1xf32>
    %406 = vector.multi_reduction <add>, %405, %cst_202 [1] : vector<1x128xf32> to vector<1xf32>
    %407 = vector.shape_cast %406 : vector<1xf32> to vector<1x1xf32>
    %cst_203 = arith.constant 1.280000e+02 : f32
    %408 = vector.broadcast %cst_203 : f32 to vector<1x1xf32>
    %409 = arith.divf %407, %408 : vector<1x1xf32>
    %410 = vector.broadcast %402 : vector<1x1xf32> to vector<1x128xf32>
    %411 = arith.subf %398, %410 : vector<1x128xf32>
    %cst_204 = arith.constant 9.99999974E-6 : f32
    %412 = vector.broadcast %cst_204 : f32 to vector<1x1xf32>
    %413 = arith.addf %409, %412 : vector<1x1xf32>
    %414 = math.rsqrt %413 : vector<1x1xf32>
    %415 = vector.broadcast %414 : vector<1x1xf32> to vector<1x128xf32>
    %416 = arith.mulf %411, %415 : vector<1x128xf32>
    %417 = arith.mulf %416, %371 : vector<1x128xf32>
    %418 = arith.addf %417, %373 : vector<1x128xf32>
    %419 = arith.addf %397, %418 : vector<1x128xf32>
    %420 = arith.negf %419 : vector<1x128xf32>
    %421 = math.exp %420 : vector<1x128xf32>
    %cst_205 = arith.constant 1.000000e+00 : f32
    %422 = vector.broadcast %cst_205 : f32 to vector<1x128xf32>
    %423 = arith.addf %422, %421 : vector<1x128xf32>
    %424 = arith.divf %422, %423 : vector<1x128xf32>
    %425 = vector.extract_strided_slice %424 {offsets = [0, 0], sizes = [1, 32], strides = [1, 1]} : vector<1x128xf32> to vector<1x32xf32>
    %426 = vector.extract_strided_slice %424 {offsets = [0, 32], sizes = [1, 32], strides = [1, 1]} : vector<1x128xf32> to vector<1x32xf32>
    %427 = vector.extract_strided_slice %424 {offsets = [0, 96], sizes = [1, 32], strides = [1, 1]} : vector<1x128xf32> to vector<1x32xf32>
    %428 = vector.extract_strided_slice %419 {offsets = [0, 64], sizes = [1, 32], strides = [1, 1]} : vector<1x128xf32> to vector<1x32xf32>
    %429 = math.tanh %428 : vector<1x32xf32>
    %430 = arith.mulf %426, %359 : vector<1x32xf32>
    %431 = arith.mulf %425, %429 : vector<1x32xf32>
    %432 = arith.addf %430, %431 : vector<1x32xf32>
    %cst_206 = arith.constant dense<0.000000e+00> : vector<1xf32>
    %433 = vector.multi_reduction <add>, %432, %cst_206 [1] : vector<1x32xf32> to vector<1xf32>
    %434 = vector.shape_cast %433 : vector<1xf32> to vector<1x1xf32>
    %cst_207 = arith.constant 3.200000e+01 : f32
    %435 = vector.broadcast %cst_207 : f32 to vector<1x1xf32>
    %436 = arith.divf %434, %435 : vector<1x1xf32>
    %437 = vector.broadcast %436 : vector<1x1xf32> to vector<1x32xf32>
    %438 = arith.subf %432, %437 : vector<1x32xf32>
    %439 = arith.mulf %438, %438 : vector<1x32xf32>
    %cst_208 = arith.constant dense<0.000000e+00> : vector<1xf32>
    %440 = vector.multi_reduction <add>, %439, %cst_208 [1] : vector<1x32xf32> to vector<1xf32>
    %441 = vector.shape_cast %440 : vector<1xf32> to vector<1x1xf32>
    %cst_209 = arith.constant 3.200000e+01 : f32
    %442 = vector.broadcast %cst_209 : f32 to vector<1x1xf32>
    %443 = arith.divf %441, %442 : vector<1x1xf32>
    %444 = vector.broadcast %436 : vector<1x1xf32> to vector<1x32xf32>
    %445 = arith.subf %432, %444 : vector<1x32xf32>
    %cst_210 = arith.constant 9.99999974E-6 : f32
    %446 = vector.broadcast %cst_210 : f32 to vector<1x1xf32>
    %447 = arith.addf %443, %446 : vector<1x1xf32>
    %448 = math.rsqrt %447 : vector<1x1xf32>
    %449 = vector.broadcast %448 : vector<1x1xf32> to vector<1x32xf32>
    %450 = arith.mulf %445, %449 : vector<1x32xf32>
    %451 = arith.mulf %450, %375 : vector<1x32xf32>
    %452 = arith.addf %451, %377 : vector<1x32xf32>
    %453 = math.tanh %452 : vector<1x32xf32>
    %454 = arith.mulf %427, %453 : vector<1x32xf32>
    %c3 = arith.constant 3 : index
    %c0_211 = arith.constant 0 : index
    %455 = vector.load %arg27[%c3, %c0_211] : memref<8x32xf32, #tpu.memory_space<vmem>>, vector<1x32xf32>
    tpu.vector_store %arg27[%c3, %c0_211], %454 {strides = array<i32>} : memref<8x32xf32, #tpu.memory_space<vmem>>, vector<1x32xf32>,
    %456 = vector.extract_strided_slice %81 {offsets = [4, 0], sizes = [1, 128], strides = [1, 1]} : vector<8x128xf32> to vector<1x128xf32>
    %c0_212 = arith.constant 0 : index
    %c0_213 = arith.constant 0 : index
    %c0_214 = arith.constant 0 : index
    %457 = vector.load %arg17[%c0_212, %c0_213, %c0_214] : memref<1x32x128xf32, #tpu.memory_space<vmem>>, vector<1x32x128xf32>
    %458 = vector.shape_cast %457 : vector<1x32x128xf32> to vector<32x128xf32>
    %c0_215 = arith.constant 0 : index
    %c0_216 = arith.constant 0 : index
    %c0_217 = arith.constant 0 : index
    %459 = vector.load %arg18[%c0_215, %c0_216, %c0_217] : memref<1x1x128xf32, #tpu.memory_space<vmem>>, vector<1x1x128xf32>
    %460 = vector.shape_cast %459 : vector<1x1x128xf32> to vector<1x128xf32>
    %c0_218 = arith.constant 0 : index
    %c0_219 = arith.constant 0 : index
    %c0_220 = arith.constant 0 : index
    %461 = vector.load %arg19[%c0_218, %c0_219, %c0_220] : memref<1x1x128xf32, #tpu.memory_space<vmem>>, vector<1x1x128xf32>
    %462 = vector.shape_cast %461 : vector<1x1x128xf32> to vector<1x128xf32>
    %c0_221 = arith.constant 0 : index
    %c0_222 = arith.constant 0 : index
    %c0_223 = arith.constant 0 : index
    %463 = vector.load %arg20[%c0_221, %c0_222, %c0_223] : memref<1x1x128xf32, #tpu.memory_space<vmem>>, vector<1x1x128xf32>
    %464 = vector.shape_cast %463 : vector<1x1x128xf32> to vector<1x128xf32>
    %c0_224 = arith.constant 0 : index
    %c0_225 = arith.constant 0 : index
    %c0_226 = arith.constant 0 : index
    %465 = vector.load %arg21[%c0_224, %c0_225, %c0_226] : memref<1x1x128xf32, #tpu.memory_space<vmem>>, vector<1x1x128xf32>
    %466 = vector.shape_cast %465 : vector<1x1x128xf32> to vector<1x128xf32>
    %c0_227 = arith.constant 0 : index
    %c0_228 = arith.constant 0 : index
    %c0_229 = arith.constant 0 : index
    %467 = vector.load %arg22[%c0_227, %c0_228, %c0_229] : memref<1x1x32xf32, #tpu.memory_space<vmem>>, vector<1x1x32xf32>
    %468 = vector.shape_cast %467 : vector<1x1x32xf32> to vector<1x32xf32>
    %c0_230 = arith.constant 0 : index
    %c0_231 = arith.constant 0 : index
    %c0_232 = arith.constant 0 : index
    %469 = vector.load %arg23[%c0_230, %c0_231, %c0_232] : memref<1x1x32xf32, #tpu.memory_space<vmem>>, vector<1x1x32xf32>
    %470 = vector.shape_cast %469 : vector<1x1x32xf32> to vector<1x32xf32>
    %cst_233 = arith.constant dense<0.000000e+00> : vector<1xf32>
    %471 = vector.multi_reduction <add>, %456, %cst_233 [1] : vector<1x128xf32> to vector<1xf32>
    %472 = vector.shape_cast %471 : vector<1xf32> to vector<1x1xf32>
    %cst_234 = arith.constant 1.280000e+02 : f32
    %473 = vector.broadcast %cst_234 : f32 to vector<1x1xf32>
    %474 = arith.divf %472, %473 : vector<1x1xf32>
    %475 = vector.broadcast %474 : vector<1x1xf32> to vector<1x128xf32>
    %476 = arith.subf %456, %475 : vector<1x128xf32>
    %477 = arith.mulf %476, %476 : vector<1x128xf32>
    %cst_235 = arith.constant dense<0.000000e+00> : vector<1xf32>
    %478 = vector.multi_reduction <add>, %477, %cst_235 [1] : vector<1x128xf32> to vector<1xf32>
    %479 = vector.shape_cast %478 : vector<1xf32> to vector<1x1xf32>
    %cst_236 = arith.constant 1.280000e+02 : f32
    %480 = vector.broadcast %cst_236 : f32 to vector<1x1xf32>
    %481 = arith.divf %479, %480 : vector<1x1xf32>
    %482 = vector.broadcast %474 : vector<1x1xf32> to vector<1x128xf32>
    %483 = arith.subf %456, %482 : vector<1x128xf32>
    %cst_237 = arith.constant 9.99999974E-6 : f32
    %484 = vector.broadcast %cst_237 : f32 to vector<1x1xf32>
    %485 = arith.addf %481, %484 : vector<1x1xf32>
    %486 = math.rsqrt %485 : vector<1x1xf32>
    %487 = vector.broadcast %486 : vector<1x1xf32> to vector<1x128xf32>
    %488 = arith.mulf %483, %487 : vector<1x128xf32>
    %489 = arith.mulf %488, %460 : vector<1x128xf32>
    %490 = arith.addf %489, %462 : vector<1x128xf32>
    %cst_238 = arith.constant dense<0.000000e+00> : vector<1x128xf32>
    %491 = tpu.matmul %454, %458, %cst_238 {dimension_numbers = #tpu.dot_dimension_numbers<[1], [0], [0], [1], [0, 0, 1, 1], [], []>} : vector<1x32xf32>, vector<32x128xf32>, vector<1x128xf32> -> vector<1x128xf32>
    %cst_239 = arith.constant dense<0.000000e+00> : vector<1xf32>
    %492 = vector.multi_reduction <add>, %491, %cst_239 [1] : vector<1x128xf32> to vector<1xf32>
    %493 = vector.shape_cast %492 : vector<1xf32> to vector<1x1xf32>
    %cst_240 = arith.constant 1.280000e+02 : f32
    %494 = vector.broadcast %cst_240 : f32 to vector<1x1xf32>
    %495 = arith.divf %493, %494 : vector<1x1xf32>
    %496 = vector.broadcast %495 : vector<1x1xf32> to vector<1x128xf32>
    %497 = arith.subf %491, %496 : vector<1x128xf32>
    %498 = arith.mulf %497, %497 : vector<1x128xf32>
    %cst_241 = arith.constant dense<0.000000e+00> : vector<1xf32>
    %499 = vector.multi_reduction <add>, %498, %cst_241 [1] : vector<1x128xf32> to vector<1xf32>
    %500 = vector.shape_cast %499 : vector<1xf32> to vector<1x1xf32>
    %cst_242 = arith.constant 1.280000e+02 : f32
    %501 = vector.broadcast %cst_242 : f32 to vector<1x1xf32>
    %502 = arith.divf %500, %501 : vector<1x1xf32>
    %503 = vector.broadcast %495 : vector<1x1xf32> to vector<1x128xf32>
    %504 = arith.subf %491, %503 : vector<1x128xf32>
    %cst_243 = arith.constant 9.99999974E-6 : f32
    %505 = vector.broadcast %cst_243 : f32 to vector<1x1xf32>
    %506 = arith.addf %502, %505 : vector<1x1xf32>
    %507 = math.rsqrt %506 : vector<1x1xf32>
    %508 = vector.broadcast %507 : vector<1x1xf32> to vector<1x128xf32>
    %509 = arith.mulf %504, %508 : vector<1x128xf32>
    %510 = arith.mulf %509, %464 : vector<1x128xf32>
    %511 = arith.addf %510, %466 : vector<1x128xf32>
    %512 = arith.addf %490, %511 : vector<1x128xf32>
    %513 = arith.negf %512 : vector<1x128xf32>
    %514 = math.exp %513 : vector<1x128xf32>
    %cst_244 = arith.constant 1.000000e+00 : f32
    %515 = vector.broadcast %cst_244 : f32 to vector<1x128xf32>
    %516 = arith.addf %515, %514 : vector<1x128xf32>
    %517 = arith.divf %515, %516 : vector<1x128xf32>
    %518 = vector.extract_strided_slice %517 {offsets = [0, 0], sizes = [1, 32], strides = [1, 1]} : vector<1x128xf32> to vector<1x32xf32>
    %519 = vector.extract_strided_slice %517 {offsets = [0, 32], sizes = [1, 32], strides = [1, 1]} : vector<1x128xf32> to vector<1x32xf32>
    %520 = vector.extract_strided_slice %517 {offsets = [0, 96], sizes = [1, 32], strides = [1, 1]} : vector<1x128xf32> to vector<1x32xf32>
    %521 = vector.extract_strided_slice %512 {offsets = [0, 64], sizes = [1, 32], strides = [1, 1]} : vector<1x128xf32> to vector<1x32xf32>
    %522 = math.tanh %521 : vector<1x32xf32>
    %523 = arith.mulf %519, %452 : vector<1x32xf32>
    %524 = arith.mulf %518, %522 : vector<1x32xf32>
    %525 = arith.addf %523, %524 : vector<1x32xf32>
    %cst_245 = arith.constant dense<0.000000e+00> : vector<1xf32>
    %526 = vector.multi_reduction <add>, %525, %cst_245 [1] : vector<1x32xf32> to vector<1xf32>
    %527 = vector.shape_cast %526 : vector<1xf32> to vector<1x1xf32>
    %cst_246 = arith.constant 3.200000e+01 : f32
    %528 = vector.broadcast %cst_246 : f32 to vector<1x1xf32>
    %529 = arith.divf %527, %528 : vector<1x1xf32>
    %530 = vector.broadcast %529 : vector<1x1xf32> to vector<1x32xf32>
    %531 = arith.subf %525, %530 : vector<1x32xf32>
    %532 = arith.mulf %531, %531 : vector<1x32xf32>
    %cst_247 = arith.constant dense<0.000000e+00> : vector<1xf32>
    %533 = vector.multi_reduction <add>, %532, %cst_247 [1] : vector<1x32xf32> to vector<1xf32>
    %534 = vector.shape_cast %533 : vector<1xf32> to vector<1x1xf32>
    %cst_248 = arith.constant 3.200000e+01 : f32
    %535 = vector.broadcast %cst_248 : f32 to vector<1x1xf32>
    %536 = arith.divf %534, %535 : vector<1x1xf32>
    %537 = vector.broadcast %529 : vector<1x1xf32> to vector<1x32xf32>
    %538 = arith.subf %525, %537 : vector<1x32xf32>
    %cst_249 = arith.constant 9.99999974E-6 : f32
    %539 = vector.broadcast %cst_249 : f32 to vector<1x1xf32>
    %540 = arith.addf %536, %539 : vector<1x1xf32>
    %541 = math.rsqrt %540 : vector<1x1xf32>
    %542 = vector.broadcast %541 : vector<1x1xf32> to vector<1x32xf32>
    %543 = arith.mulf %538, %542 : vector<1x32xf32>
    %544 = arith.mulf %543, %468 : vector<1x32xf32>
    %545 = arith.addf %544, %470 : vector<1x32xf32>
    %546 = math.tanh %545 : vector<1x32xf32>
    %547 = arith.mulf %520, %546 : vector<1x32xf32>
    %c4 = arith.constant 4 : index
    %c0_250 = arith.constant 0 : index
    %548 = vector.load %arg27[%c4, %c0_250] : memref<8x32xf32, #tpu.memory_space<vmem>>, vector<1x32xf32>
    tpu.vector_store %arg27[%c4, %c0_250], %547 {strides = array<i32>} : memref<8x32xf32, #tpu.memory_space<vmem>>, vector<1x32xf32>,
    %549 = vector.extract_strided_slice %81 {offsets = [5, 0], sizes = [1, 128], strides = [1, 1]} : vector<8x128xf32> to vector<1x128xf32>
    %c0_251 = arith.constant 0 : index
    %c0_252 = arith.constant 0 : index
    %c0_253 = arith.constant 0 : index
    %550 = vector.load %arg17[%c0_251, %c0_252, %c0_253] : memref<1x32x128xf32, #tpu.memory_space<vmem>>, vector<1x32x128xf32>
    %551 = vector.shape_cast %550 : vector<1x32x128xf32> to vector<32x128xf32>
    %c0_254 = arith.constant 0 : index
    %c0_255 = arith.constant 0 : index
    %c0_256 = arith.constant 0 : index
    %552 = vector.load %arg18[%c0_254, %c0_255, %c0_256] : memref<1x1x128xf32, #tpu.memory_space<vmem>>, vector<1x1x128xf32>
    %553 = vector.shape_cast %552 : vector<1x1x128xf32> to vector<1x128xf32>
    %c0_257 = arith.constant 0 : index
    %c0_258 = arith.constant 0 : index
    %c0_259 = arith.constant 0 : index
    %554 = vector.load %arg19[%c0_257, %c0_258, %c0_259] : memref<1x1x128xf32, #tpu.memory_space<vmem>>, vector<1x1x128xf32>
    %555 = vector.shape_cast %554 : vector<1x1x128xf32> to vector<1x128xf32>
    %c0_260 = arith.constant 0 : index
    %c0_261 = arith.constant 0 : index
    %c0_262 = arith.constant 0 : index
    %556 = vector.load %arg20[%c0_260, %c0_261, %c0_262] : memref<1x1x128xf32, #tpu.memory_space<vmem>>, vector<1x1x128xf32>
    %557 = vector.shape_cast %556 : vector<1x1x128xf32> to vector<1x128xf32>
    %c0_263 = arith.constant 0 : index
    %c0_264 = arith.constant 0 : index
    %c0_265 = arith.constant 0 : index
    %558 = vector.load %arg21[%c0_263, %c0_264, %c0_265] : memref<1x1x128xf32, #tpu.memory_space<vmem>>, vector<1x1x128xf32>
    %559 = vector.shape_cast %558 : vector<1x1x128xf32> to vector<1x128xf32>
    %c0_266 = arith.constant 0 : index
    %c0_267 = arith.constant 0 : index
    %c0_268 = arith.constant 0 : index
    %560 = vector.load %arg22[%c0_266, %c0_267, %c0_268] : memref<1x1x32xf32, #tpu.memory_space<vmem>>, vector<1x1x32xf32>
    %561 = vector.shape_cast %560 : vector<1x1x32xf32> to vector<1x32xf32>
    %c0_269 = arith.constant 0 : index
    %c0_270 = arith.constant 0 : index
    %c0_271 = arith.constant 0 : index
    %562 = vector.load %arg23[%c0_269, %c0_270, %c0_271] : memref<1x1x32xf32, #tpu.memory_space<vmem>>, vector<1x1x32xf32>
    %563 = vector.shape_cast %562 : vector<1x1x32xf32> to vector<1x32xf32>
    %cst_272 = arith.constant dense<0.000000e+00> : vector<1xf32>
    %564 = vector.multi_reduction <add>, %549, %cst_272 [1] : vector<1x128xf32> to vector<1xf32>
    %565 = vector.shape_cast %564 : vector<1xf32> to vector<1x1xf32>
    %cst_273 = arith.constant 1.280000e+02 : f32
    %566 = vector.broadcast %cst_273 : f32 to vector<1x1xf32>
    %567 = arith.divf %565, %566 : vector<1x1xf32>
    %568 = vector.broadcast %567 : vector<1x1xf32> to vector<1x128xf32>
    %569 = arith.subf %549, %568 : vector<1x128xf32>
    %570 = arith.mulf %569, %569 : vector<1x128xf32>
    %cst_274 = arith.constant dense<0.000000e+00> : vector<1xf32>
    %571 = vector.multi_reduction <add>, %570, %cst_274 [1] : vector<1x128xf32> to vector<1xf32>
    %572 = vector.shape_cast %571 : vector<1xf32> to vector<1x1xf32>
    %cst_275 = arith.constant 1.280000e+02 : f32
    %573 = vector.broadcast %cst_275 : f32 to vector<1x1xf32>
    %574 = arith.divf %572, %573 : vector<1x1xf32>
    %575 = vector.broadcast %567 : vector<1x1xf32> to vector<1x128xf32>
    %576 = arith.subf %549, %575 : vector<1x128xf32>
    %cst_276 = arith.constant 9.99999974E-6 : f32
    %577 = vector.broadcast %cst_276 : f32 to vector<1x1xf32>
    %578 = arith.addf %574, %577 : vector<1x1xf32>
    %579 = math.rsqrt %578 : vector<1x1xf32>
    %580 = vector.broadcast %579 : vector<1x1xf32> to vector<1x128xf32>
    %581 = arith.mulf %576, %580 : vector<1x128xf32>
    %582 = arith.mulf %581, %553 : vector<1x128xf32>
    %583 = arith.addf %582, %555 : vector<1x128xf32>
    %cst_277 = arith.constant dense<0.000000e+00> : vector<1x128xf32>
    %584 = tpu.matmul %547, %551, %cst_277 {dimension_numbers = #tpu.dot_dimension_numbers<[1], [0], [0], [1], [0, 0, 1, 1], [], []>} : vector<1x32xf32>, vector<32x128xf32>, vector<1x128xf32> -> vector<1x128xf32>
    %cst_278 = arith.constant dense<0.000000e+00> : vector<1xf32>
    %585 = vector.multi_reduction <add>, %584, %cst_278 [1] : vector<1x128xf32> to vector<1xf32>
    %586 = vector.shape_cast %585 : vector<1xf32> to vector<1x1xf32>
    %cst_279 = arith.constant 1.280000e+02 : f32
    %587 = vector.broadcast %cst_279 : f32 to vector<1x1xf32>
    %588 = arith.divf %586, %587 : vector<1x1xf32>
    %589 = vector.broadcast %588 : vector<1x1xf32> to vector<1x128xf32>
    %590 = arith.subf %584, %589 : vector<1x128xf32>
    %591 = arith.mulf %590, %590 : vector<1x128xf32>
    %cst_280 = arith.constant dense<0.000000e+00> : vector<1xf32>
    %592 = vector.multi_reduction <add>, %591, %cst_280 [1] : vector<1x128xf32> to vector<1xf32>
    %593 = vector.shape_cast %592 : vector<1xf32> to vector<1x1xf32>
    %cst_281 = arith.constant 1.280000e+02 : f32
    %594 = vector.broadcast %cst_281 : f32 to vector<1x1xf32>
    %595 = arith.divf %593, %594 : vector<1x1xf32>
    %596 = vector.broadcast %588 : vector<1x1xf32> to vector<1x128xf32>
    %597 = arith.subf %584, %596 : vector<1x128xf32>
    %cst_282 = arith.constant 9.99999974E-6 : f32
    %598 = vector.broadcast %cst_282 : f32 to vector<1x1xf32>
    %599 = arith.addf %595, %598 : vector<1x1xf32>
    %600 = math.rsqrt %599 : vector<1x1xf32>
    %601 = vector.broadcast %600 : vector<1x1xf32> to vector<1x128xf32>
    %602 = arith.mulf %597, %601 : vector<1x128xf32>
    %603 = arith.mulf %602, %557 : vector<1x128xf32>
    %604 = arith.addf %603, %559 : vector<1x128xf32>
    %605 = arith.addf %583, %604 : vector<1x128xf32>
    %606 = arith.negf %605 : vector<1x128xf32>
    %607 = math.exp %606 : vector<1x128xf32>
    %cst_283 = arith.constant 1.000000e+00 : f32
    %608 = vector.broadcast %cst_283 : f32 to vector<1x128xf32>
    %609 = arith.addf %608, %607 : vector<1x128xf32>
    %610 = arith.divf %608, %609 : vector<1x128xf32>
    %611 = vector.extract_strided_slice %610 {offsets = [0, 0], sizes = [1, 32], strides = [1, 1]} : vector<1x128xf32> to vector<1x32xf32>
    %612 = vector.extract_strided_slice %610 {offsets = [0, 32], sizes = [1, 32], strides = [1, 1]} : vector<1x128xf32> to vector<1x32xf32>
    %613 = vector.extract_strided_slice %610 {offsets = [0, 96], sizes = [1, 32], strides = [1, 1]} : vector<1x128xf32> to vector<1x32xf32>
    %614 = vector.extract_strided_slice %605 {offsets = [0, 64], sizes = [1, 32], strides = [1, 1]} : vector<1x128xf32> to vector<1x32xf32>
    %615 = math.tanh %614 : vector<1x32xf32>
    %616 = arith.mulf %612, %545 : vector<1x32xf32>
    %617 = arith.mulf %611, %615 : vector<1x32xf32>
    %618 = arith.addf %616, %617 : vector<1x32xf32>
    %cst_284 = arith.constant dense<0.000000e+00> : vector<1xf32>
    %619 = vector.multi_reduction <add>, %618, %cst_284 [1] : vector<1x32xf32> to vector<1xf32>
    %620 = vector.shape_cast %619 : vector<1xf32> to vector<1x1xf32>
    %cst_285 = arith.constant 3.200000e+01 : f32
    %621 = vector.broadcast %cst_285 : f32 to vector<1x1xf32>
    %622 = arith.divf %620, %621 : vector<1x1xf32>
    %623 = vector.broadcast %622 : vector<1x1xf32> to vector<1x32xf32>
    %624 = arith.subf %618, %623 : vector<1x32xf32>
    %625 = arith.mulf %624, %624 : vector<1x32xf32>
    %cst_286 = arith.constant dense<0.000000e+00> : vector<1xf32>
    %626 = vector.multi_reduction <add>, %625, %cst_286 [1] : vector<1x32xf32> to vector<1xf32>
    %627 = vector.shape_cast %626 : vector<1xf32> to vector<1x1xf32>
    %cst_287 = arith.constant 3.200000e+01 : f32
    %628 = vector.broadcast %cst_287 : f32 to vector<1x1xf32>
    %629 = arith.divf %627, %628 : vector<1x1xf32>
    %630 = vector.broadcast %622 : vector<1x1xf32> to vector<1x32xf32>
    %631 = arith.subf %618, %630 : vector<1x32xf32>
    %cst_288 = arith.constant 9.99999974E-6 : f32
    %632 = vector.broadcast %cst_288 : f32 to vector<1x1xf32>
    %633 = arith.addf %629, %632 : vector<1x1xf32>
    %634 = math.rsqrt %633 : vector<1x1xf32>
    %635 = vector.broadcast %634 : vector<1x1xf32> to vector<1x32xf32>
    %636 = arith.mulf %631, %635 : vector<1x32xf32>
    %637 = arith.mulf %636, %561 : vector<1x32xf32>
    %638 = arith.addf %637, %563 : vector<1x32xf32>
    %639 = math.tanh %638 : vector<1x32xf32>
    %640 = arith.mulf %613, %639 : vector<1x32xf32>
    %c5 = arith.constant 5 : index
    %c0_289 = arith.constant 0 : index
    %641 = vector.load %arg27[%c5, %c0_289] : memref<8x32xf32, #tpu.memory_space<vmem>>, vector<1x32xf32>
    tpu.vector_store %arg27[%c5, %c0_289], %640 {strides = array<i32>} : memref<8x32xf32, #tpu.memory_space<vmem>>, vector<1x32xf32>,
    %642 = vector.extract_strided_slice %81 {offsets = [6, 0], sizes = [1, 128], strides = [1, 1]} : vector<8x128xf32> to vector<1x128xf32>
    %c0_290 = arith.constant 0 : index
    %c0_291 = arith.constant 0 : index
    %c0_292 = arith.constant 0 : index
    %643 = vector.load %arg17[%c0_290, %c0_291, %c0_292] : memref<1x32x128xf32, #tpu.memory_space<vmem>>, vector<1x32x128xf32>
    %644 = vector.shape_cast %643 : vector<1x32x128xf32> to vector<32x128xf32>
    %c0_293 = arith.constant 0 : index
    %c0_294 = arith.constant 0 : index
    %c0_295 = arith.constant 0 : index
    %645 = vector.load %arg18[%c0_293, %c0_294, %c0_295] : memref<1x1x128xf32, #tpu.memory_space<vmem>>, vector<1x1x128xf32>
    %646 = vector.shape_cast %645 : vector<1x1x128xf32> to vector<1x128xf32>
    %c0_296 = arith.constant 0 : index
    %c0_297 = arith.constant 0 : index
    %c0_298 = arith.constant 0 : index
    %647 = vector.load %arg19[%c0_296, %c0_297, %c0_298] : memref<1x1x128xf32, #tpu.memory_space<vmem>>, vector<1x1x128xf32>
    %648 = vector.shape_cast %647 : vector<1x1x128xf32> to vector<1x128xf32>
    %c0_299 = arith.constant 0 : index
    %c0_300 = arith.constant 0 : index
    %c0_301 = arith.constant 0 : index
    %649 = vector.load %arg20[%c0_299, %c0_300, %c0_301] : memref<1x1x128xf32, #tpu.memory_space<vmem>>, vector<1x1x128xf32>
    %650 = vector.shape_cast %649 : vector<1x1x128xf32> to vector<1x128xf32>
    %c0_302 = arith.constant 0 : index
    %c0_303 = arith.constant 0 : index
    %c0_304 = arith.constant 0 : index
    %651 = vector.load %arg21[%c0_302, %c0_303, %c0_304] : memref<1x1x128xf32, #tpu.memory_space<vmem>>, vector<1x1x128xf32>
    %652 = vector.shape_cast %651 : vector<1x1x128xf32> to vector<1x128xf32>
    %c0_305 = arith.constant 0 : index
    %c0_306 = arith.constant 0 : index
    %c0_307 = arith.constant 0 : index
    %653 = vector.load %arg22[%c0_305, %c0_306, %c0_307] : memref<1x1x32xf32, #tpu.memory_space<vmem>>, vector<1x1x32xf32>
    %654 = vector.shape_cast %653 : vector<1x1x32xf32> to vector<1x32xf32>
    %c0_308 = arith.constant 0 : index
    %c0_309 = arith.constant 0 : index
    %c0_310 = arith.constant 0 : index
    %655 = vector.load %arg23[%c0_308, %c0_309, %c0_310] : memref<1x1x32xf32, #tpu.memory_space<vmem>>, vector<1x1x32xf32>
    %656 = vector.shape_cast %655 : vector<1x1x32xf32> to vector<1x32xf32>
    %cst_311 = arith.constant dense<0.000000e+00> : vector<1xf32>
    %657 = vector.multi_reduction <add>, %642, %cst_311 [1] : vector<1x128xf32> to vector<1xf32>
    %658 = vector.shape_cast %657 : vector<1xf32> to vector<1x1xf32>
    %cst_312 = arith.constant 1.280000e+02 : f32
    %659 = vector.broadcast %cst_312 : f32 to vector<1x1xf32>
    %660 = arith.divf %658, %659 : vector<1x1xf32>
    %661 = vector.broadcast %660 : vector<1x1xf32> to vector<1x128xf32>
    %662 = arith.subf %642, %661 : vector<1x128xf32>
    %663 = arith.mulf %662, %662 : vector<1x128xf32>
    %cst_313 = arith.constant dense<0.000000e+00> : vector<1xf32>
    %664 = vector.multi_reduction <add>, %663, %cst_313 [1] : vector<1x128xf32> to vector<1xf32>
    %665 = vector.shape_cast %664 : vector<1xf32> to vector<1x1xf32>
    %cst_314 = arith.constant 1.280000e+02 : f32
    %666 = vector.broadcast %cst_314 : f32 to vector<1x1xf32>
    %667 = arith.divf %665, %666 : vector<1x1xf32>
    %668 = vector.broadcast %660 : vector<1x1xf32> to vector<1x128xf32>
    %669 = arith.subf %642, %668 : vector<1x128xf32>
    %cst_315 = arith.constant 9.99999974E-6 : f32
    %670 = vector.broadcast %cst_315 : f32 to vector<1x1xf32>
    %671 = arith.addf %667, %670 : vector<1x1xf32>
    %672 = math.rsqrt %671 : vector<1x1xf32>
    %673 = vector.broadcast %672 : vector<1x1xf32> to vector<1x128xf32>
    %674 = arith.mulf %669, %673 : vector<1x128xf32>
    %675 = arith.mulf %674, %646 : vector<1x128xf32>
    %676 = arith.addf %675, %648 : vector<1x128xf32>
    %cst_316 = arith.constant dense<0.000000e+00> : vector<1x128xf32>
    %677 = tpu.matmul %640, %644, %cst_316 {dimension_numbers = #tpu.dot_dimension_numbers<[1], [0], [0], [1], [0, 0, 1, 1], [], []>} : vector<1x32xf32>, vector<32x128xf32>, vector<1x128xf32> -> vector<1x128xf32>
    %cst_317 = arith.constant dense<0.000000e+00> : vector<1xf32>
    %678 = vector.multi_reduction <add>, %677, %cst_317 [1] : vector<1x128xf32> to vector<1xf32>
    %679 = vector.shape_cast %678 : vector<1xf32> to vector<1x1xf32>
    %cst_318 = arith.constant 1.280000e+02 : f32
    %680 = vector.broadcast %cst_318 : f32 to vector<1x1xf32>
    %681 = arith.divf %679, %680 : vector<1x1xf32>
    %682 = vector.broadcast %681 : vector<1x1xf32> to vector<1x128xf32>
    %683 = arith.subf %677, %682 : vector<1x128xf32>
    %684 = arith.mulf %683, %683 : vector<1x128xf32>
    %cst_319 = arith.constant dense<0.000000e+00> : vector<1xf32>
    %685 = vector.multi_reduction <add>, %684, %cst_319 [1] : vector<1x128xf32> to vector<1xf32>
    %686 = vector.shape_cast %685 : vector<1xf32> to vector<1x1xf32>
    %cst_320 = arith.constant 1.280000e+02 : f32
    %687 = vector.broadcast %cst_320 : f32 to vector<1x1xf32>
    %688 = arith.divf %686, %687 : vector<1x1xf32>
    %689 = vector.broadcast %681 : vector<1x1xf32> to vector<1x128xf32>
    %690 = arith.subf %677, %689 : vector<1x128xf32>
    %cst_321 = arith.constant 9.99999974E-6 : f32
    %691 = vector.broadcast %cst_321 : f32 to vector<1x1xf32>
    %692 = arith.addf %688, %691 : vector<1x1xf32>
    %693 = math.rsqrt %692 : vector<1x1xf32>
    %694 = vector.broadcast %693 : vector<1x1xf32> to vector<1x128xf32>
    %695 = arith.mulf %690, %694 : vector<1x128xf32>
    %696 = arith.mulf %695, %650 : vector<1x128xf32>
    %697 = arith.addf %696, %652 : vector<1x128xf32>
    %698 = arith.addf %676, %697 : vector<1x128xf32>
    %699 = arith.negf %698 : vector<1x128xf32>
    %700 = math.exp %699 : vector<1x128xf32>
    %cst_322 = arith.constant 1.000000e+00 : f32
    %701 = vector.broadcast %cst_322 : f32 to vector<1x128xf32>
    %702 = arith.addf %701, %700 : vector<1x128xf32>
    %703 = arith.divf %701, %702 : vector<1x128xf32>
    %704 = vector.extract_strided_slice %703 {offsets = [0, 0], sizes = [1, 32], strides = [1, 1]} : vector<1x128xf32> to vector<1x32xf32>
    %705 = vector.extract_strided_slice %703 {offsets = [0, 32], sizes = [1, 32], strides = [1, 1]} : vector<1x128xf32> to vector<1x32xf32>
    %706 = vector.extract_strided_slice %703 {offsets = [0, 96], sizes = [1, 32], strides = [1, 1]} : vector<1x128xf32> to vector<1x32xf32>
    %707 = vector.extract_strided_slice %698 {offsets = [0, 64], sizes = [1, 32], strides = [1, 1]} : vector<1x128xf32> to vector<1x32xf32>
    %708 = math.tanh %707 : vector<1x32xf32>
    %709 = arith.mulf %705, %638 : vector<1x32xf32>
    %710 = arith.mulf %704, %708 : vector<1x32xf32>
    %711 = arith.addf %709, %710 : vector<1x32xf32>
    %cst_323 = arith.constant dense<0.000000e+00> : vector<1xf32>
    %712 = vector.multi_reduction <add>, %711, %cst_323 [1] : vector<1x32xf32> to vector<1xf32>
    %713 = vector.shape_cast %712 : vector<1xf32> to vector<1x1xf32>
    %cst_324 = arith.constant 3.200000e+01 : f32
    %714 = vector.broadcast %cst_324 : f32 to vector<1x1xf32>
    %715 = arith.divf %713, %714 : vector<1x1xf32>
    %716 = vector.broadcast %715 : vector<1x1xf32> to vector<1x32xf32>
    %717 = arith.subf %711, %716 : vector<1x32xf32>
    %718 = arith.mulf %717, %717 : vector<1x32xf32>
    %cst_325 = arith.constant dense<0.000000e+00> : vector<1xf32>
    %719 = vector.multi_reduction <add>, %718, %cst_325 [1] : vector<1x32xf32> to vector<1xf32>
    %720 = vector.shape_cast %719 : vector<1xf32> to vector<1x1xf32>
    %cst_326 = arith.constant 3.200000e+01 : f32
    %721 = vector.broadcast %cst_326 : f32 to vector<1x1xf32>
    %722 = arith.divf %720, %721 : vector<1x1xf32>
    %723 = vector.broadcast %715 : vector<1x1xf32> to vector<1x32xf32>
    %724 = arith.subf %711, %723 : vector<1x32xf32>
    %cst_327 = arith.constant 9.99999974E-6 : f32
    %725 = vector.broadcast %cst_327 : f32 to vector<1x1xf32>
    %726 = arith.addf %722, %725 : vector<1x1xf32>
    %727 = math.rsqrt %726 : vector<1x1xf32>
    %728 = vector.broadcast %727 : vector<1x1xf32> to vector<1x32xf32>
    %729 = arith.mulf %724, %728 : vector<1x32xf32>
    %730 = arith.mulf %729, %654 : vector<1x32xf32>
    %731 = arith.addf %730, %656 : vector<1x32xf32>
    %732 = math.tanh %731 : vector<1x32xf32>
    %733 = arith.mulf %706, %732 : vector<1x32xf32>
    %c6 = arith.constant 6 : index
    %c0_328 = arith.constant 0 : index
    %734 = vector.load %arg27[%c6, %c0_328] : memref<8x32xf32, #tpu.memory_space<vmem>>, vector<1x32xf32>
    tpu.vector_store %arg27[%c6, %c0_328], %733 {strides = array<i32>} : memref<8x32xf32, #tpu.memory_space<vmem>>, vector<1x32xf32>,
    %735 = vector.extract_strided_slice %81 {offsets = [7, 0], sizes = [1, 128], strides = [1, 1]} : vector<8x128xf32> to vector<1x128xf32>
    %c0_329 = arith.constant 0 : index
    %c0_330 = arith.constant 0 : index
    %c0_331 = arith.constant 0 : index
    %736 = vector.load %arg17[%c0_329, %c0_330, %c0_331] : memref<1x32x128xf32, #tpu.memory_space<vmem>>, vector<1x32x128xf32>
    %737 = vector.shape_cast %736 : vector<1x32x128xf32> to vector<32x128xf32>
    %c0_332 = arith.constant 0 : index
    %c0_333 = arith.constant 0 : index
    %c0_334 = arith.constant 0 : index
    %738 = vector.load %arg18[%c0_332, %c0_333, %c0_334] : memref<1x1x128xf32, #tpu.memory_space<vmem>>, vector<1x1x128xf32>
    %739 = vector.shape_cast %738 : vector<1x1x128xf32> to vector<1x128xf32>
    %c0_335 = arith.constant 0 : index
    %c0_336 = arith.constant 0 : index
    %c0_337 = arith.constant 0 : index
    %740 = vector.load %arg19[%c0_335, %c0_336, %c0_337] : memref<1x1x128xf32, #tpu.memory_space<vmem>>, vector<1x1x128xf32>
    %741 = vector.shape_cast %740 : vector<1x1x128xf32> to vector<1x128xf32>
    %c0_338 = arith.constant 0 : index
    %c0_339 = arith.constant 0 : index
    %c0_340 = arith.constant 0 : index
    %742 = vector.load %arg20[%c0_338, %c0_339, %c0_340] : memref<1x1x128xf32, #tpu.memory_space<vmem>>, vector<1x1x128xf32>
    %743 = vector.shape_cast %742 : vector<1x1x128xf32> to vector<1x128xf32>
    %c0_341 = arith.constant 0 : index
    %c0_342 = arith.constant 0 : index
    %c0_343 = arith.constant 0 : index
    %744 = vector.load %arg21[%c0_341, %c0_342, %c0_343] : memref<1x1x128xf32, #tpu.memory_space<vmem>>, vector<1x1x128xf32>
    %745 = vector.shape_cast %744 : vector<1x1x128xf32> to vector<1x128xf32>
    %c0_344 = arith.constant 0 : index
    %c0_345 = arith.constant 0 : index
    %c0_346 = arith.constant 0 : index
    %746 = vector.load %arg22[%c0_344, %c0_345, %c0_346] : memref<1x1x32xf32, #tpu.memory_space<vmem>>, vector<1x1x32xf32>
    %747 = vector.shape_cast %746 : vector<1x1x32xf32> to vector<1x32xf32>
    %c0_347 = arith.constant 0 : index
    %c0_348 = arith.constant 0 : index
    %c0_349 = arith.constant 0 : index
    %748 = vector.load %arg23[%c0_347, %c0_348, %c0_349] : memref<1x1x32xf32, #tpu.memory_space<vmem>>, vector<1x1x32xf32>
    %749 = vector.shape_cast %748 : vector<1x1x32xf32> to vector<1x32xf32>
    %cst_350 = arith.constant dense<0.000000e+00> : vector<1xf32>
    %750 = vector.multi_reduction <add>, %735, %cst_350 [1] : vector<1x128xf32> to vector<1xf32>
    %751 = vector.shape_cast %750 : vector<1xf32> to vector<1x1xf32>
    %cst_351 = arith.constant 1.280000e+02 : f32
    %752 = vector.broadcast %cst_351 : f32 to vector<1x1xf32>
    %753 = arith.divf %751, %752 : vector<1x1xf32>
    %754 = vector.broadcast %753 : vector<1x1xf32> to vector<1x128xf32>
    %755 = arith.subf %735, %754 : vector<1x128xf32>
    %756 = arith.mulf %755, %755 : vector<1x128xf32>
    %cst_352 = arith.constant dense<0.000000e+00> : vector<1xf32>
    %757 = vector.multi_reduction <add>, %756, %cst_352 [1] : vector<1x128xf32> to vector<1xf32>
    %758 = vector.shape_cast %757 : vector<1xf32> to vector<1x1xf32>
    %cst_353 = arith.constant 1.280000e+02 : f32
    %759 = vector.broadcast %cst_353 : f32 to vector<1x1xf32>
    %760 = arith.divf %758, %759 : vector<1x1xf32>
    %761 = vector.broadcast %753 : vector<1x1xf32> to vector<1x128xf32>
    %762 = arith.subf %735, %761 : vector<1x128xf32>
    %cst_354 = arith.constant 9.99999974E-6 : f32
    %763 = vector.broadcast %cst_354 : f32 to vector<1x1xf32>
    %764 = arith.addf %760, %763 : vector<1x1xf32>
    %765 = math.rsqrt %764 : vector<1x1xf32>
    %766 = vector.broadcast %765 : vector<1x1xf32> to vector<1x128xf32>
    %767 = arith.mulf %762, %766 : vector<1x128xf32>
    %768 = arith.mulf %767, %739 : vector<1x128xf32>
    %769 = arith.addf %768, %741 : vector<1x128xf32>
    %cst_355 = arith.constant dense<0.000000e+00> : vector<1x128xf32>
    %770 = tpu.matmul %733, %737, %cst_355 {dimension_numbers = #tpu.dot_dimension_numbers<[1], [0], [0], [1], [0, 0, 1, 1], [], []>} : vector<1x32xf32>, vector<32x128xf32>, vector<1x128xf32> -> vector<1x128xf32>
    %cst_356 = arith.constant dense<0.000000e+00> : vector<1xf32>
    %771 = vector.multi_reduction <add>, %770, %cst_356 [1] : vector<1x128xf32> to vector<1xf32>
    %772 = vector.shape_cast %771 : vector<1xf32> to vector<1x1xf32>
    %cst_357 = arith.constant 1.280000e+02 : f32
    %773 = vector.broadcast %cst_357 : f32 to vector<1x1xf32>
    %774 = arith.divf %772, %773 : vector<1x1xf32>
    %775 = vector.broadcast %774 : vector<1x1xf32> to vector<1x128xf32>
    %776 = arith.subf %770, %775 : vector<1x128xf32>
    %777 = arith.mulf %776, %776 : vector<1x128xf32>
    %cst_358 = arith.constant dense<0.000000e+00> : vector<1xf32>
    %778 = vector.multi_reduction <add>, %777, %cst_358 [1] : vector<1x128xf32> to vector<1xf32>
    %779 = vector.shape_cast %778 : vector<1xf32> to vector<1x1xf32>
    %cst_359 = arith.constant 1.280000e+02 : f32
    %780 = vector.broadcast %cst_359 : f32 to vector<1x1xf32>
    %781 = arith.divf %779, %780 : vector<1x1xf32>
    %782 = vector.broadcast %774 : vector<1x1xf32> to vector<1x128xf32>
    %783 = arith.subf %770, %782 : vector<1x128xf32>
    %cst_360 = arith.constant 9.99999974E-6 : f32
    %784 = vector.broadcast %cst_360 : f32 to vector<1x1xf32>
    %785 = arith.addf %781, %784 : vector<1x1xf32>
    %786 = math.rsqrt %785 : vector<1x1xf32>
    %787 = vector.broadcast %786 : vector<1x1xf32> to vector<1x128xf32>
    %788 = arith.mulf %783, %787 : vector<1x128xf32>
    %789 = arith.mulf %788, %743 : vector<1x128xf32>
    %790 = arith.addf %789, %745 : vector<1x128xf32>
    %791 = arith.addf %769, %790 : vector<1x128xf32>
    %792 = arith.negf %791 : vector<1x128xf32>
    %793 = math.exp %792 : vector<1x128xf32>
    %cst_361 = arith.constant 1.000000e+00 : f32
    %794 = vector.broadcast %cst_361 : f32 to vector<1x128xf32>
    %795 = arith.addf %794, %793 : vector<1x128xf32>
    %796 = arith.divf %794, %795 : vector<1x128xf32>
    %797 = vector.extract_strided_slice %796 {offsets = [0, 0], sizes = [1, 32], strides = [1, 1]} : vector<1x128xf32> to vector<1x32xf32>
    %798 = vector.extract_strided_slice %796 {offsets = [0, 32], sizes = [1, 32], strides = [1, 1]} : vector<1x128xf32> to vector<1x32xf32>
    %799 = vector.extract_strided_slice %796 {offsets = [0, 96], sizes = [1, 32], strides = [1, 1]} : vector<1x128xf32> to vector<1x32xf32>
    %800 = vector.extract_strided_slice %791 {offsets = [0, 64], sizes = [1, 32], strides = [1, 1]} : vector<1x128xf32> to vector<1x32xf32>
    %801 = math.tanh %800 : vector<1x32xf32>
    %802 = arith.mulf %798, %731 : vector<1x32xf32>
    %803 = arith.mulf %797, %801 : vector<1x32xf32>
    %804 = arith.addf %802, %803 : vector<1x32xf32>
    %cst_362 = arith.constant dense<0.000000e+00> : vector<1xf32>
    %805 = vector.multi_reduction <add>, %804, %cst_362 [1] : vector<1x32xf32> to vector<1xf32>
    %806 = vector.shape_cast %805 : vector<1xf32> to vector<1x1xf32>
    %cst_363 = arith.constant 3.200000e+01 : f32
    %807 = vector.broadcast %cst_363 : f32 to vector<1x1xf32>
    %808 = arith.divf %806, %807 : vector<1x1xf32>
    %809 = vector.broadcast %808 : vector<1x1xf32> to vector<1x32xf32>
    %810 = arith.subf %804, %809 : vector<1x32xf32>
    %811 = arith.mulf %810, %810 : vector<1x32xf32>
    %cst_364 = arith.constant dense<0.000000e+00> : vector<1xf32>
    %812 = vector.multi_reduction <add>, %811, %cst_364 [1] : vector<1x32xf32> to vector<1xf32>
    %813 = vector.shape_cast %812 : vector<1xf32> to vector<1x1xf32>
    %cst_365 = arith.constant 3.200000e+01 : f32
    %814 = vector.broadcast %cst_365 : f32 to vector<1x1xf32>
    %815 = arith.divf %813, %814 : vector<1x1xf32>
    %816 = vector.broadcast %808 : vector<1x1xf32> to vector<1x32xf32>
    %817 = arith.subf %804, %816 : vector<1x32xf32>
    %cst_366 = arith.constant 9.99999974E-6 : f32
    %818 = vector.broadcast %cst_366 : f32 to vector<1x1xf32>
    %819 = arith.addf %815, %818 : vector<1x1xf32>
    %820 = math.rsqrt %819 : vector<1x1xf32>
    %821 = vector.broadcast %820 : vector<1x1xf32> to vector<1x32xf32>
    %822 = arith.mulf %817, %821 : vector<1x32xf32>
    %823 = arith.mulf %822, %747 : vector<1x32xf32>
    %824 = arith.addf %823, %749 : vector<1x32xf32>
    %825 = math.tanh %824 : vector<1x32xf32>
    %826 = arith.mulf %799, %825 : vector<1x32xf32>
    %c7 = arith.constant 7 : index
    %c0_367 = arith.constant 0 : index
    %827 = vector.load %arg27[%c7, %c0_367] : memref<8x32xf32, #tpu.memory_space<vmem>>, vector<1x32xf32>
    tpu.vector_store %arg27[%c7, %c0_367], %826 {strides = array<i32>} : memref<8x32xf32, #tpu.memory_space<vmem>>, vector<1x32xf32>,
    %c0_368 = arith.constant 0 : index
    %c0_369 = arith.constant 0 : index
    %828 = vector.load %arg27[%c0_368, %c0_369] : memref<8x32xf32, #tpu.memory_space<vmem>>, vector<8x32xf32>
    %c0_370 = arith.constant 0 : index
    %c0_371 = arith.constant 0 : index
    %829 = vector.load %arg26[%c0_370, %c0_371] : memref<128x32xf32, #tpu.memory_space<vmem>>, vector<128x32xf32>
    %cst_372 = arith.constant dense<0.000000e+00> : vector<8x128xf32>
    %830 = tpu.matmul %828, %829, %cst_372 {dimension_numbers = #tpu.dot_dimension_numbers<[1], [1], [0], [0], [0, 0, 1, 0], [], []>} : vector<8x32xf32>, vector<128x32xf32>, vector<8x128xf32> -> vector<8x128xf32>
    %cst_373 = arith.constant 1.000000e+00 : f32
    %831 = vector.broadcast %cst_373 : f32 to vector<8x128xf32>
    %832 = arith.mulf %830, %831 : vector<8x128xf32>
    %c1_i32_374 = arith.constant 1 : i32
    %833 = vector.broadcast %c1_i32_374 : i32 to vector<1x1xi32>
    %834 = arith.addi %1, %833 : vector<1x1xi32>
    %835 = vector.broadcast %834 : vector<1x1xi32> to vector<8x128xi32>
    %836 = arith.cmpi slt, %25, %835 : vector<8x128xi32>
    %cst_375 = arith.constant dense<0.000000e+00> : vector<8x128xf32>
    %837 = tpu.matmul %57, %29, %cst_375 {dimension_numbers = #tpu.dot_dimension_numbers<[1], [0], [0], [1], [0, 0, 1, 1], [], []>} : vector<8x8xf32>, vector<8x128xf32>, vector<8x128xf32> -> vector<8x128xf32>
    %cst_376 = arith.constant 0.000000e+00 : f32
    %838 = vector.broadcast %cst_376 : f32 to vector<8x128xf32>
    %839 = arith.cmpf ogt, %837, %838 : vector<8x128xf32>
    %840 = tpu.iota {dimensions = array<i32: 0>} : vector<8x128xi32>
    %c0_i32 = arith.constant 0 : i32
    %841 = vector.broadcast %c0_i32 : i32 to vector<8x128xi32>
    %842 = arith.cmpi eq, %840, %841 : vector<8x128xi32>
    %843 = vector.broadcast %1 : vector<1x1xi32> to vector<8x128xi32>
    %844 = arith.cmpi eq, %25, %843 : vector<8x128xi32>
    %845 = arith.andi %842, %844 : vector<8x128xi1>
    %846 = arith.ori %839, %845 : vector<8x128xi1>
    %cst_377 = arith.constant dense<true> : vector<8x128xi1>
    %847 = arith.xori %846, %cst_377 : vector<8x128xi1>
    %848 = arith.andi %836, %847 : vector<8x128xi1>
    %cst_378 = arith.constant -1.000000e+09 : f32
    %849 = vector.broadcast %cst_378 : f32 to vector<8x128xf32>
    %850 = arith.select %848, %832, %849 : vector<8x128xi1>, vector<8x128xf32>
    %c0_379 = arith.constant 0 : index
    %c0_380 = arith.constant 0 : index
    %c0_381 = arith.constant 0 : index
    %851 = vector.load %arg24[%c0_379, %c0_380, %c0_381] : memref<1x8x128xf32, #tpu.memory_space<vmem>>, vector<1x8x128xf32>
    %852 = vector.shape_cast %851 : vector<1x8x128xf32> to vector<8x128xf32>
    %853 = vector.shape_cast %850 : vector<8x128xf32> to vector<1x8x128xf32>
    tpu.vector_store %arg24[%c0_379, %c0_380, %c0_381], %853 {strides = array<i32>} : memref<1x8x128xf32, #tpu.memory_space<vmem>>, vector<1x8x128xf32>,
    return
  }
  func.func @transform_0(%arg0: i32) -> (i32, i32, i32) {
    %c0_i32 = arith.constant 0 : i32
    %c0_i32_0 = arith.constant 0 : i32
    %c0_i32_1 = arith.constant 0 : i32
    return %arg0, %c0_i32, %c0_i32_0 : i32, i32, i32
  }
  func.func @transform_1(%arg0: i32) -> (i32, i32, i32) {
    %c0_i32 = arith.constant 0 : i32
    %c0_i32_0 = arith.constant 0 : i32
    %c0_i32_1 = arith.constant 0 : i32
    return %arg0, %c0_i32, %c0_i32_0 : i32, i32, i32
  }
  func.func @transform_2(%arg0: i32) -> (i32, i32, i32) {
    %c0_i32 = arith.constant 0 : i32
    %c0_i32_0 = arith.constant 0 : i32
    %c0_i32_1 = arith.constant 0 : i32
    return %arg0, %c0_i32, %c0_i32_0 : i32, i32, i32
  }
  func.func @transform_3(%arg0: i32) -> (i32, i32, i32) {
    %c0_i32 = arith.constant 0 : i32
    %c0_i32_0 = arith.constant 0 : i32
    %c0_i32_1 = arith.constant 0 : i32
    return %arg0, %c0_i32, %c0_i32_0 : i32, i32, i32
  }
  func.func @transform_4(%arg0: i32) -> (i32, i32, i32) {
    %c0_i32 = arith.constant 0 : i32
    %c0_i32_0 = arith.constant 0 : i32
    %c0_i32_1 = arith.constant 0 : i32
    return %arg0, %c0_i32, %c0_i32_0 : i32, i32, i32
  }
  func.func @transform_5(%arg0: i32) -> (i32, i32) {
    %c0_i32 = arith.constant 0 : i32
    %c0_i32_0 = arith.constant 0 : i32
    %c0_i32_1 = arith.constant 0 : i32
    return %c0_i32, %c0_i32_0 : i32, i32
  }
  func.func @transform_6(%arg0: i32) -> (i32, i32) {
    %c0_i32 = arith.constant 0 : i32
    %c0_i32_0 = arith.constant 0 : i32
    %c0_i32_1 = arith.constant 0 : i32
    return %c0_i32, %c0_i32_0 : i32, i32
  }
  func.func @transform_7(%arg0: i32) -> (i32, i32) {
    %c0_i32 = arith.constant 0 : i32
    %c0_i32_0 = arith.constant 0 : i32
    %c0_i32_1 = arith.constant 0 : i32
    return %c0_i32, %c0_i32_0 : i32, i32
  }
  func.func @transform_8(%arg0: i32) -> (i32, i32) {
    %c0_i32 = arith.constant 0 : i32
    %c0_i32_0 = arith.constant 0 : i32
    %c0_i32_1 = arith.constant 0 : i32
    return %c0_i32, %c0_i32_0 : i32, i32
  }
  func.func @transform_9(%arg0: i32) -> (i32, i32) {
    %c0_i32 = arith.constant 0 : i32
    %c0_i32_0 = arith.constant 0 : i32
    %c0_i32_1 = arith.constant 0 : i32
    return %c0_i32, %c0_i32_0 : i32, i32
  }
  func.func @transform_10(%arg0: i32) -> (i32, i32) {
    %c0_i32 = arith.constant 0 : i32
    %c0_i32_0 = arith.constant 0 : i32
    %c0_i32_1 = arith.constant 0 : i32
    return %c0_i32, %c0_i32_0 : i32, i32
  }
  func.func @transform_11(%arg0: i32) -> (i32, i32) {
    %c0_i32 = arith.constant 0 : i32
    %c0_i32_0 = arith.constant 0 : i32
    %c0_i32_1 = arith.constant 0 : i32
    return %c0_i32, %c0_i32_0 : i32, i32
  }
  func.func @transform_12(%arg0: i32) -> (i32, i32) {
    %c0_i32 = arith.constant 0 : i32
    %c0_i32_0 = arith.constant 0 : i32
    %c0_i32_1 = arith.constant 0 : i32
    return %c0_i32, %c0_i32_0 : i32, i32
  }
  func.func @transform_13(%arg0: i32) -> (i32, i32) {
    %c0_i32 = arith.constant 0 : i32
    %c0_i32_0 = arith.constant 0 : i32
    %c0_i32_1 = arith.constant 0 : i32
    return %c0_i32, %c0_i32_0 : i32, i32
  }
  func.func @transform_14(%arg0: i32) -> (i32, i32, i32) {
    %c0_i32 = arith.constant 0 : i32
    %c0_i32_0 = arith.constant 0 : i32
    %c0_i32_1 = arith.constant 0 : i32
    %c0_i32_2 = arith.constant 0 : i32
    return %c0_i32, %c0_i32_0, %c0_i32_1 : i32, i32, i32
  }
  func.func @transform_15(%arg0: i32) -> (i32, i32) {
    %c0_i32 = arith.constant 0 : i32
    %c0_i32_0 = arith.constant 0 : i32
    %c0_i32_1 = arith.constant 0 : i32
    return %c0_i32, %c0_i32_0 : i32, i32
  }
  func.func @transform_16(%arg0: i32) -> (i32, i32, i32) {
    %c0_i32 = arith.constant 0 : i32
    %c0_i32_0 = arith.constant 0 : i32
    %c0_i32_1 = arith.constant 0 : i32
    %c0_i32_2 = arith.constant 0 : i32
    return %c0_i32, %c0_i32_0, %c0_i32_1 : i32, i32, i32
  }
  func.func @transform_17(%arg0: i32) -> (i32, i32, i32) {
    %c0_i32 = arith.constant 0 : i32
    %c0_i32_0 = arith.constant 0 : i32
    %c0_i32_1 = arith.constant 0 : i32
    %c0_i32_2 = arith.constant 0 : i32
    return %c0_i32, %c0_i32_0, %c0_i32_1 : i32, i32, i32
  }
  func.func @transform_18(%arg0: i32) -> (i32, i32, i32) {
    %c0_i32 = arith.constant 0 : i32
    %c0_i32_0 = arith.constant 0 : i32
    %c0_i32_1 = arith.constant 0 : i32
    %c0_i32_2 = arith.constant 0 : i32
    return %c0_i32, %c0_i32_0, %c0_i32_1 : i32, i32, i32
  }
  func.func @transform_19(%arg0: i32) -> (i32, i32, i32) {
    %c0_i32 = arith.constant 0 : i32
    %c0_i32_0 = arith.constant 0 : i32
    %c0_i32_1 = arith.constant 0 : i32
    %c0_i32_2 = arith.constant 0 : i32
    return %c0_i32, %c0_i32_0, %c0_i32_1 : i32, i32, i32
  }
  func.func @transform_20(%arg0: i32) -> (i32, i32, i32) {
    %c0_i32 = arith.constant 0 : i32
    %c0_i32_0 = arith.constant 0 : i32
    %c0_i32_1 = arith.constant 0 : i32
    %c0_i32_2 = arith.constant 0 : i32
    return %c0_i32, %c0_i32_0, %c0_i32_1 : i32, i32, i32
  }
  func.func @transform_21(%arg0: i32) -> (i32, i32, i32) {
    %c0_i32 = arith.constant 0 : i32
    %c0_i32_0 = arith.constant 0 : i32
    %c0_i32_1 = arith.constant 0 : i32
    %c0_i32_2 = arith.constant 0 : i32
    return %c0_i32, %c0_i32_0, %c0_i32_1 : i32, i32, i32
  }
  func.func @transform_22(%arg0: i32) -> (i32, i32, i32) {
    %c0_i32 = arith.constant 0 : i32
    %c0_i32_0 = arith.constant 0 : i32
    %c0_i32_1 = arith.constant 0 : i32
    %c0_i32_2 = arith.constant 0 : i32
    return %c0_i32, %c0_i32_0, %c0_i32_1 : i32, i32, i32
  }
  func.func @transform_23(%arg0: i32) -> (i32, i32, i32) {
    %c0_i32 = arith.constant 0 : i32
    %c0_i32_0 = arith.constant 0 : i32
    %c0_i32_1 = arith.constant 0 : i32
    return %arg0, %c0_i32, %c0_i32_0 : i32, i32, i32
  }
  func.func @transform_24(%arg0: i32) -> (i32, i32, i32) {
    %c0_i32 = arith.constant 0 : i32
    %c0_i32_0 = arith.constant 0 : i32
    %c0_i32_1 = arith.constant 0 : i32
    return %arg0, %c0_i32, %c0_i32_0 : i32, i32, i32
  }
}

</mosaic_0001>

<bundles_post_ra>
// kernel: tpu_custom_call.1
= control target key start
LH: loop header
LB: loop body
LE: loop exit
PB: predicated region body
PF: predicated region fallthrough
CT: control target
= control target key end

     0   :  { %s5575_s0 = inlined_call_operand.vmem [shape: f32[2,128,32], index: 0, kind: input, shape index: {}]   ;;  %s5576_s1 = inlined_call_operand.vmem [shape: f32[2,1,32], index: 1, kind: input, shape index: {}]   ;;  %s5577_s2 = inlined_call_operand.vmem [shape: s32[2,1,1], index: 2, kind: input, shape index: {}]   ;;  %s5578_s3 = inlined_call_operand.vmem [shape: s32[2,1,1], index: 3, kind: input, shape index: {}]   ;;  %s5579_s4 = inlined_call_operand.vmem [shape: s32[2,8,1], index: 4, kind: input, shape index: {}]   ;;  %s5580_s5 = inlined_call_operand.vmem [shape: f32[32,32], index: 5, kind: input, shape index: {}]   ;;  %s5581_s6 = inlined_call_operand.vmem [shape: f32[1,32], index: 6, kind: input, shape index: {}]   ;;  %s5582_s7 = inlined_call_operand.vmem [shape: f32[1,32], index: 7, kind: input, shape index: {}]   ;;  %s5583_s8 = inlined_call_operand.vmem [shape: f32[32,32], index: 8, kind: input, shape index: {}]   ;;  %s5584_s9 = inlined_call_operand.vmem [shape: f32[1,32], index: 9, kind: input, shape index: {}]   ;;  %s5585_s10 = inlined_call_operand.vmem [shape: f32[32,32], index: 10, kind: input, shape index: {}]   ;;  %s5586_s11 = inlined_call_operand.vmem [shape: f32[1,32], index: 11, kind: input, shape index: {}]   ;;  %s5587_s12 = inlined_call_operand.vmem [shape: f32[32,32], index: 12, kind: input, shape index: {}]   ;;  %s5588_s13 = inlined_call_operand.vmem [shape: f32[1,32], index: 13, kind: input, shape index: {}]   ;;  %s5589_s14 = inlined_call_operand.vmem [shape: f32[1,32,128], index: 14, kind: input, shape index: {}]   ;;  %s5590_s15 = inlined_call_operand.vmem [shape: f32[1,128], index: 15, kind: input, shape index: {}]   ;;  %s5591_s16 = inlined_call_operand.vmem [shape: f32[1,32,128], index: 16, kind: input, shape index: {}]   ;;  %s5592_s17 = inlined_call_operand.vmem [shape: f32[1,1,128], index: 17, kind: input, shape index: {}]   ;;  %s5593_s18 = inlined_call_operand.vmem [shape: f32[1,1,128], index: 18, kind: input, shape index: {}]   ;;  %s5594_s19 = inlined_call_operand.vmem [shape: f32[1,1,128], index: 19, kind: input, shape index: {}]   ;;  %s5595_s20 = inlined_call_operand.vmem [shape: f32[1,1,128], index: 20, kind: input, shape index: {}]   ;;  %s5596_s21 = inlined_call_operand.vmem [shape: f32[1,1,32], index: 21, kind: input, shape index: {}]   ;;  %s5597_s22 = inlined_call_operand.vmem [shape: f32[1,1,32], index: 22, kind: input, shape index: {}]   ;;  %s5598_s23 = inlined_call_operand.hbm [shape: f32[2,8,128], index: 23, kind: output, shape index: {0}]   ;;  %s5599_s24 = inlined_call_operand.hbm [shape: f32[2,1,32], index: 24, kind: output, shape index: {1}]  }
   0x1   :  { %5617 = sst [smem:[#allocation16_spill]] %s5575_s0 }
   0x2   :  { %5618 = sst [smem:[#allocation17_spill]] %s5576_s1 }
   0x3   :  { %5619 = sst [smem:[#allocation18_spill]] %s5577_s2 }
   0x4   :  { %5620 = sst [smem:[#allocation19_spill]] %s5578_s3 }
   0x5   :  { %5621 = sst [smem:[#allocation20_spill]] %s5579_s4 }
   0x6   :  { %5622 = sst [smem:[#allocation21_spill]] %s5580_s5 }
   0x7   :  { %5623 = sst [smem:[#allocation22_spill]] %s5581_s6 }
   0x8   :  { %5624 = sst [smem:[#allocation23_spill]] %s5582_s7 }
   0x9   :  { %5625 = sst [smem:[#allocation24_spill]] %s5583_s8 }
   0xa   :  { %30 = vsyncpa [#allocation5], 0 }
   0xb   :  { %32 = vsyncpa [#allocation5 + $0x1], 0 }
   0xc   :  { %33 = vsyncpa [#allocation7], 0 }
   0xd   :  { %35 = vsyncpa [#allocation7 + $0x1], 0  ;;  %s4687_s5 = smov 0   ;;  %s4689_s26 = smov 0  }
   0xe   :  { %s4691_s27 = smov 0   ;;  %s4693_s28 = smov 0  }
   0xf LB: > { %5626 = sst [smem:[#allocation10_spill]] %s4537_s5  ;;  %s4708_s6 = sadd.s32 4294967295, %s4549_s28   ;;  %s4549_s28 = sphi %s4693_s28, %s5666_s28   ;;  %s4545_s27 = sphi %s4691_s27, %s5668_s27   ;;  %s4541_s26 = sphi %s4689_s26, %s5670_s26   ;;  %s4537_s5 = sphi %s4687_s5, %s5669_s5  }
  0x10   : > { %5627 = sst [smem:[#allocation11_spill]] %s4545_s27  ;;  %s3657_s2 = sadd.s32 4294967294, %s4549_s28  }
  0x11   : > { %5628 = sst [smem:[#allocation12_spill]] %s4549_s28  ;;  %s4712_s29 = sadd.s32 1, %s4549_s28  }
  0x12   : > { %5629 = sst [smem:[#allocation13_spill]] %s4712_s29  ;;  %s556_s0 = sadd.s32 1, %s4545_s27 }
  0x13   : > { %s553_s7 = ssub.s32 %s4549_s28, %s4712_s29  ;;  %p566_p0 = scmp.ne.s32.totalorder %s4545_s27, %s4541_s26 }
  0x14   : > { %p554_p1 = scmp.eq.s32.totalorder %s553_s7, 0  ;;  %p567_p2 = scmp.eq.s32.totalorder %s4708_s6, 1 }
  0x15   : > { %p572_p3 = scmp.ne.s32.totalorder %s4541_s26, %s4537_s5  ;;  %p573_p4 = scmp.eq.s32.totalorder %s3657_s2, 1 }
  0x16   : > { %s4723_s30 = scalar_select %p554_p1, %s4545_s27, %s556_s0  }
  0x17   : > { %p4725_p5 = por %p567_p2, %p566_p0  ;;  %p4729_p6 = por %p573_p4, %p572_p3 }
  0x18   : > { %5630 = sst [smem:[#allocation14_spill]] %s4723_s30  ;;  %p3660_p7 = scmp.ge.s32.totalorder %s4549_s28, 1 }
  0x19   : > { %s5632_s25 = scalar_select %p4729_p6, 1, 0 }
  0x1a   : > { %p704_p8 = scmp.lt.s32.totalorder %s4549_s28, 3 }
  0x1b   : > { %5633 = sst [smem:[#allocation15_spill]] %s5632_s25 }
  0x1c   : > { %p705_p9 = pnand %p3660_p7, %p704_p8 }
  0x1d   : > { %s5634_s1 = sld [smem:[#allocation21_spill]] (!%p705_p9)  ;;  %p787_p10 = scmp.lt.s32.totalorder (!%p705_p9), %s4708_s6, 1  ;;  %v1029_v3 = vlaneseq (!%p705_p9)  ;;  %v4551_v6 = vmov (!%p705_p9), 0   ;;  %vm835_vm0 = vcmask (!%p705_p9), 261120   ;;  %v4552_v14 = vmov (!%p705_p9), 0.0|0.0   ;;  %v1307_v48 = vld [vmem:[%s5585_s10 + $0x18] sm:$0xff] (!%p705_p9) }
  0x1e   : > { %708 = sbr.rel (%p705_p9) target bundleno = 14099 (0x3713), region = 112  ;;  %4339 = vset.pattern.permute.xlu0 (!%p705_p9), %v4551_v6  ;;  %4340 = vset.pattern.permute.xlu1 (!%p705_p9), %v4551_v6  ;;  %s5635_s27 = sld [smem:[#allocation18_spill]] (!%p705_p9)  ;;  %vm4553_vm1 = vmmov (!%p705_p9), 0   ;;  %v4554_v29 = vmov (!%p705_p9), 0.0   ;;  %v3699_v51 = vld [vmem:[%s5584_s9] ss:$0 sm:$0xff] (!%p705_p9) }
  0x1f   : > { %v4752_v8 = vshrl.u32 (!%p705_p9), %v1029_v3, 7  ;;  %s5637_s2 = sld [smem:[#allocation20_spill]] (!%p705_p9)  ;;  %4194 = vmatprep.subr.bf16.mxu1 (!%p705_p9), %v4552_v14  ;;  %4001 = vmatprep.mubr.msk.f32.mxu1 (!%p705_p9), %vm4553_vm1, %v4554_v29  ;;  %s5653_s0 = sld [smem:[#allocation22_spill]] (!%p705_p9)  ;;  %v1496_v57 = vld [vmem:[%s5587_s12 + $0x8] sm:$0xff] (!%p705_p9) }
  0x20   : > { %s5655_s7 = sld [smem:[#allocation19_spill]] (!%p705_p9) }
  0x21   : > { %v1080_v9 = vsub.s32 (!%p705_p9), 0, %v4752_v8  ;;  %v1032_v30 = vadd.s32 (!%p705_p9), 16, %v4752_v8  ;;  %v1033_v31 = vadd.s32 (!%p705_p9), 24, %v4752_v8  ;;  %v1034_v32 = vadd.s32 (!%p705_p9), 32, %v4752_v8 }
  0x22   : > { %v1035_v33 = vadd.s32 (!%p705_p9), 40, %v4752_v8  ;;  %v1036_v35 = vadd.s32 (!%p705_p9), 48, %v4752_v8  ;;  %v1037_v36 = vadd.s32 (!%p705_p9), 56, %v4752_v8  ;;  %v1038_v37 = vadd.s32 (!%p705_p9), 64, %v4752_v8 }
  0x23   : > { %v824_v0 = vld [vmem:[%s5634_s1] sm:$0xff] (!%p705_p9)  ;;  %v825_v1 = vld [vmem:[%s5634_s1 + $0x8] sm:$0xff] (!%p705_p9)  ;;  %v826_v2 = vld [vmem:[%s5634_s1 + $0x10] sm:$0xff] (!%p705_p9)  ;;  %v1039_v38 = vadd.s32 (!%p705_p9), 72, %v4752_v8  ;;  %v1040_v40 = vadd.s32 (!%p705_p9), 80, %v4752_v8  ;;  %v1041_v41 = vadd.s32 (!%p705_p9), 88, %v4752_v8 }
  0x24   : > { %v4143_v4 = vpack.c.bf16 (!%p705_p9), %v825_v1, %v824_v0  ;;  %v827_v5 = vld [vmem:[%s5634_s1 + $0x18] sm:$0xff] (!%p705_p9)  ;;  %s5636_s1 = sld [smem:[#allocation16_spill]] (!%p705_p9)  ;;  %v1042_v42 = vadd.s32 (!%p705_p9), 96, %v4752_v8  ;;  %v1043_v43 = vadd.s32 (!%p705_p9), 104, %v4752_v8  ;;  %v1044_v44 = vadd.s32 (!%p705_p9), 112, %v4752_v8 }
  0x25   : > { %v4147_v7 = vpack.c.bf16 %v827_v5, %v826_v2  ;;  %s4749_s8 = scalar_select %p787_p10, %s4708_s6, 1  ;;  %v1045_v45 = vadd.s32 120, %v4752_v8  ;;  %v3665_v5 = vld [vmem:[%s5653_s0] ss:$0 sm:$0xff] }
  0x26   : > { %4144 = vmatprep.subr.bf16.mxu0 %v4143_v4  ;;  %s5615_s0 = smov 64  }
  0x27   : > { %4146 = vmatpush3.bf16.msra.mxu0 %v4143_v4  ;;  %s3780_s30 = sshll.u32 %s4749_s8, 7  ;;  %s4759_s29 = scalar_lea.vmem %s5635_s27, %s4749_s8  ;;  %v1031_v4 = vadd.s32 8, %v4752_v8 }
  0x28   : > { %4148 = vmatprep.subr.bf16.mxu0 %v4147_v7  ;;  %v4454_v10 = vld [vmem:[%s4759_s29] ss:$0 sm:$0xff]  ;;  %s3664_s5 = sshll.u32 %s4749_s8, 3  ;;  %s800_s4 = scalar_lea.vmem %s5655_s7, %s4749_s8 }
  0x29   : > { %s804_s27 = scalar_lea.vmem %s5637_s2, %s3664_s5  ;;  %1083 = vperm.xlu0 %4339, %v4454_v10   ;;  %s5654_s2 = sld [smem:[#allocation24_spill]] }
  0x2a   : > { %s4765_s25 = scalar_lea.vmem %s5636_s1, %s3780_s30  ;;  %v807_v13 = vld [vmem:[%s804_s27] sm:$0xff]  ;;  %s5018_s5 = sand.u32 1, %s4541_s26  }
  0x2b   : > { %v808_v11 = vld [vmem:[%s4765_s25] sm:$0xff]  ;;  %4150 = vmatpush3.bf16.msra.mxu0 %v4147_v7  ;;  %v809_v12 = vld [vmem:[%s4765_s25 + $0x8] sm:$0xff]  ;;  %v810_v15 = vld [vmem:[%s4765_s25 + $0x10] sm:$0xff]  ;;  %s5610_s28 = scalar_lea.vmem [#allocation6], %s5018_s5  ;;  %s5613_s7 = smov 32  }
  0x2c   : > { %3907 = vmatprep.mubr.msk.f32.mxu0 %vm835_vm0, %v808_v11  ;;  %4151 = vmatprep.subr.bf16.mxu0 %v4552_v14  ;;  %v811_v16 = vld [vmem:[%s4765_s25 + $0x18] sm:$0xff]  ;;  %v812_v17 = vld [vmem:[%s4765_s25 + $0x20] sm:$0xff]  ;;  %v813_v18 = vld [vmem:[%s4765_s25 + $0x28] sm:$0xff]  ;;  %s3506_s1 = scalar_lea.sflag [#allocation7], %s5018_s5 }
  0x2d   : > { %1143 = vperm.xlu0 %4339, %v807_v13   ;;  %v814_v19 = vld [vmem:[%s4765_s25 + $0x30] sm:$0xff]  ;;  %v815_v20 = vld [vmem:[%s4765_s25 + $0x38] sm:$0xff]  ;;  %v816_v21 = vld [vmem:[%s4765_s25 + $0x40] sm:$0xff] }
  0x2e   : > { %3908 = vmatmul.mubr.msk.f32.vlgmr.msra.gmra.mrb[0].mxu0 %vm835_vm0, %v809_v12  ;;  %v817_v22 = vld [vmem:[%s4765_s25 + $0x48] sm:$0xff]  ;;  %v818_v23 = vld [vmem:[%s4765_s25 + $0x50] sm:$0xff]  ;;  %v819_v24 = vld [vmem:[%s4765_s25 + $0x58] sm:$0xff] }
  0x2f   : > { %3910 = vmatprep.mubr.msk.f32.mxu0 %vm835_vm0, %v810_v15  ;;  %v820_v25 = vld [vmem:[%s4765_s25 + $0x60] sm:$0xff]  ;;  %v821_v26 = vld [vmem:[%s4765_s25 + $0x68] sm:$0xff]  ;;  %v822_v27 = vld [vmem:[%s4765_s25 + $0x70] sm:$0xff] }
  0x30   : > { %v823_v28 = vld [vmem:[%s4765_s25 + $0x78] sm:$0xff]  ;;  %s5638_s25 = sld [smem:[#allocation23_spill]] }
  0x32   : > { %3911 = vmatmul.mubr.msk.f32.gmra.mrb[2].mxu0 %vm835_vm0, %v811_v16 }
  0x33   : > { %3913 = vmatprep.mubr.msk.f32.mxu0 %vm835_vm0, %v812_v17  ;;  %v1219_v17 = vld [vmem:[%s5654_s2] sm:$0xff] }
  0x36   : > { %3914 = vmatmul.mubr.msk.f32.gmra.mrb[4].mxu0 %vm835_vm0, %v813_v18  ;;  %v4817_v34 = vld [vmem:[%s5638_s25] ss:$0 sm:$0xff]  ;;  %v1220_v18 = vld [vmem:[%s5654_s2 + $0x8] sm:$0xff] }
  0x37   : > { %3916 = vmatprep.mubr.msk.f32.mxu0 %vm835_vm0, %v814_v19  ;;  %v4155_v16 = vpack.c.bf16 %v4817_v34, %v4817_v34  ;;  %v4940_v19 = vand.u32 127, %v1029_v3 }
  0x3a   : > { %3917 = vmatmul.mubr.msk.f32.gmra.mrb[6].mxu0 %vm835_vm0, %v815_v20 }
  0x3b   : > { %3919 = vmatprep.mubr.msk.f32.mxu0 %vm835_vm0, %v816_v21  ;;  %v4183_v21 = vpack.c.bf16 %v1220_v18, %v1219_v17  ;;  %v1497_v17 = vld [vmem:[%s5587_s12 + $0x10] sm:$0xff]  ;;  %v1498_v18 = vld [vmem:[%s5587_s12 + $0x18] sm:$0xff] }
  0x3e   : > { %3920 = vmatmul.mubr.msk.f32.gmra.mrb[8].mxu0 %vm835_vm0, %v817_v22  ;;  %v4555_v22 = vmov 1.0  }
  0x3f   : > { %3922 = vmatprep.mubr.msk.f32.mxu0 %vm835_vm0, %v818_v23 }
  0x42   : > { %3923 = vmatmul.mubr.msk.f32.gmra.mrb[10].mxu0 %vm835_vm0, %v819_v24 }
  0x43   : > { %3925 = vmatprep.mubr.msk.f32.mxu0 %vm835_vm0, %v820_v25 }
  0x46   : > { %3926 = vmatmul.mubr.msk.f32.gmra.mrb[12].mxu0 %vm835_vm0, %v821_v26 }
  0x47   : > { %3928 = vmatprep.mubr.msk.f32.mxu0 %vm835_vm0, %v822_v27 }
  0x4a   : > { %3929 = vmatmul.mubr.msk.f32.gmra.mrb[14].mxu0 %vm835_vm0, %v823_v28 }
  0x4b   : > { %3963 = vmatprep.mubr.msk.f32.mxu0 %vm4553_vm1, %v4554_v29 }
  0xa8   : > { %v4823_v39 = vpop.permute.xlu0 %1083 }
  0xa9   : > { %vm1087_vm2 = vcmp.eq.s32.totalorder %v1032_v30, %v4823_v39  ;;  %vm1088_vm3 = vcmp.eq.s32.totalorder %v1033_v31, %v4823_v39  ;;  %vm1089_vm5 = vcmp.eq.s32.totalorder %v1034_v32, %v4823_v39  ;;  %vm1090_vm6 = vcmp.eq.s32.totalorder %v1035_v33, %v4823_v39 }
  0xaa   : > { %v1110_v46 = vsel %vm1087_vm2, %v4817_v34, 0.0  ;;  %v1111_v47 = vsel %vm1088_vm3, %v4817_v34, 0.0  ;;  %vm4835_vm4 = vmpackc.low %vm1088_vm3, %vm1087_vm2  ;;  %v1112_v49 = vsel %vm1089_vm5, %v4817_v34, 0.0  ;;  %v1113_v50 = vsel %vm1090_vm6, %v4817_v34, 0.0 }
  0xab   : > { %1126 = vst.msk [vmem:[#allocation2 + $0x10] sm:$0xff] %vm835_vm0, %v1110_v46  ;;  %1127 = vst.msk [vmem:[#allocation2 + $0x18] sm:$0xff] %vm835_vm0, %v1111_v47  ;;  %vm1091_vm8 = vcmp.eq.s32.totalorder %v1036_v35, %v4823_v39  ;;  %vm1092_vm9 = vcmp.eq.s32.totalorder %v1037_v36, %v4823_v39  ;;  %vm1093_vm11 = vcmp.eq.s32.totalorder %v1038_v37, %v4823_v39  ;;  %v1221_v37 = vld [vmem:[%s5654_s2 + $0x10] sm:$0xff] }
  0xac   : > { %vm4845_vm7 = vmpackc.low %vm1090_vm6, %vm1089_vm5  ;;  %1128 = vst.msk [vmem:[#allocation2 + $0x20] sm:$0xff] %vm835_vm0, %v1112_v49  ;;  %v1114_v52 = vsel %vm1091_vm8, %v4817_v34, 0.0  ;;  %v1115_v53 = vsel %vm1092_vm9, %v4817_v34, 0.0  ;;  %vm1094_vm12 = vcmp.eq.s32.totalorder %v1039_v38, %v4823_v39  ;;  %v1116_v55 = vsel %vm1093_vm11, %v4817_v34, 0.0  ;;  %v4942_v20 = vpop.permute.xlu0 %1143  ;;  %v1222_v38 = vld [vmem:[%s5654_s2 + $0x18] sm:$0xff]  ;;  %v1306_v47 = vld [vmem:[%s5585_s10 + $0x10] sm:$0xff] }
  0xad   : > { %1129 = vst.msk [vmem:[#allocation2 + $0x28] sm:$0xff] %vm835_vm0, %v1113_v50  ;;  %vm4855_vm10 = vmpackc.low %vm1092_vm9, %vm1091_vm8  ;;  %v1117_v56 = vsel %vm1094_vm12, %v4817_v34, 0.0  ;;  %vm1095_vm14 = vcmp.eq.s32.totalorder %v1040_v40, %v4823_v39  ;;  %vm1096_vm15 = vcmp.eq.s32.totalorder %v1041_v41, %v4823_v39  ;;  %vm1097_vm2 = vcmp.eq.s32.totalorder %v1042_v42, %v4823_v39  ;;  %v1304_v41 = vld [vmem:[%s5585_s10] sm:$0xff]  ;;  %v1305_v42 = vld [vmem:[%s5585_s10 + $0x8] sm:$0xff] }
  0xae   : > { %1130 = vst.msk [vmem:[#allocation2 + $0x30] sm:$0xff] %vm835_vm0, %v1114_v52  ;;  %1131 = vst.msk [vmem:[#allocation2 + $0x38] sm:$0xff] %vm835_vm0, %v1115_v53  ;;  %v1118_v58 = vsel %vm1095_vm14, %v4817_v34, 0.0  ;;  %vm1098_vm3 = vcmp.eq.s32.totalorder %v1043_v43, %v4823_v39  ;;  %v1119_v59 = vsel %vm1096_vm15, %v4817_v34, 0.0  ;;  %v1120_v61 = vsel %vm1097_vm2, %v4817_v34, 0.0 }
  0xaf   : > { %vm4865_vm13 = vmpackc.low %vm1094_vm12, %vm1093_vm11  ;;  %1132 = vst.msk [vmem:[#allocation2 + $0x40] sm:$0xff] %vm835_vm0, %v1116_v55  ;;  %v1121_v62 = vsel %vm1098_vm3, %v4817_v34, 0.0  ;;  %vm1099_vm6 = vcmp.eq.s32.totalorder %v1044_v44, %v4823_v39  ;;  %vm1100_vm9 = vcmp.eq.s32.totalorder %v1045_v45, %v4823_v39  ;;  %vm1086_vm12 = vcmp.eq.s32.totalorder %v1031_v4, %v4823_v39  ;;  %v3703_v50 = vld [vmem:[%s800_s4] ss:$0 sm:$0xff]  ;;  %s5656_s4 = sld [smem:[#allocation17_spill]] }
  0xb0   : > { %1133 = vst.msk [vmem:[#allocation2 + $0x48] sm:$0xff] %vm835_vm0, %v1117_v56  ;;  %1134 = vst.msk [vmem:[#allocation2 + $0x50] sm:$0xff] %vm835_vm0, %v1118_v58  ;;  %v1122_v0 = vsel %vm1099_vm6, %v4817_v34, 0.0  ;;  %v1123_v1 = vsel %vm1100_vm9, %v4817_v34, 0.0  ;;  %v4186_v40 = vpack.c.bf16 %v1222_v38, %v1221_v37  ;;  %v4189_v44 = vpack.c.bf16 %v1305_v42, %v1304_v41  ;;  %1394 = vperm.xlu1 %4340, %v3703_v50   ;;  %v1495_v56 = vld [vmem:[%s5587_s12] sm:$0xff]  ;;  %v1583_v37 = vld [vmem:[%s5589_s14 + $0x18] sm:$0xff] }
  0xb1   : > { %vm4878_vm5 = vmpackc.low %vm1096_vm15, %vm1095_vm14  ;;  %1135 = vst.msk [vmem:[#allocation2 + $0x58] sm:$0xff] %vm835_vm0, %v1119_v59  ;;  %vm1085_vm14 = vcmp.eq.s32.totalorder %v4752_v8, %v4823_v39  ;;  %v4192_v49 = vpack.c.bf16 %v1307_v48, %v1306_v47  ;;  %v4195_v58 = vpack.c.bf16 %v1496_v57, %v1495_v56  ;;  %v1388_v59 = vadd.s32 1, %v4752_v8 }
  0xb2   : > { %1136 = vst.msk [vmem:[#allocation2 + $0x60] sm:$0xff] %vm835_vm0, %v1120_v61  ;;  %1137 = vst.msk [vmem:[#allocation2 + $0x68] sm:$0xff] %vm835_vm0, %v1121_v62  ;;  %v3701_v61 = vld [vmem:[%s5586_s11] ss:$0 sm:$0xff]  ;;  %vm1493_vm15 = vcmask 253952  }
  0xb3   : > { %vm4888_vm8 = vmpackc.low %vm1098_vm3, %vm1097_vm2  ;;  %1138 = vst.msk [vmem:[#allocation2 + $0x70] sm:$0xff] %vm835_vm0, %v1122_v0  ;;  %4196 = vmatpush3.bf16.msra.mxu1 %v4195_v58  ;;  %vm1674_vm2 = vcmask 1040384   ;;  %vm1859_vm3 = vcmask 1041409  }
  0xb4   : > { %vm4896_vm11 = vmpackc.low %vm1100_vm9, %vm1099_vm6  ;;  %1139 = vst.msk [vmem:[#allocation2 + $0x78] sm:$0xff] %vm835_vm0, %v1123_v1  ;;  %4197 = vmatprep.subr.bf16.mxu1 %v4552_v14  ;;  %vm2060_vm6 = vcmask 1042434   ;;  %vm2264_vm9 = vcmask 1043459  }
  0xb5   : > { %s794_s27 = scalar_lea.vmem %s5656_s4, %s4749_s8  ;;  %s5611_s4 = smov 96  }
  0xb6   : > { %s5661_s8 = smov 64  }
 0x101   : > { %v3909_v6 = vpop.f32.mrb[0].mxu0 }
 0x102   : > { %v956_v7 = vadd.f32 %v3909_v6, %v3665_v5  ;;  %v950_v10 = vpop.f32.mrb[1].mxu0 }
 0x103   : > { %v951_v11 = vadd.f32 %v3665_v5, %v950_v10 }
 0x104   : > { %v1109_v12 = vsel %vm1086_vm12, %v4817_v34, %v956_v7  ;;  %vm2468_vm12 = vcmask 1044484  }
 0x105   : > { %1125 = vst.msk [vmem:[#allocation2 + $0x8] sm:$0xff] %vm835_vm0, %v1109_v12  ;;  %v1108_v13 = vsel %vm1085_vm14, %v4817_v34, %v951_v11  ;;  %v3912_v3 = vpop.f32.mrb[2].mxu0  ;;  %vm2615_vm14 = vcmask 258052  }
 0x106   : > { %1124 = vst.msk [vmem:[#allocation2] sm:$0xff] %vm835_vm0, %v1108_v13  ;;  %v4152_v15 = vpack.c.bf16 %v1109_v12, %v1108_v13  ;;  %v960_v23 = vpop.f32.mrb[3].mxu0  ;;  %v1403_v13 = vld [vmem:[%s794_s27] sm:$0x1] }
 0x107   : > { %v1580_v3 = vld [vmem:[%s5589_s14] sm:$0xff]  ;;  %v1581_v23 = vld [vmem:[%s5589_s14 + $0x8] sm:$0xff] }
 0x108   : > { %4153 = vmatpush3.bf16.msra.mxu0 %v4152_v15 }
 0x109   : > { %4154 = vmatprep.subr.bf16.mxu0 %v4552_v14  ;;  %v3915_v24 = vpop.f32.mrb[4].mxu0 }
 0x10a   : > { %v970_v25 = vpop.f32.mrb[5].mxu0  ;;  %v4201_v24 = vpack.c.bf16 %v1581_v23, %v1580_v3 }
 0x10b   : > { %v1482_v25 = vrot.slane %v1403_v13, %v1080_v9 }
 0x10c   : > { %4157 = vmatpush3.bf16.msk.msra.mxu0 %vm4835_vm4, %v4155_v16  ;;  %vm1145_vm4 = vcmp.eq.s32.totalorder %v4940_v19, %v4942_v20 }
 0x10d   : > { %4158 = vmatprep.subr.bf16.mxu0 %v4552_v14  ;;  %v3918_v26 = vpop.f32.mrb[6].mxu0 }
 0x10e   : > { %v980_v27 = vpop.f32.mrb[7].mxu0  ;;  %v1664_v26 = vld [vmem:[%s5591_s16] sm:$0xff] }
 0x10f   : > { %v1665_v27 = vld [vmem:[%s5591_s16 + $0x8] sm:$0xff] }
 0x110   : > { %4161 = vmatpush3.bf16.msk.msra.mxu0 %vm4845_vm7, %v4155_v16 }
 0x111   : > { %4162 = vmatprep.subr.bf16.mxu0 %v4552_v14  ;;  %v3921_v28 = vpop.f32.mrb[8].mxu0 }
 0x112   : > { %v990_v30 = vpop.f32.mrb[9].mxu0 }
 0x113   : > { %v5046_v30 = vpack.c.bf16 %v1665_v27, %v1664_v26 }
 0x114   : > { %4165 = vmatpush3.bf16.msk.msra.mxu0 %vm4855_vm10, %v4155_v16  ;;  %vm1400_vm10 = vcmp.lt.s32.totalorder %v4940_v19, %v4752_v8 }
 0x115   : > { %4166 = vmatprep.subr.bf16.mxu0 %v4552_v14  ;;  %v3924_v31 = vpop.f32.mrb[10].mxu0  ;;  %v5005_v4 = vsel %vm1400_vm10, 1.0, %v4554_v29  ;;  %vm2819_vm10 = vcmask 259077  }
 0x116   : > { %v1000_v32 = vpop.f32.mrb[11].mxu0 }
 0x118   : > { %4169 = vmatpush3.bf16.msk.msra.mxu0 %vm4865_vm13, %v4155_v16  ;;  %vm1404_vm13 = vcmask 64512  }
 0x119   : > { %4170 = vmatprep.subr.bf16.mxu0 %v4552_v14  ;;  %v3927_v33 = vpop.f32.mrb[12].mxu0 }
 0x11a   : > { %v1010_v34 = vpop.f32.mrb[13].mxu0  ;;  %v1666_v33 = vld [vmem:[%s5591_s16 + $0x10] sm:$0xff] }
 0x11b   : > { %v1667_v34 = vld [vmem:[%s5591_s16 + $0x18] sm:$0xff] }
 0x11c   : > { %4173 = vmatpush3.bf16.msk.msra.mxu0 %vm4878_vm5, %v4155_v16  ;;  %vm2003_vm5 = vcmask 254977  }
 0x11d   : > { %4174 = vmatprep.subr.bf16.mxu0 %v4552_v14  ;;  %v3930_v35 = vpop.f32.mrb[14].mxu0 }
 0x11e   : > { %v1020_v36 = vpop.f32.mrb[15].mxu0  ;;  %v5056_v35 = vpack.c.bf16 %v1667_v34, %v1666_v33 }
 0x11f   : > { %v1582_v36 = vld [vmem:[%s5589_s14 + $0x10] sm:$0xff] }
 0x120   : > { %4177 = vmatpush3.bf16.msk.msra.mxu0 %vm4888_vm8, %v4155_v16  ;;  %v4204_v38 = vpack.c.bf16 %v1583_v37, %v1582_v36  ;;  %vm2207_vm8 = vcmask 256002  }
 0x121   : > { %4178 = vmatprep.subr.bf16.mxu0 %v4552_v14 }
 0x124   : > { %4181 = vmatpush3.bf16.msk.msra.mxu0 %vm4896_vm11, %v4155_v16  ;;  %vm2411_vm11 = vcmask 257027  }
 0x125   : > { %4182 = vmatprep.subr.bf16.mxu0 %v4552_v14 }
 0x127   : > { %3964 = vmatmul.mubr.msk.f32.vlgmr.msra.gmra.mrb[16].mxu0 %vm1145_vm4, %v4555_v22 }
 0x128   : > { %4184 = vmatpush3.bf16.msra.mxu0 %v4183_v21  ;;  %3974 = vmatprep.mubr.msk.f32.mxu0 %vm4553_vm1, %v4554_v29  ;;  %v4198_v21 = vpack.c.bf16 %v1498_v18, %v1497_v17  ;;  %v1671_v17 = vld [vmem:[%s5595_s20] sm:$0x1] }
 0x129   : > { %4185 = vmatprep.subr.bf16.mxu0 %v4552_v14  ;;  %v1669_v18 = vld [vmem:[%s5593_s18] sm:$0x1] }
 0x12a   : > { %4199 = vmatpush3.bf16.msra.mxu1 %v4198_v21 }
 0x12b   : > { %4206 = vmatprep.subr.bf16.mxu1 %v4552_v14 }
 0x12c   : > { %4187 = vmatpush3.bf16.msra.mxu0 %v4186_v40  ;;  %v3707_v40 = vld [vmem:[%s5588_s13] ss:$0 sm:$0xff] }
 0x12d   : > { %4188 = vmatprep.subr.bf16.mxu0 %v4552_v14 }
 0x12f   : > { %v1395_v60 = vpop.permute.xlu1 %1394 }
 0x130   : > { %vm1396_vm7 = vcmp.lt.s32.totalorder %v1388_v59, %v1395_v60 }
 0x131   : > { %v3704_v62 = vsel %vm1396_vm7, 1.0, %v4554_v29  ;;  %vm2672_vm7 = vcmask 1045509  }
 0x1fa   : > { %v1214_v43 = vpop.f32.mrb[16].mxu0 }
 0x1fb   : > { %v1218_v45 = vmul.f32 0.001953125, %v1214_v43  ;;  %v3965_v46 = vpop.f32.mrb[17].mxu0 }
 0x1fd   : > { %3975 = vmatmul.mubr.msk.f32.vlgmr.msra.gmra.mrb[18].mxu0 %vm835_vm0, %v1218_v45 }
 0x1fe   : > { %4190 = vmatpush3.bf16.msra.mxu0 %v4189_v44  ;;  %3985 = vmatprep.mubr.msk.f32.mxu0 %vm4553_vm1, %v4554_v29 }
 0x1ff   : > { %4191 = vmatprep.subr.bf16.mxu0 %v4552_v14 }
 0x202   : > { %4193 = vmatpush3.bf16.msra.mxu0 %v4192_v49 }
 0x203   : > { %3988 = vmatprep.subr.mxu0 %v4554_v29 }
 0x2d0   : > { %v1299_v52 = vpop.f32.mrb[18].mxu0 }
 0x2d1   : > { %v1300_v53 = vadd.f32 %v3699_v51, %v1299_v52  ;;  %v3976_v54 = vpop.f32.mrb[19].mxu0  ;;  %v3709_v51 = vld [vmem:[%s5590_s15] ss:$0 sm:$0xff] }
 0x2d3   : > { %v1303_v55 = vmax.f32 %v1300_v53, 0.0 }
 0x2d5   : > { %3986 = vmatmul.mubr.msk.f32.vlgmr.msra.gmra.mrb[20].mxu0 %vm835_vm0, %v1303_v55 }
 0x2d6   : > { %3990 = vmatprep.mubr.msk.f32.mxu0 %vm4553_vm1, %v4554_v29 }
 0x3a8   : > { %v1384_v63 = vpop.f32.mrb[20].mxu0 }
 0x3a9   : > { %v1385_v0 = vadd.f32 %v3701_v61, %v1384_v63  ;;  %v3987_v1 = vpop.f32.mrb[21].mxu0 }
 0x3ab   : > { %v1399_v2 = vmul.f32 %v3704_v62, %v1385_v0 }
 0x3ad   : > { %v1485_v5 = vsel %vm835_vm0, %v1399_v2, 0.0  ;;  %3989 = vmatpush3.msra.mxu0 %v1399_v2 }
 0x3ae   : > { %v1486_v6 = vrot.slane %v1485_v5, 4  ;;  %3991 = vmatmul.mubr.msk.f32.vlgmr.msra.gmra.mrb[22].mxu0 %vm1404_vm13, %v5005_v4  ;;  %4200 = vmatprep.subr.bf16.mxu0 %v4552_v14 }
 0x3af   : > { %4012 = vmatprep.mubr.msk.f32.mxu0 %vm4553_vm1, %v4554_v29  ;;  %4202 = vmatpush3.bf16.msra.mxu0 %v4201_v24 }
 0x3b0   : > { %v1487_v7 = vadd.f32 %v1486_v6, %v1485_v5  ;;  %4203 = vmatprep.subr.bf16.mxu0 %v4552_v14 }
 0x3b2   : > { %v1488_v10 = vrot.slane %v1487_v7, 2 }
 0x3b3   : > { %4205 = vmatpush3.bf16.msra.mxu0 %v4204_v38 }
 0x3b4   : > { %v1489_v11 = vadd.f32 %v1488_v10, %v1487_v7  ;;  %4212 = vmatprep.subr.bf16.mxu0 %v4552_v14 }
 0x3b6   : > { %v1490_v12 = vrot.slane %v1489_v11, 1 }
 0x3b8   : > { %v1491_v15 = vadd.f32 %v1490_v12, %v1489_v11  ;;  %v1670_v11 = vld [vmem:[%s5594_s19] sm:$0x1] }
 0x3ba   : > { %v1492_v16 = vadd.f32 %v1491_v15, %v1403_v13  ;;  %v1668_v13 = vld [vmem:[%s5592_s17] sm:$0x1] }
 0x3bc   : > { %1494 = vst.msk [vmem:[%s5610_s28] sm:$0x1] %vm1493_vm15, %v1492_v16  ;;  %s5657_s28 = smov 96  }
 0x481   : > { %v1474_v28 = vpop.f32.mrb[22].mxu0 }
 0x482   : > { %v1484_v31 = vadd.f32 %v1482_v25, %v1474_v28  ;;  %v3992_v32 = vpop.f32.mrb[23].mxu0 }
 0x484   : > { %4002 = vmatmul.mubr.msk.f32.vlgmr.msra.gmra.mrb[0].mxu1 %vm835_vm0, %v1484_v31 }
 0x485   : > { %4208 = vmatpush3.bf16.msra.mxu1 %v5046_v30  ;;  %4023 = vmatprep.mubr.msk.f32.mxu1 %vm4553_vm1, %v4554_v29 }
 0x486   : > { %4209 = vmatprep.subr.bf16.mxu1 %v4552_v14 }
 0x489   : > { %4211 = vmatpush3.bf16.msra.mxu1 %v5056_v35 }
 0x48a   : > { %4218 = vmatprep.subr.bf16.mxu1 %v4552_v14 }
 0x48c   : > { %4024 = vmatmul.mubr.f32.vlgmr.msra.gmra.mrb[2].mxu1 %v4554_v29 }
 0x48d   : > { %4220 = vmatpush3.bf16.msra.mxu1 %v5046_v30  ;;  %4045 = vmatprep.mubr.msk.f32.mxu1 %vm4553_vm1, %v4554_v29 }
 0x48e   : > { %4221 = vmatprep.subr.bf16.mxu1 %v4552_v14 }
 0x491   : > { %4223 = vmatpush3.bf16.msra.mxu1 %v5056_v35 }
 0x492   : > { %4230 = vmatprep.subr.bf16.mxu1 %v4552_v14 }
 0x557   : > { %v1575_v41 = vpop.f32.mrb[0].mxu1 }
 0x558   : > { %v1576_v42 = vadd.f32 %v3707_v40, %v1575_v41  ;;  %v4003_v43 = vpop.f32.mrb[1].mxu1  ;;  %v5117_v41 = vld [vmem:[%s5596_s21] ss:$0 sm:$0xff] }
 0x55a   : > { %v1579_v44 = vmax.f32 %v1576_v42, 0.0 }
 0x55c   : > { %4013 = vmatmul.mubr.msk.f32.vlgmr.msra.gmra.mrb[24].mxu0 %vm835_vm0, %v1579_v44 }
 0x55d   : > { %4214 = vmatpush3.bf16.msra.mxu0 %v5046_v30  ;;  %4034 = vmatprep.mubr.msk.f32.mxu0 %vm4553_vm1, %v4554_v29 }
 0x55e   : > { %4215 = vmatprep.subr.bf16.mxu0 %v4552_v14 }
 0x55f   : > { %v1760_v45 = vpop.f32.mrb[2].mxu1 }
 0x560   : > { %v1764_v46 = vsel %vm1674_vm2, %v1760_v45, 0.0  ;;  %v4025_v47 = vpop.f32.mrb[3].mxu1 }
 0x561   : > { %1765 = vadd.xlane.f32.xlu0 %v1764_v46  ;;  %4217 = vmatpush3.bf16.msra.mxu0 %v5056_v35 }
 0x562   : > { %4224 = vmatprep.subr.bf16.mxu0 %v4552_v14 }
 0x5ee   : > { %v1766_v48 = vpop.xlane.xlu0 %1765 }
 0x5ef   : > { %v1767_v49 = vmul.f32 0.0078125, %v1766_v48  ;;  %v5126_v48 = vld [vmem:[%s5597_s22] ss:$0 sm:$0xff] }
 0x5f1   : > { %v1768_v50 = vsub.f32 %v1760_v45, %v1767_v49 }
 0x5f3   : > { %v1769_v55 = vmul.f32 %v1768_v50, %v1768_v50 }
 0x5f5   : > { %v1770_v57 = vsel %vm1674_vm2, %v1769_v55, 0.0 }
 0x62f   : > { %v1660_v52 = vpop.f32.mrb[24].mxu0 }
 0x630   : > { %v5091_v53 = vadd.f32 %v3709_v51, %v1660_v52  ;;  %v4014_v54 = vpop.f32.mrb[25].mxu0 }
 0x632   : > { %v1675_v56 = vsel %vm1674_vm2, %v5091_v53, 0.0 }
 0x633   : > { %1676 = vadd.xlane.f32.xlu1 %v1675_v56 }
 0x637   : > { %1771 = vadd.xlane.f32.xlu1 %v1770_v57 }
 0x6c0   : > { %v1677_v58 = vpop.xlane.xlu1 %1676 }
 0x6c1   : > { %v1679_v59 = vmul.f32 0.0078125, %v1677_v58 }
 0x6c3   : > { %v1680_v60 = vsub.f32 %v5091_v53, %v1679_v59 }
 0x6c4   : > { %v1772_v63 = vpop.xlane.xlu1 %1771 }
 0x6c5   : > { %v1681_v61 = vmul.f32 %v1680_v60, %v1680_v60  ;;  %v1773_v0 = vmul.f32 0.0078125, %v1772_v63 }
 0x6c7   : > { %v1682_v62 = vsel %vm1674_vm2, %v1681_v61, 0.0  ;;  %v1774_v1 = vadd.f32 1e-05, %v1773_v0 }
 0x6c8   : > { %1683 = vadd.xlane.f32.xlu0 %v1682_v62  ;;  %v1860_v62 = vsel %vm1859_vm3, %v5091_v53, 0.0 }
 0x6c9   : > { %4341 = vrsqrt.f32 %v1774_v1 }
 0x6d3   : > { %v4342_v7 = vpop.eup %4341 }
 0x6d4   : > { %v1776_v10 = vmul.f32 %v4342_v7, %v1768_v50 }
 0x6d6   : > { %v1777_v15 = vmul.f32 %v1776_v10, %v1670_v11 }
 0x6d8   : > { %v1778_v3 = vadd.f32 %v1777_v15, %v1671_v17 }
 0x755   : > { %v1684_v2 = vpop.xlane.xlu0 %1683 }
 0x756   : > { %v1685_v5 = vmul.f32 0.0078125, %v1684_v2 }
 0x758   : > { %v1686_v6 = vadd.f32 1e-05, %v1685_v5 }
 0x75a   : > { %4343 = vrsqrt.f32 %v1686_v6 }
 0x764   : > { %v4344_v12 = vpop.eup %4343 }
 0x765   : > { %v1688_v16 = vmul.f32 %v4344_v12, %v1680_v60 }
 0x767   : > { %v1689_v21 = vmul.f32 %v1688_v16, %v1668_v13 }
 0x769   : > { %v1690_v23 = vadd.f32 %v1689_v21, %v1669_v18 }
 0x76b   : > { %v1779_v24 = vadd.f32 %v1778_v3, %v1690_v23 }
 0x76d   : > { %4345 = vtanh.f32 %v1779_v24  ;;  %v3711_v26 = vmul.f32 -1.442695, %v1779_v24 }
 0x76f   : > { %4347 = vpow2.f32 %v3711_v26 }
 0x777   : > { %v4346_v25 = vpop.eup %4345 }
 0x778   : > { %1789 = vrot.lane.b32.xlu0 %v4346_v25, %s5615_s0 }
 0x779   : > { %v4348_v27 = vpop.eup %4347 }
 0x77a   : > { %v1783_v28 = vadd.f32 1.0, %v4348_v27 }
 0x77c   : > { %4349 = vrcp.f32 %v1783_v28 }
 0x786   : > { %v4350_v31 = vpop.eup %4349 }
 0x787   : > { %v1787_v34 = vmul.f32 0.0, %v4350_v31 }
 0x7ea   : > { %v1790_v32 = vpop.permute.xlu0 %1789 }
 0x7eb   : > { %v1792_v33 = vmul.f32 %v4350_v31, %v1790_v32  ;;  %v1855_v32 = vld [vmem:[%s5594_s19] sm:$0x1] }
 0x7ed   : > { %1794 = vrot.lane.b32.xlu1 %v1792_v33, %s5613_s7 }
 0x85f   : > { %v1795_v36 = vpop.permute.xlu1 %1794 }
 0x860   : > { %v1797_v37 = vadd.f32 %v1795_v36, %v1787_v34  ;;  %v1856_v34 = vld [vmem:[%s5595_s20] sm:$0x1] }
 0x862   : > { %1799 = vrot.lane.b32.xlu1 %v1797_v37, %s5611_s4 }
 0x8d4   : > { %v1800_v38 = vpop.permute.xlu1 %1799 }
 0x8d5   : > { %v1802_v40 = vsel %vm1493_vm15, %v1800_v38, 0.0  ;;  %v5164_v38 = vld [vmem:[%s5593_s18] ss:$0 sm:$0xff] }
 0x8d6   : > { %1803 = vadd.xlane.f32.xlu0 %v1802_v40 }
 0x8ec   : > { %1825 = vrot.lane.b32.xlu0 %v5117_v41, %s5613_s7 }
 0x963   : > { %v1804_v42 = vpop.xlane.xlu0 %1803 }
 0x964   : > { %v1806_v43 = vmul.f32 0.03125, %v1804_v42 }
 0x966   : > { %v1807_v44 = vsub.f32 %v1797_v37, %v1806_v43 }
 0x967   : > { %v1826_v54 = vpop.permute.xlu0 %1825 }
 0x968   : > { %v1808_v45 = vmul.f32 %v1807_v44, %v1807_v44 }
 0x96a   : > { %1810 = vrot.lane.b32.xlu1 %v1808_v45, %s5611_s4  ;;  %s4559_s4 = smov [#allocation6]  }
 0x96b   : > { %s4459_s30 = sshll.u32 %s4559_s4, 4  ;;  %s4460_s30 = int_to_ptr.vmem [resolvable:$false] %s4459_s30 }
 0x9dc   : > { %v1811_v46 = vpop.permute.xlu1 %1810 }
 0x9dd   : > { %v1813_v47 = vsel %vm1493_vm15, %v1811_v46, 0.0 }
 0x9de   : > { %1814 = vadd.xlane.f32.xlu1 %v1813_v47 }
 0x9ef   : > { %1834 = vrot.lane.b32.xlu1 %v5126_v48, %s5613_s7 }
 0xa6b   : > { %v1815_v49 = vpop.xlane.xlu1 %1814 }
 0xa6c   : > { %v1816_v50 = vmul.f32 0.03125, %v1815_v49 }
 0xa6e   : > { %v1817_v51 = vadd.f32 1e-05, %v1816_v50 }
 0xa6f   : > { %v1835_v56 = vpop.permute.xlu1 %1834 }
 0xa70   : > { %4351 = vrsqrt.f32 %v1817_v51 }
 0xa7a   : > { %v4352_v52 = vpop.eup %4351 }
 0xa7b   : > { %v1819_v55 = vmul.f32 %v4352_v52, %v1807_v44 }
 0xa7d   : > { %v1828_v57 = vmul.f32 %v1826_v54, %v1819_v55 }
 0xa7f   : > { %v5130_v58 = vadd.f32 %v1835_v56, %v1828_v57 }
 0xa81   : > { %4353 = vtanh.f32 %v5130_v58  ;;  %v1986_v54 = vrot.slane %v5130_v58, 7 }
 0xa8b   : > { %v4354_v59 = vpop.eup %4353 }
 0xa8c   : > { %1840 = vrot.lane.b32.xlu0 %v4354_v59, %s5615_s0 }
 0xafe   : > { %v1841_v60 = vpop.permute.xlu0 %1840 }
 0xaff   : > { %v1843_v61 = vmul.f32 %v4350_v31, %v1841_v60  ;;  %v5152_v31 = vld [vmem:[%s5592_s17] ss:$0 sm:$0xff] }
 0xb01   : > { %1845 = vrot.lane.b32.xlu0 %v1843_v61, %s5613_s7 }
 0xb20   : > { %1861 = vadd.xlane.f32.xlu0 %v1860_v62 }
 0xb73   : > { %v1846_v63 = vpop.permute.xlu0 %1845 }
 0xb74   : > { %1848 = vst.msk [vmem:[#allocation3] sm:$0x1] %vm1493_vm15, %v1846_v63  ;;  %4035 = vmatmul.mubr.msk.f32.vlgmr.msra.gmra.mrb[26].mxu0 %vm835_vm0, %v1846_v63  ;;  %vm2876_vm15 = vcmask 1046534  }
 0xb75   : > { %4226 = vmatpush3.bf16.msra.mxu0 %v5046_v30  ;;  %4056 = vmatprep.mubr.msk.f32.mxu0 %vm4553_vm1, %v4554_v29 }
 0xb76   : > { %4227 = vmatprep.subr.bf16.mxu0 %v4552_v14 }
 0xb79   : > { %4229 = vmatpush3.bf16.msra.mxu0 %v5056_v35 }
 0xb7a   : > { %4236 = vmatprep.subr.bf16.mxu0 %v4552_v14 }
 0xbad   : > { %v1862_v0 = vpop.xlane.xlu0 %1861 }
 0xbae   : > { %v1863_v1 = vmul.f32 0.0078125, %v1862_v0 }
 0xbb0   : > { %v1864_v2 = vsub.f32 %v5091_v53, %v1863_v1 }
 0xbb2   : > { %v1865_v10 = vmul.f32 %v1864_v2, %v1864_v2 }
 0xbb4   : > { %v1866_v11 = vsel %vm1859_vm3, %v1865_v10, 0.0  ;;  %vm5354_vm3 = vmpackc.low %vm835_vm0, %vm835_vm0 }
 0xc47   : > { %v1955_v5 = vpop.f32.mrb[26].mxu0 }
 0xc48   : > { %v4036_v6 = vpop.f32.mrb[27].mxu0  ;;  %v1959_v7 = vsel %vm1674_vm2, %v1955_v5, 0.0 }
 0xc49   : > { %1960 = vadd.xlane.f32.xlu1 %v1959_v7 }
 0xc4d   : > { %1867 = vadd.xlane.f32.xlu1 %v1866_v11 }
 0xcd6   : > { %v1961_v12 = vpop.xlane.xlu1 %1960 }
 0xcd7   : > { %v1962_v13 = vmul.f32 0.0078125, %v1961_v12 }
 0xcd9   : > { %v1963_v15 = vsub.f32 %v1955_v5, %v1962_v13 }
 0xcda   : > { %v1868_v18 = vpop.xlane.xlu1 %1867 }
 0xcdb   : > { %v1964_v16 = vmul.f32 %v1963_v15, %v1963_v15  ;;  %v1869_v21 = vmul.f32 0.0078125, %v1868_v18 }
 0xcdd   : > { %v1965_v17 = vsel %vm1674_vm2, %v1964_v16, 0.0  ;;  %v1870_v3 = vadd.f32 1e-05, %v1869_v21 }
 0xcde   : > { %1966 = vadd.xlane.f32.xlu0 %v1965_v17 }
 0xcdf   : > { %4355 = vrsqrt.f32 %v1870_v3  ;;  %v2061_v3 = vsel %vm2060_vm6, %v5091_v53, 0.0 }
 0xce9   : > { %v4356_v26 = vpop.eup %4355 }
 0xcea   : > { %v1872_v27 = vmul.f32 %v4356_v26, %v1864_v2 }
 0xcec   : > { %v1879_v36 = vmul.f32 %v5152_v31, %v1872_v27 }
 0xcee   : > { %v1886_v42 = vadd.f32 %v5164_v38, %v1879_v36 }
 0xd6b   : > { %v1967_v23 = vpop.xlane.xlu0 %1966 }
 0xd6c   : > { %v1968_v24 = vmul.f32 0.0078125, %v1967_v23 }
 0xd6e   : > { %v1969_v25 = vadd.f32 1e-05, %v1968_v24 }
 0xd70   : > { %4357 = vrsqrt.f32 %v1969_v25 }
 0xd7a   : > { %v4358_v28 = vpop.eup %4357 }
 0xd7b   : > { %v1971_v33 = vmul.f32 %v4358_v28, %v1963_v15 }
 0xd7d   : > { %v1972_v37 = vmul.f32 %v1971_v33, %v1855_v32 }
 0xd7f   : > { %v1973_v40 = vadd.f32 %v1972_v37, %v1856_v34 }
 0xd81   : > { %v1975_v43 = vrot.slane %v1973_v40, 7 }
 0xd83   : > { %v1977_v44 = vadd.f32 %v1975_v43, %v1886_v42 }
 0xd85   : > { %4359 = vtanh.f32 %v1977_v44  ;;  %v3717_v46 = vmul.f32 -1.442695, %v1977_v44 }
 0xd87   : > { %4361 = vpow2.f32 %v3717_v46 }
 0xd8f   : > { %v4360_v45 = vpop.eup %4359 }
 0xd90   : > { %1990 = vrot.lane.b32.xlu0 %v4360_v45, %s5615_s0 }
 0xd91   : > { %v4362_v47 = vpop.eup %4361 }
 0xd92   : > { %v1981_v49 = vadd.f32 1.0, %v4362_v47 }
 0xd94   : > { %4363 = vrcp.f32 %v1981_v49 }
 0xd9e   : > { %v4364_v50 = vpop.eup %4363 }
 0xd9f   : > { %v1988_v55 = vmul.f32 %v4364_v50, %v1986_v54 }
 0xe02   : > { %v1991_v51 = vpop.permute.xlu0 %1990 }
 0xe03   : > { %v1993_v52 = vmul.f32 %v4364_v50, %v1991_v51 }
 0xe05   : > { %1995 = vrot.lane.b32.xlu1 %v1993_v52, %s5613_s7 }
 0xe77   : > { %v1996_v56 = vpop.permute.xlu1 %1995 }
 0xe78   : > { %v1998_v57 = vadd.f32 %v1996_v56, %v1988_v55  ;;  %v2056_v55 = vld [vmem:[%s5594_s19] sm:$0x1] }
 0xe7a   : > { %2000 = vrot.lane.b32.xlu1 %v1998_v57, %s5657_s28 }
 0xeec   : > { %v2001_v59 = vpop.permute.xlu1 %2000 }
 0xeed   : > { %v2004_v60 = vsel %vm2003_vm5, %v2001_v59, 0.0 }
 0xeee   : > { %2005 = vadd.xlane.f32.xlu0 %v2004_v60 }
 0xf04   : > { %2026 = vrot.lane.b32.xlu0 %v5117_v41, %s5613_s7 }
 0xf7b   : > { %v2006_v61 = vpop.xlane.xlu0 %2005 }
 0xf7c   : > { %v2007_v62 = vmul.f32 0.03125, %v2006_v61 }
 0xf7e   : > { %v2008_v63 = vsub.f32 %v1998_v57, %v2007_v62  ;;  %v2057_v57 = vld [vmem:[%s5595_s20] sm:$0x1] }
 0xf7f   : > { %v2027_v10 = vpop.permute.xlu0 %2026 }
 0xf80   : > { %v2009_v0 = vmul.f32 %v2008_v63, %v2008_v63 }
 0xf82   : > { %2011 = vrot.lane.b32.xlu1 %v2009_v0, %s5657_s28 }
 0xff4   : > { %v2012_v58 = vpop.permute.xlu1 %2011 }
 0xff5   : > { %v2014_v1 = vsel %vm2003_vm5, %v2012_v58, 0.0 }
 0xff6   : > { %2015 = vadd.xlane.f32.xlu1 %v2014_v1 }
0x1007   : > { %2035 = vrot.lane.b32.xlu1 %v5126_v48, %s5613_s7 }
0x1083   : > { %v2016_v2 = vpop.xlane.xlu1 %2015 }
0x1084   : > { %v2017_v5 = vmul.f32 0.03125, %v2016_v2 }
0x1086   : > { %v2018_v6 = vadd.f32 1e-05, %v2017_v5 }
0x1087   : > { %v2036_v12 = vpop.permute.xlu1 %2035 }
0x1088   : > { %4365 = vrsqrt.f32 %v2018_v6 }
0x1092   : > { %v4366_v7 = vpop.eup %4365 }
0x1093   : > { %v2020_v11 = vmul.f32 %v4366_v7, %v2008_v63 }
0x1095   : > { %v2029_v13 = vmul.f32 %v2027_v10, %v2020_v11 }
0x1097   : > { %v5178_v15 = vadd.f32 %v2036_v12, %v2029_v13 }
0x1099   : > { %4367 = vtanh.f32 %v5178_v15  ;;  %v2190_v11 = vrot.slane %v5178_v15, 7 }
0x10a3   : > { %v4368_v16 = vpop.eup %4367 }
0x10a4   : > { %2041 = vrot.lane.b32.xlu0 %v4368_v16, %s5615_s0 }
0x1116   : > { %v2042_v17 = vpop.permute.xlu0 %2041 }
0x1117   : > { %v5182_v18 = vmul.f32 %v4364_v50, %v2042_v17 }
0x1119   : > { %v2088_v21 = vrot.slane %v5182_v18, 1 }
0x111b   : > { %2089 = vrot.lane.b32.xlu0 %v2088_v21, %s5613_s7 }
0x113a   : > { %2062 = vadd.xlane.f32.xlu0 %v2061_v3 }
0x118d   : > { %v2090_v23 = vpop.permute.xlu0 %2089 }
0x118e   : > { %4046 = vmatmul.mubr.msk.f32.vlgmr.msra.gmra.mrb[4].mxu1 %vm835_vm0, %v2090_v23 }
0x118f   : > { %4232 = vmatpush3.bf16.msra.mxu1 %v5046_v30  ;;  %4067 = vmatprep.mubr.msk.f32.mxu1 %vm4553_vm1, %v4554_v29 }
0x1190   : > { %4233 = vmatprep.subr.bf16.mxu1 %v4552_v14 }
0x1193   : > { %4235 = vmatpush3.bf16.msra.mxu1 %v5056_v35 }
0x1194   : > { %4242 = vmatprep.subr.bf16.mxu1 %v4552_v14 }
0x11c7   : > { %v2063_v24 = vpop.xlane.xlu0 %2062 }
0x11c8   : > { %v2064_v25 = vmul.f32 0.0078125, %v2063_v24 }
0x11ca   : > { %v2065_v26 = vsub.f32 %v5091_v53, %v2064_v25 }
0x11cc   : > { %v2066_v33 = vmul.f32 %v2065_v26, %v2065_v26 }
0x11ce   : > { %v2067_v34 = vsel %vm2060_vm6, %v2066_v33, 0.0  ;;  %vm3023_vm6 = vcmask 260102  }
0x1261   : > { %v2159_v27 = vpop.f32.mrb[4].mxu1 }
0x1262   : > { %v4047_v28 = vpop.f32.mrb[5].mxu1  ;;  %v2163_v32 = vsel %vm1674_vm2, %v2159_v27, 0.0 }
0x1263   : > { %2164 = vadd.xlane.f32.xlu1 %v2163_v32 }
0x1267   : > { %2068 = vadd.xlane.f32.xlu1 %v2067_v34 }
0x12f0   : > { %v2165_v36 = vpop.xlane.xlu1 %2164 }
0x12f1   : > { %v2166_v37 = vmul.f32 0.0078125, %v2165_v36 }
0x12f3   : > { %v2167_v40 = vsub.f32 %v2159_v27, %v2166_v37 }
0x12f4   : > { %v2069_v44 = vpop.xlane.xlu1 %2068 }
0x12f5   : > { %v2168_v42 = vmul.f32 %v2167_v40, %v2167_v40  ;;  %v2070_v45 = vmul.f32 0.0078125, %v2069_v44 }
0x12f7   : > { %v2169_v43 = vsel %vm1674_vm2, %v2168_v42, 0.0  ;;  %v2071_v46 = vadd.f32 1e-05, %v2070_v45 }
0x12f8   : > { %2170 = vadd.xlane.f32.xlu0 %v2169_v43 }
0x12f9   : > { %4369 = vrsqrt.f32 %v2071_v46 }
0x1303   : > { %v4370_v51 = vpop.eup %4369 }
0x1304   : > { %v2073_v52 = vmul.f32 %v4370_v51, %v2065_v26 }
0x1306   : > { %v2080_v59 = vmul.f32 %v5152_v31, %v2073_v52 }
0x1308   : > { %v2087_v62 = vadd.f32 %v5164_v38, %v2080_v59 }
0x1385   : > { %v2171_v47 = vpop.xlane.xlu0 %2170 }
0x1386   : > { %v2172_v49 = vmul.f32 0.0078125, %v2171_v47  ;;  %v2265_v47 = vsel %vm2264_vm9, %v5091_v53, 0.0 }
0x1388   : > { %v2173_v50 = vadd.f32 1e-05, %v2172_v49 }
0x138a   : > { %4371 = vrsqrt.f32 %v2173_v50 }
0x1394   : > { %v4372_v54 = vpop.eup %4371 }
0x1395   : > { %v2175_v56 = vmul.f32 %v4372_v54, %v2167_v40 }
0x1397   : > { %v2176_v60 = vmul.f32 %v2175_v56, %v2056_v55 }
0x1399   : > { %v2177_v61 = vadd.f32 %v2176_v60, %v2057_v57 }
0x139b   : > { %v2179_v63 = vrot.slane %v2177_v61, 6 }
0x139d   : > { %v2181_v0 = vadd.f32 %v2179_v63, %v2087_v62 }
0x139f   : > { %4373 = vtanh.f32 %v2181_v0  ;;  %v3723_v1 = vmul.f32 -1.442695, %v2181_v0 }
0x13a1   : > { %4375 = vpow2.f32 %v3723_v1 }
0x13a9   : > { %v4374_v58 = vpop.eup %4373 }
0x13aa   : > { %2194 = vrot.lane.b32.xlu0 %v4374_v58, %s5615_s0 }
0x13ab   : > { %v4376_v2 = vpop.eup %4375 }
0x13ac   : > { %v2185_v5 = vadd.f32 1.0, %v4376_v2 }
0x13ae   : > { %4377 = vrcp.f32 %v2185_v5 }
0x13b8   : > { %v4378_v6 = vpop.eup %4377 }
0x13b9   : > { %v2192_v12 = vmul.f32 %v4378_v6, %v2190_v11  ;;  %v2260_v11 = vld [vmem:[%s5594_s19] sm:$0x1] }
0x141c   : > { %v2195_v7 = vpop.permute.xlu0 %2194 }
0x141d   : > { %v2197_v10 = vmul.f32 %v4378_v6, %v2195_v7 }
0x141f   : > { %2199 = vrot.lane.b32.xlu1 %v2197_v10, %s5613_s7 }
0x1491   : > { %v2200_v13 = vpop.permute.xlu1 %2199 }
0x1492   : > { %v2202_v16 = vadd.f32 %v2200_v13, %v2192_v12  ;;  %v2261_v13 = vld [vmem:[%s5595_s20] sm:$0x1] }
0x1494   : > { %2204 = vrot.lane.b32.xlu1 %v2202_v16, %s5657_s28 }
0x1506   : > { %v2205_v17 = vpop.permute.xlu1 %2204 }
0x1507   : > { %v2208_v21 = vsel %vm2207_vm8, %v2205_v17, 0.0 }
0x1508   : > { %2209 = vadd.xlane.f32.xlu0 %v2208_v21 }
0x151e   : > { %2230 = vrot.lane.b32.xlu0 %v5117_v41, %s5613_s7 }
0x1595   : > { %v2210_v3 = vpop.xlane.xlu0 %2209 }
0x1596   : > { %v2211_v23 = vmul.f32 0.03125, %v2210_v3 }
0x1598   : > { %v2212_v24 = vsub.f32 %v2202_v16, %v2211_v23 }
0x1599   : > { %v2231_v34 = vpop.permute.xlu0 %2230 }
0x159a   : > { %v2213_v25 = vmul.f32 %v2212_v24, %v2212_v24 }
0x159c   : > { %2215 = vrot.lane.b32.xlu1 %v2213_v25, %s5657_s28 }
0x160e   : > { %v2216_v15 = vpop.permute.xlu1 %2215 }
0x160f   : > { %v2218_v26 = vsel %vm2207_vm8, %v2216_v15, 0.0 }
0x1610   : > { %2219 = vadd.xlane.f32.xlu1 %v2218_v26 }
0x1621   : > { %2239 = vrot.lane.b32.xlu1 %v5126_v48, %s5613_s7 }
0x169d   : > { %v2220_v27 = vpop.xlane.xlu1 %2219 }
0x169e   : > { %v2221_v28 = vmul.f32 0.03125, %v2220_v27 }
0x16a0   : > { %v2222_v32 = vadd.f32 1e-05, %v2221_v28 }
0x16a1   : > { %v2240_v37 = vpop.permute.xlu1 %2239 }
0x16a2   : > { %4379 = vrsqrt.f32 %v2222_v32 }
0x16ac   : > { %v4380_v33 = vpop.eup %4379 }
0x16ad   : > { %v2224_v36 = vmul.f32 %v4380_v33, %v2212_v24 }
0x16af   : > { %v2233_v40 = vmul.f32 %v2231_v34, %v2224_v36 }
0x16b1   : > { %v5218_v42 = vadd.f32 %v2240_v37, %v2233_v40 }
0x16b3   : > { %4381 = vtanh.f32 %v5218_v42  ;;  %v2394_v34 = vrot.slane %v5218_v42, 7 }
0x16bd   : > { %v4382_v43 = vpop.eup %4381 }
0x16be   : > { %2245 = vrot.lane.b32.xlu0 %v4382_v43, %s5615_s0 }
0x1730   : > { %v2246_v44 = vpop.permute.xlu0 %2245 }
0x1731   : > { %v5222_v45 = vmul.f32 %v4378_v6, %v2246_v44 }
0x1733   : > { %v2292_v46 = vrot.slane %v5222_v45, 2 }
0x1735   : > { %2293 = vrot.lane.b32.xlu0 %v2292_v46, %s5613_s7 }
0x1754   : > { %2266 = vadd.xlane.f32.xlu0 %v2265_v47 }
0x17a7   : > { %v2294_v49 = vpop.permute.xlu0 %2293 }
0x17a8   : > { %4057 = vmatmul.mubr.msk.f32.vlgmr.msra.gmra.mrb[28].mxu0 %vm835_vm0, %v2294_v49 }
0x17a9   : > { %4238 = vmatpush3.bf16.msra.mxu0 %v5046_v30  ;;  %4078 = vmatprep.mubr.msk.f32.mxu0 %vm4553_vm1, %v4554_v29 }
0x17aa   : > { %4239 = vmatprep.subr.bf16.mxu0 %v4552_v14 }
0x17ad   : > { %4241 = vmatpush3.bf16.msra.mxu0 %v5056_v35 }
0x17ae   : > { %4248 = vmatprep.subr.bf16.mxu0 %v4552_v14 }
0x17e1   : > { %v2267_v50 = vpop.xlane.xlu0 %2266 }
0x17e2   : > { %v2268_v51 = vmul.f32 0.0078125, %v2267_v50 }
0x17e4   : > { %v2269_v52 = vsub.f32 %v5091_v53, %v2268_v51 }
0x17e6   : > { %v2270_v57 = vmul.f32 %v2269_v52, %v2269_v52 }
0x17e8   : > { %v2271_v30 = vsel %vm2264_vm9, %v2270_v57, 0.0  ;;  %vm3080_vm9 = vcmask 1047559  }
0x187b   : > { %v2363_v54 = vpop.f32.mrb[28].mxu0 }
0x187c   : > { %v4058_v55 = vpop.f32.mrb[29].mxu0  ;;  %v2367_v56 = vsel %vm1674_vm2, %v2363_v54, 0.0 }
0x187d   : > { %2368 = vadd.xlane.f32.xlu1 %v2367_v56 }
0x1881   : > { %2272 = vadd.xlane.f32.xlu1 %v2271_v30 }
0x190a   : > { %v2369_v59 = vpop.xlane.xlu1 %2368 }
0x190b   : > { %v2370_v60 = vmul.f32 0.0078125, %v2369_v59 }
0x190d   : > { %v2371_v61 = vsub.f32 %v2363_v54, %v2370_v60 }
0x190e   : > { %v2273_v63 = vpop.xlane.xlu1 %2272 }
0x190f   : > { %v2372_v62 = vmul.f32 %v2371_v61, %v2371_v61  ;;  %v2274_v0 = vmul.f32 0.0078125, %v2273_v63 }
0x1911   : > { %v2373_v35 = vsel %vm1674_vm2, %v2372_v62, 0.0  ;;  %v2275_v58 = vadd.f32 1e-05, %v2274_v0 }
0x1912   : > { %2374 = vadd.xlane.f32.xlu0 %v2373_v35 }
0x1913   : > { %4383 = vrsqrt.f32 %v2275_v58  ;;  %v2469_v58 = vsel %vm2468_vm12, %v5091_v53, 0.0 }
0x191d   : > { %v4384_v6 = vpop.eup %4383 }
0x191e   : > { %v2277_v7 = vmul.f32 %v4384_v6, %v2269_v52 }
0x1920   : > { %v2284_v16 = vmul.f32 %v5152_v31, %v2277_v7 }
0x1922   : > { %v2291_v3 = vadd.f32 %v5164_v38, %v2284_v16 }
0x199f   : > { %v2375_v1 = vpop.xlane.xlu0 %2374 }
0x19a0   : > { %v2376_v2 = vmul.f32 0.0078125, %v2375_v1 }
0x19a2   : > { %v2377_v5 = vadd.f32 1e-05, %v2376_v2 }
0x19a4   : > { %4385 = vrsqrt.f32 %v2377_v5 }
0x19ae   : > { %v4386_v10 = vpop.eup %4385 }
0x19af   : > { %v2379_v12 = vmul.f32 %v4386_v10, %v2371_v61 }
0x19b1   : > { %v2380_v17 = vmul.f32 %v2379_v12, %v2260_v11 }
0x19b3   : > { %v2381_v21 = vadd.f32 %v2380_v17, %v2261_v13 }
0x19b5   : > { %v2383_v23 = vrot.slane %v2381_v21, 5 }
0x19b7   : > { %v2385_v24 = vadd.f32 %v2383_v23, %v2291_v3 }
0x19b9   : > { %4387 = vtanh.f32 %v2385_v24  ;;  %v3729_v15 = vmul.f32 -1.442695, %v2385_v24 }
0x19bb   : > { %4389 = vpow2.f32 %v3729_v15 }
0x19c3   : > { %v4388_v25 = vpop.eup %4387 }
0x19c4   : > { %2398 = vrot.lane.b32.xlu0 %v4388_v25, %s5615_s0 }
0x19c5   : > { %v4390_v26 = vpop.eup %4389 }
0x19c6   : > { %v2389_v27 = vadd.f32 1.0, %v4390_v26 }
0x19c8   : > { %4391 = vrcp.f32 %v2389_v27 }
0x19d2   : > { %v4392_v28 = vpop.eup %4391 }
0x19d3   : > { %v2396_v36 = vmul.f32 %v4392_v28, %v2394_v34 }
0x1a36   : > { %v2399_v32 = vpop.permute.xlu0 %2398 }
0x1a37   : > { %v2401_v33 = vmul.f32 %v4392_v28, %v2399_v32 }
0x1a39   : > { %2403 = vrot.lane.b32.xlu1 %v2401_v33, %s5613_s7 }
0x1aab   : > { %v2404_v37 = vpop.permute.xlu1 %2403 }
0x1aac   : > { %v2406_v40 = vadd.f32 %v2404_v37, %v2396_v36  ;;  %v2464_v36 = vld [vmem:[%s5594_s19] sm:$0x1] }
0x1aae   : > { %2408 = vrot.lane.b32.xlu1 %v2406_v40, %s5657_s28 }
0x1b20   : > { %v2409_v43 = vpop.permute.xlu1 %2408 }
0x1b21   : > { %v2412_v44 = vsel %vm2411_vm11, %v2409_v43, 0.0 }
0x1b22   : > { %2413 = vadd.xlane.f32.xlu0 %v2412_v44 }
0x1b38   : > { %2434 = vrot.lane.b32.xlu0 %v5117_v41, %s5613_s7 }
0x1baf   : > { %v2414_v46 = vpop.xlane.xlu0 %2413 }
0x1bb0   : > { %v2415_v47 = vmul.f32 0.03125, %v2414_v46 }
0x1bb2   : > { %v2416_v49 = vsub.f32 %v2406_v40, %v2415_v47  ;;  %v2465_v40 = vld [vmem:[%s5595_s20] sm:$0x1] }
0x1bb3   : > { %v2435_v57 = vpop.permute.xlu0 %2434 }
0x1bb4   : > { %v2417_v50 = vmul.f32 %v2416_v49, %v2416_v49 }
0x1bb6   : > { %2419 = vrot.lane.b32.xlu1 %v2417_v50, %s5657_s28 }
0x1c28   : > { %v2420_v42 = vpop.permute.xlu1 %2419 }
0x1c29   : > { %v2422_v51 = vsel %vm2411_vm11, %v2420_v42, 0.0 }
0x1c2a   : > { %2423 = vadd.xlane.f32.xlu1 %v2422_v51 }
0x1c3b   : > { %2443 = vrot.lane.b32.xlu1 %v5126_v48, %s5613_s7 }
0x1cb7   : > { %v2424_v52 = vpop.xlane.xlu1 %2423 }
0x1cb8   : > { %v2425_v54 = vmul.f32 0.03125, %v2424_v52 }
0x1cba   : > { %v2426_v55 = vadd.f32 1e-05, %v2425_v54 }
0x1cbb   : > { %v2444_v59 = vpop.permute.xlu1 %2443 }
0x1cbc   : > { %4393 = vrsqrt.f32 %v2426_v55 }
0x1cc6   : > { %v4394_v56 = vpop.eup %4393 }
0x1cc7   : > { %v2428_v30 = vmul.f32 %v4394_v56, %v2416_v49 }
0x1cc9   : > { %v2437_v60 = vmul.f32 %v2435_v57, %v2428_v30 }
0x1ccb   : > { %v5258_v61 = vadd.f32 %v2444_v59, %v2437_v60 }
0x1ccd   : > { %4395 = vtanh.f32 %v5258_v61  ;;  %v2598_v30 = vrot.slane %v5258_v61, 7 }
0x1cd7   : > { %v4396_v62 = vpop.eup %4395 }
0x1cd8   : > { %2449 = vrot.lane.b32.xlu0 %v4396_v62, %s5615_s0 }
0x1d4a   : > { %v2450_v35 = vpop.permute.xlu0 %2449 }
0x1d4b   : > { %v5262_v63 = vmul.f32 %v4392_v28, %v2450_v35 }
0x1d4d   : > { %v2496_v0 = vrot.slane %v5262_v63, 3 }
0x1d4f   : > { %2497 = vrot.lane.b32.xlu0 %v2496_v0, %s5613_s7 }
0x1d6e   : > { %2470 = vadd.xlane.f32.xlu0 %v2469_v58 }
0x1dc1   : > { %v2498_v1 = vpop.permute.xlu0 %2497 }
0x1dc2   : > { %4068 = vmatmul.mubr.msk.f32.vlgmr.msra.gmra.mrb[6].mxu1 %vm835_vm0, %v2498_v1 }
0x1dc3   : > { %4089 = vmatprep.mubr.msk.f32.mxu1 %vm4553_vm1, %v4554_v29 }
0x1dfb   : > { %v2471_v2 = vpop.xlane.xlu0 %2470 }
0x1dfc   : > { %v2472_v5 = vmul.f32 0.0078125, %v2471_v2 }
0x1dfe   : > { %v2473_v6 = vsub.f32 %v5091_v53, %v2472_v5 }
0x1e00   : > { %v2474_v12 = vmul.f32 %v2473_v6, %v2473_v6 }
0x1e02   : > { %v2475_v13 = vsel %vm2468_vm12, %v2474_v12, 0.0 }
0x1e95   : > { %v2567_v7 = vpop.f32.mrb[6].mxu1 }
0x1e96   : > { %v4069_v10 = vpop.f32.mrb[7].mxu1  ;;  %v2571_v11 = vsel %vm1674_vm2, %v2567_v7, 0.0 }
0x1e97   : > { %2572 = vadd.xlane.f32.xlu1 %v2571_v11 }
0x1e9b   : > { %2476 = vadd.xlane.f32.xlu1 %v2475_v13 }
0x1f24   : > { %v2573_v16 = vpop.xlane.xlu1 %2572 }
0x1f25   : > { %v2574_v17 = vmul.f32 0.0078125, %v2573_v16 }
0x1f27   : > { %v2575_v21 = vsub.f32 %v2567_v7, %v2574_v17 }
0x1f28   : > { %v2477_v24 = vpop.xlane.xlu1 %2476 }
0x1f29   : > { %v2576_v3 = vmul.f32 %v2575_v21, %v2575_v21  ;;  %v2478_v25 = vmul.f32 0.0078125, %v2477_v24 }
0x1f2b   : > { %v2577_v23 = vsel %vm1674_vm2, %v2576_v3, 0.0  ;;  %v2479_v15 = vadd.f32 1e-05, %v2478_v25 }
0x1f2c   : > { %2578 = vadd.xlane.f32.xlu0 %v2577_v23 }
0x1f2d   : > { %4397 = vrsqrt.f32 %v2479_v15 }
0x1f37   : > { %v4398_v32 = vpop.eup %4397 }
0x1f38   : > { %v2481_v33 = vmul.f32 %v4398_v32, %v2473_v6 }
0x1f3a   : > { %v2488_v43 = vmul.f32 %v5152_v31, %v2481_v33 }
0x1f3c   : > { %v2495_v47 = vadd.f32 %v5164_v38, %v2488_v43 }
0x1fb9   : > { %v2579_v26 = vpop.xlane.xlu0 %2578 }
0x1fba   : > { %v2580_v27 = vmul.f32 0.0078125, %v2579_v26  ;;  %v2673_v26 = vsel %vm2672_vm7, %v5091_v53, 0.0 }
0x1fbc   : > { %v2581_v28 = vadd.f32 1e-05, %v2580_v27 }
0x1fbe   : > { %4399 = vrsqrt.f32 %v2581_v28 }
0x1fc8   : > { %v4400_v34 = vpop.eup %4399 }
0x1fc9   : > { %v2583_v37 = vmul.f32 %v4400_v34, %v2575_v21 }
0x1fcb   : > { %v2584_v44 = vmul.f32 %v2583_v37, %v2464_v36 }
0x1fcd   : > { %v2585_v46 = vadd.f32 %v2584_v44, %v2465_v40 }
0x1fcf   : > { %v2587_v49 = vrot.slane %v2585_v46, 4 }
0x1fd1   : > { %v2589_v50 = vadd.f32 %v2587_v49, %v2495_v47 }
0x1fd3   : > { %4401 = vtanh.f32 %v2589_v50  ;;  %v3735_v51 = vmul.f32 -1.442695, %v2589_v50 }
0x1fd5   : > { %4403 = vpow2.f32 %v3735_v51 }
0x1fdd   : > { %v4402_v42 = vpop.eup %4401 }
0x1fde   : > { %2602 = vrot.lane.b32.xlu0 %v4402_v42, %s5615_s0 }
0x1fdf   : > { %v4404_v52 = vpop.eup %4403 }
0x1fe0   : > { %v2593_v54 = vadd.f32 1.0, %v4404_v52 }
0x1fe2   : > { %4405 = vrcp.f32 %v2593_v54 }
0x1fec   : > { %v4406_v55 = vpop.eup %4405 }
0x1fed   : > { %v2600_v59 = vmul.f32 %v4406_v55, %v2598_v30 }
0x2050   : > { %v2603_v56 = vpop.permute.xlu0 %2602 }
0x2051   : > { %v2605_v57 = vmul.f32 %v4406_v55, %v2603_v56 }
0x2053   : > { %2607 = vrot.lane.b32.xlu1 %v2605_v57, %s5613_s7 }
0x20c5   : > { %v2608_v60 = vpop.permute.xlu1 %2607 }
0x20c6   : > { %v2610_v62 = vadd.f32 %v2608_v60, %v2600_v59  ;;  %v2668_v60 = vld [vmem:[%s5594_s19] sm:$0x1] }
0x20c8   : > { %2612 = vrot.lane.b32.xlu1 %v2610_v62, %s5657_s28 }
0x213a   : > { %v2613_v35 = vpop.permute.xlu1 %2612 }
0x213b   : > { %v2616_v0 = vsel %vm2615_vm14, %v2613_v35, 0.0  ;;  %v2669_v35 = vld [vmem:[%s5595_s20] sm:$0x1] }
0x213c   : > { %2617 = vadd.xlane.f32.xlu0 %v2616_v0 }
0x2152   : > { %2638 = vrot.lane.b32.xlu0 %v5117_v41, %s5613_s7 }
0x21c9   : > { %v2618_v58 = vpop.xlane.xlu0 %2617 }
0x21ca   : > { %v2619_v1 = vmul.f32 0.03125, %v2618_v58 }
0x21cc   : > { %v2620_v2 = vsub.f32 %v2610_v62, %v2619_v1 }
0x21cd   : > { %v2639_v13 = vpop.permute.xlu0 %2638 }
0x21ce   : > { %v2621_v5 = vmul.f32 %v2620_v2, %v2620_v2 }
0x21d0   : > { %2623 = vrot.lane.b32.xlu1 %v2621_v5, %s5657_s28 }
0x2242   : > { %v2624_v61 = vpop.permute.xlu1 %2623 }
0x2243   : > { %v2626_v6 = vsel %vm2615_vm14, %v2624_v61, 0.0 }
0x2244   : > { %2627 = vadd.xlane.f32.xlu1 %v2626_v6 }
0x2255   : > { %2647 = vrot.lane.b32.xlu1 %v5126_v48, %s5613_s7 }
0x22d1   : > { %v2628_v7 = vpop.xlane.xlu1 %2627 }
0x22d2   : > { %v2629_v10 = vmul.f32 0.03125, %v2628_v7 }
0x22d4   : > { %v2630_v11 = vadd.f32 1e-05, %v2629_v10 }
0x22d5   : > { %v2648_v17 = vpop.permute.xlu1 %2647 }
0x22d6   : > { %4407 = vrsqrt.f32 %v2630_v11 }
0x22e0   : > { %v4408_v12 = vpop.eup %4407 }
0x22e1   : > { %v2632_v16 = vmul.f32 %v4408_v12, %v2620_v2 }
0x22e3   : > { %v2641_v21 = vmul.f32 %v2639_v13, %v2632_v16 }
0x22e5   : > { %v5292_v3 = vadd.f32 %v2648_v17, %v2641_v21 }
0x22e7   : > { %4409 = vtanh.f32 %v5292_v3 }
0x22f1   : > { %v4410_v23 = vpop.eup %4409 }
0x22f2   : > { %2653 = vrot.lane.b32.xlu0 %v4410_v23, %s5615_s0 }
0x2364   : > { %v2654_v24 = vpop.permute.xlu0 %2653 }
0x2365   : > { %v5296_v25 = vmul.f32 %v4406_v55, %v2654_v24 }
0x2367   : > { %v2700_v15 = vrot.slane %v5296_v25, 4 }
0x2369   : > { %2701 = vrot.lane.b32.xlu0 %v2700_v15, %s5613_s7 }
0x2388   : > { %2674 = vadd.xlane.f32.xlu0 %v2673_v26 }
0x23db   : > { %v2702_v27 = vpop.permute.xlu0 %2701 }
0x23dc   : > { %4079 = vmatmul.mubr.msk.f32.vlgmr.msra.gmra.mrb[30].mxu0 %vm835_vm0, %v2702_v27 }
0x23dd   : > { %4100 = vmatprep.mubr.msk.f32.mxu0 %vm4553_vm1, %v4554_v29 }
0x2415   : > { %v2675_v28 = vpop.xlane.xlu0 %2674 }
0x2416   : > { %v2676_v32 = vmul.f32 0.0078125, %v2675_v28 }
0x2418   : > { %v2677_v33 = vsub.f32 %v5091_v53, %v2676_v32 }
0x241a   : > { %v2678_v40 = vmul.f32 %v2677_v33, %v2677_v33 }
0x241c   : > { %v2679_v43 = vsel %vm2672_vm7, %v2678_v40, 0.0 }
0x24af   : > { %v2771_v34 = vpop.f32.mrb[30].mxu0 }
0x24b0   : > { %v4080_v36 = vpop.f32.mrb[31].mxu0  ;;  %v2775_v37 = vsel %vm1674_vm2, %v2771_v34, 0.0 }
0x24b1   : > { %2776 = vadd.xlane.f32.xlu1 %v2775_v37 }
0x24b5   : > { %2680 = vadd.xlane.f32.xlu1 %v2679_v43 }
0x253e   : > { %v2777_v44 = vpop.xlane.xlu1 %2776 }
0x253f   : > { %v2778_v46 = vmul.f32 0.0078125, %v2777_v44 }
0x2541   : > { %v2779_v47 = vsub.f32 %v2771_v34, %v2778_v46 }
0x2542   : > { %v2681_v42 = vpop.xlane.xlu1 %2680 }
0x2543   : > { %v2780_v49 = vmul.f32 %v2779_v47, %v2779_v47  ;;  %v2682_v51 = vmul.f32 0.0078125, %v2681_v42 }
0x2545   : > { %v2781_v50 = vsel %vm1674_vm2, %v2780_v49, 0.0  ;;  %v2683_v52 = vadd.f32 1e-05, %v2682_v51  ;;  %v2867_v49 = vld [vmem:[%s5591_s16 + $0x8] sm:$0xff]  ;;  %v2869_v51 = vld [vmem:[%s5591_s16 + $0x18] sm:$0xff] }
0x2546   : > { %2782 = vadd.xlane.f32.xlu0 %v2781_v50  ;;  %v2868_v50 = vld [vmem:[%s5591_s16 + $0x10] sm:$0xff] }
0x2547   : > { %4411 = vrsqrt.f32 %v2683_v52  ;;  %v4246_v52 = vpack.c.bf16 %v2869_v51, %v2868_v50 }
0x2551   : > { %v4412_v57 = vpop.eup %4411 }
0x2552   : > { %v2685_v30 = vmul.f32 %v4412_v57, %v2677_v33  ;;  %v2877_v57 = vsel %vm2876_vm15, %v5091_v53, 0.0 }
0x2554   : > { %v2692_v0 = vmul.f32 %v5152_v31, %v2685_v30  ;;  %v2802_v31 = vrot.slane %v5292_v3, 7  ;;  %v3275_v30 = vld [vmem:[#allocation2] sm:$0xff] }
0x2556   : > { %v2699_v2 = vadd.f32 %v5164_v38, %v2692_v0  ;;  %v3277_v0 = vld [vmem:[#allocation2 + $0x10] sm:$0xff] }
0x25d3   : > { %v2783_v54 = vpop.xlane.xlu0 %2782 }
0x25d4   : > { %v2784_v55 = vmul.f32 0.0078125, %v2783_v54 }
0x25d6   : > { %v2785_v56 = vadd.f32 1e-05, %v2784_v55 }
0x25d8   : > { %4413 = vrsqrt.f32 %v2785_v56 }
0x25e2   : > { %v4414_v59 = vpop.eup %4413 }
0x25e3   : > { %v2787_v62 = vmul.f32 %v4414_v59, %v2779_v47  ;;  %v3276_v59 = vld [vmem:[#allocation2 + $0x8] sm:$0xff] }
0x25e5   : > { %v2788_v58 = vmul.f32 %v2787_v62, %v2668_v60  ;;  %v2873_v60 = vld [vmem:[%s5595_s20] sm:$0x1] }
0x25e7   : > { %v2789_v1 = vadd.f32 %v2788_v58, %v2669_v35  ;;  %v4255_v35 = vpack.c.bf16 %v3276_v59, %v3275_v30  ;;  %v3278_v58 = vld [vmem:[#allocation2 + $0x18] sm:$0xff]  ;;  %v2872_v30 = vld [vmem:[%s5594_s19] sm:$0x1] }
0x25e9   : > { %v2791_v5 = vrot.slane %v2789_v1, 3  ;;  %v4259_v1 = vpack.c.bf16 %v3278_v58, %v3277_v0  ;;  %v5403_v0 = vld [vmem:[%s5593_s18] ss:$0 sm:$0xff] }
0x25eb   : > { %v2793_v61 = vadd.f32 %v2791_v5, %v2699_v2  ;;  %v3279_v2 = vld [vmem:[#allocation2 + $0x20] sm:$0xff]  ;;  %v3280_v5 = vld [vmem:[#allocation2 + $0x28] sm:$0xff] }
0x25ed   : > { %4415 = vtanh.f32 %v2793_v61  ;;  %v3741_v7 = vmul.f32 -1.442695, %v2793_v61  ;;  %v4263_v61 = vpack.c.bf16 %v3280_v5, %v3279_v2 }
0x25ef   : > { %4417 = vpow2.f32 %v3741_v7  ;;  %v3282_v7 = vld [vmem:[#allocation2 + $0x38] sm:$0xff] }
0x25f7   : > { %v4416_v6 = vpop.eup %4415 }
0x25f8   : > { %2806 = vrot.lane.b32.xlu0 %v4416_v6, %s5615_s0  ;;  %v3281_v6 = vld [vmem:[#allocation2 + $0x30] sm:$0xff] }
0x25f9   : > { %v4418_v10 = vpop.eup %4417 }
0x25fa   : > { %v2797_v11 = vadd.f32 1.0, %v4418_v10  ;;  %v4267_v10 = vpack.c.bf16 %v3282_v7, %v3281_v6 }
0x25fc   : > { %4419 = vrcp.f32 %v2797_v11  ;;  %v3283_v11 = vld [vmem:[#allocation2 + $0x40] sm:$0xff] }
0x2606   : > { %v4420_v12 = vpop.eup %4419 }
0x2607   : > { %v2804_v17 = vmul.f32 %v4420_v12, %v2802_v31  ;;  %v3286_v31 = vld [vmem:[#allocation2 + $0x58] sm:$0xff] }
0x266a   : > { %v2807_v13 = vpop.permute.xlu0 %2806 }
0x266b   : > { %v2809_v16 = vmul.f32 %v4420_v12, %v2807_v13 }
0x266d   : > { %2811 = vrot.lane.b32.xlu1 %v2809_v16, %s5613_s7  ;;  %v3285_v16 = vld [vmem:[#allocation2 + $0x50] sm:$0xff] }
0x26df   : > { %v2812_v38 = vpop.permute.xlu1 %2811 }
0x26e0   : > { %v2814_v21 = vadd.f32 %v2812_v38, %v2804_v17  ;;  %v4275_v17 = vpack.c.bf16 %v3286_v31, %v3285_v16  ;;  %v3287_v38 = vld [vmem:[#allocation2 + $0x60] sm:$0xff] }
0x26e2   : > { %2816 = vrot.lane.b32.xlu1 %v2814_v21, %s5657_s28 }
0x2754   : > { %v2817_v23 = vpop.permute.xlu1 %2816 }
0x2755   : > { %v2820_v24 = vsel %vm2819_vm10, %v2817_v23, 0.0 }
0x2756   : > { %2821 = vadd.xlane.f32.xlu0 %v2820_v24  ;;  %v3289_v24 = vld [vmem:[#allocation2 + $0x70] sm:$0xff] }
0x276c   : > { %2842 = vrot.lane.b32.xlu0 %v5117_v41, %s5613_s7 }
0x27e3   : > { %v2822_v15 = vpop.xlane.xlu0 %2821 }
0x27e4   : > { %v2823_v26 = vmul.f32 0.03125, %v2822_v15  ;;  %v3290_v15 = vld [vmem:[#allocation2 + $0x78] sm:$0xff] }
0x27e6   : > { %v2824_v27 = vsub.f32 %v2814_v21, %v2823_v26  ;;  %v3288_v21 = vld [vmem:[#allocation2 + $0x68] sm:$0xff]  ;;  %v4283_v26 = vpack.c.bf16 %v3290_v15, %v3289_v24  ;;  %v5414_v24 = vld [vmem:[%s5596_s21] ss:$0 sm:$0xff] }
0x27e7   : > { %v2843_v40 = vpop.permute.xlu0 %2842  ;;  %v4279_v23 = vpack.c.bf16 %v3288_v21, %v3287_v38 }
0x27e8   : > { %v2825_v28 = vmul.f32 %v2824_v27, %v2824_v27 }
0x27ea   : > { %2827 = vrot.lane.b32.xlu1 %v2825_v28, %s5657_s28 }
0x285c   : > { %v2828_v3 = vpop.permute.xlu1 %2827 }
0x285d   : > { %v2830_v32 = vsel %vm2819_vm10, %v2828_v3, 0.0 }
0x285e   : > { %2831 = vadd.xlane.f32.xlu1 %v2830_v32 }
0x286f   : > { %2851 = vrot.lane.b32.xlu1 %v5126_v48, %s5613_s7  ;;  %v2866_v48 = vld [vmem:[%s5591_s16] sm:$0xff]  ;;  %s5658_s7 = smov 32  }
0x2870   : > { %v4243_v42 = vpack.c.bf16 %v2867_v49, %v2866_v48 }
0x2872   : > { %4244 = vmatpush3.bf16.msra.mxu1 %v4243_v42  ;;  %4250 = vmatpush3.bf16.msra.mxu0 %v4243_v42 }
0x2873   : > { %4245 = vmatprep.subr.bf16.mxu1 %v4552_v14  ;;  %4251 = vmatprep.subr.bf16.mxu0 %v4552_v14 }
0x2876   : > { %4247 = vmatpush3.bf16.msra.mxu1 %v4246_v52  ;;  %4253 = vmatpush3.bf16.msra.mxu0 %v4246_v52 }
0x2877   : > { %4254 = vmatprep.subr.bf16.mxu1 %v4552_v14  ;;  %4138 = vmatprep.subr.mxu0 %v4554_v29 }
0x28eb   : > { %v2832_v33 = vpop.xlane.xlu1 %2831 }
0x28ec   : > { %v2833_v34 = vmul.f32 0.03125, %v2832_v33 }
0x28ee   : > { %v2834_v36 = vadd.f32 1e-05, %v2833_v34 }
0x28ef   : > { %v2852_v43 = vpop.permute.xlu1 %2851 }
0x28f0   : > { %4421 = vrsqrt.f32 %v2834_v36 }
0x28fa   : > { %v4422_v37 = vpop.eup %4421 }
0x28fb   : > { %v2836_v41 = vmul.f32 %v4422_v37, %v2824_v27 }
0x28fd   : > { %v2845_v44 = vmul.f32 %v2843_v40, %v2836_v41 }
0x28ff   : > { %v5326_v46 = vadd.f32 %v2852_v43, %v2845_v44 }
0x2901   : > { %4423 = vtanh.f32 %v5326_v46  ;;  %v3006_v16 = vrot.slane %v5326_v46, 7 }
0x290b   : > { %v4424_v47 = vpop.eup %4423 }
0x290c   : > { %2857 = vrot.lane.b32.xlu0 %v4424_v47, %s5615_s0  ;;  %s4461_s0 = scalar_lea.vmem %s4460_s30, 32 }
0x297e   : > { %v2858_v54 = vpop.permute.xlu0 %2857 }
0x297f   : > { %v5346_v55 = vmul.f32 %v4420_v12, %v2858_v54  ;;  %v3284_v12 = vld [vmem:[#allocation2 + $0x48] sm:$0xff] }
0x2980   : > { %v4271_v13 = vpack.c.bf16 %v3284_v12, %v3283_v11 }
0x2981   : > { %v2904_v56 = vrot.slane %v5346_v55, 5 }
0x2983   : > { %2905 = vrot.lane.b32.xlu0 %v2904_v56, %s5658_s7 }
0x29a2   : > { %2878 = vadd.xlane.f32.xlu0 %v2877_v57  ;;  %v5391_v57 = vld [vmem:[%s5592_s17] ss:$0 sm:$0xff] }
0x29f5   : > { %v2906_v62 = vpop.permute.xlu0 %2905 }
0x29f6   : > { %4090 = vmatmul.mubr.msk.f32.vlgmr.msra.gmra.mrb[8].mxu1 %vm835_vm0, %v2906_v62 }
0x29f7   : > { %4257 = vmatpush3.bf16.xpose.msk.msra.mxu1 %vm5354_vm3, %v4255_v35  ;;  %4135 = vmatprep.mubr.msk.f32.mxu1 %vm4553_vm1, %v4554_v29 }
0x29f8   : > { %4258 = vmatprep.subr.bf16.mxu1 %v4552_v14 }
0x29ff   : > { %4261 = vmatpush3.bf16.xpose.msk.msra.mxu1 %vm5354_vm3, %v4259_v1 }
0x2a00   : > { %4262 = vmatprep.subr.bf16.mxu1 %v4552_v14 }
0x2a07   : > { %4265 = vmatpush3.bf16.xpose.msk.msra.mxu1 %vm5354_vm3, %v4263_v61 }
0x2a08   : > { %4266 = vmatprep.subr.bf16.mxu1 %v4552_v14 }
0x2a0f   : > { %4269 = vmatpush3.bf16.xpose.msk.msra.mxu1 %vm5354_vm3, %v4267_v10 }
0x2a10   : > { %4270 = vmatprep.subr.bf16.mxu1 %v4552_v14 }
0x2a17   : > { %4273 = vmatpush3.bf16.xpose.msk.msra.mxu1 %vm5354_vm3, %v4271_v13 }
0x2a18   : > { %4274 = vmatprep.subr.bf16.mxu1 %v4552_v14 }
0x2a1f   : > { %4277 = vmatpush3.bf16.xpose.msk.msra.mxu1 %vm5354_vm3, %v4275_v17 }
0x2a20   : > { %4278 = vmatprep.subr.bf16.mxu1 %v4552_v14 }
0x2a27   : > { %4281 = vmatpush3.bf16.xpose.msk.msra.mxu1 %vm5354_vm3, %v4279_v23 }
0x2a28   : > { %4282 = vmatprep.subr.bf16.mxu1 %v4552_v14 }
0x2a2f   : > { %4285 = vmatpush3.bf16.xpose.msk.msra.mxu1 %vm5354_vm3, %v4283_v26  ;;  %v2879_v27 = vpop.xlane.xlu0 %2878 }
0x2a30   : > { %v2880_v28 = vmul.f32 0.0078125, %v2879_v27 }
0x2a32   : > { %v2881_v3 = vsub.f32 %v5091_v53, %v2880_v28 }
0x2a34   : > { %v2882_v36 = vmul.f32 %v2881_v3, %v2881_v3 }
0x2a36   : > { %v2883_v37 = vsel %vm2876_vm15, %v2882_v36, 0.0 }
0x2ac9   : > { %v2975_v32 = vpop.f32.mrb[8].mxu1 }
0x2aca   : > { %v4091_v33 = vpop.f32.mrb[9].mxu1  ;;  %v2979_v34 = vsel %vm1674_vm2, %v2975_v32, 0.0 }
0x2acb   : > { %2980 = vadd.xlane.f32.xlu1 %v2979_v34 }
0x2acf   : > { %2884 = vadd.xlane.f32.xlu1 %v2883_v37 }
0x2b58   : > { %v2981_v14 = vpop.xlane.xlu1 %2980 }
0x2b59   : > { %v2982_v40 = vmul.f32 0.0078125, %v2981_v14 }
0x2b5b   : > { %v2983_v41 = vsub.f32 %v2975_v32, %v2982_v40  ;;  %v5423_v32 = vld [vmem:[%s5597_s22] ss:$0 sm:$0xff] }
0x2b5c   : > { %v2885_v47 = vpop.xlane.xlu1 %2884 }
0x2b5d   : > { %v2984_v43 = vmul.f32 %v2983_v41, %v2983_v41  ;;  %v2886_v48 = vmul.f32 0.0078125, %v2885_v47 }
0x2b5f   : > { %v2985_v44 = vsel %vm1674_vm2, %v2984_v43, 0.0  ;;  %v2887_v49 = vadd.f32 1e-05, %v2886_v48 }
0x2b60   : > { %2986 = vadd.xlane.f32.xlu0 %v2985_v44 }
0x2b61   : > { %4425 = vrsqrt.f32 %v2887_v49 }
0x2b6b   : > { %v4426_v52 = vpop.eup %4425 }
0x2b6c   : > { %v2889_v54 = vmul.f32 %v4426_v52, %v2881_v3 }
0x2b6e   : > { %v2896_v62 = vmul.f32 %v5391_v57, %v2889_v54 }
0x2b70   : > { %v2903_v1 = vadd.f32 %v5403_v0, %v2896_v62 }
0x2bed   : > { %v2987_v50 = vpop.xlane.xlu0 %2986 }
0x2bee   : > { %v2988_v42 = vmul.f32 0.0078125, %v2987_v50 }
0x2bf0   : > { %v2989_v51 = vadd.f32 1e-05, %v2988_v42  ;;  %v3081_v42 = vsel %vm3080_vm9, %v5091_v53, 0.0 }
0x2bf2   : > { %4427 = vrsqrt.f32 %v2989_v51 }
0x2bfc   : > { %v4428_v56 = vpop.eup %4427 }
0x2bfd   : > { %v2991_v59 = vmul.f32 %v4428_v56, %v2983_v41 }
0x2bff   : > { %v2992_v35 = vmul.f32 %v2991_v59, %v2872_v30 }
0x2c01   : > { %v2993_v58 = vadd.f32 %v2992_v35, %v2873_v60 }
0x2c03   : > { %v2995_v2 = vrot.slane %v2993_v58, 2 }
0x2c05   : > { %v2997_v5 = vadd.f32 %v2995_v2, %v2903_v1 }
0x2c07   : > { %4429 = vtanh.f32 %v2997_v5  ;;  %v3747_v6 = vmul.f32 -1.442695, %v2997_v5 }
0x2c09   : > { %4431 = vpow2.f32 %v3747_v6 }
0x2c11   : > { %v4430_v61 = vpop.eup %4429 }
0x2c12   : > { %3010 = vrot.lane.b32.xlu0 %v4430_v61, %s5661_s8 }
0x2c13   : > { %v4432_v7 = vpop.eup %4431 }
0x2c14   : > { %v3001_v10 = vadd.f32 1.0, %v4432_v7 }
0x2c16   : > { %4433 = vrcp.f32 %v3001_v10 }
0x2c20   : > { %v4434_v11 = vpop.eup %4433 }
0x2c21   : > { %v3008_v31 = vmul.f32 %v4434_v11, %v3006_v16  ;;  %v3076_v16 = vld [vmem:[%s5594_s19] sm:$0x1] }
0x2c84   : > { %v3011_v12 = vpop.permute.xlu0 %3010 }
0x2c85   : > { %v3013_v13 = vmul.f32 %v4434_v11, %v3011_v12 }
0x2c87   : > { %3015 = vrot.lane.b32.xlu1 %v3013_v13, %s5658_s7 }
0x2cf9   : > { %v3016_v17 = vpop.permute.xlu1 %3015 }
0x2cfa   : > { %v3018_v38 = vadd.f32 %v3016_v17, %v3008_v31  ;;  %v3077_v17 = vld [vmem:[%s5595_s20] sm:$0x1] }
0x2cfc   : > { %3020 = vrot.lane.b32.xlu1 %v3018_v38, %s5657_s28 }
0x2d6e   : > { %v3021_v21 = vpop.permute.xlu1 %3020 }
0x2d6f   : > { %v3024_v23 = vsel %vm3023_vm6, %v3021_v21, 0.0 }
0x2d70   : > { %3025 = vadd.xlane.f32.xlu0 %v3024_v23 }
0x2d86   : > { %3046 = vrot.lane.b32.xlu0 %v5414_v24, %s5658_s7 }
0x2dfd   : > { %v3026_v15 = vpop.xlane.xlu0 %3025 }
0x2dfe   : > { %v3027_v46 = vmul.f32 0.03125, %v3026_v15 }
0x2e00   : > { %v3028_v26 = vsub.f32 %v3018_v38, %v3027_v46 }
0x2e01   : > { %v3047_v14 = vpop.permute.xlu0 %3046 }
0x2e02   : > { %v3029_v27 = vmul.f32 %v3028_v26, %v3028_v26 }
0x2e04   : > { %3031 = vrot.lane.b32.xlu1 %v3029_v27, %s5657_s28 }
0x2e76   : > { %v3032_v28 = vpop.permute.xlu1 %3031 }
0x2e77   : > { %v3034_v3 = vsel %vm3023_vm6, %v3032_v28, 0.0 }
0x2e78   : > { %3035 = vadd.xlane.f32.xlu1 %v3034_v3 }
0x2e89   : > { %3055 = vrot.lane.b32.xlu1 %v5423_v32, %s5658_s7 }
0x2f05   : > { %v3036_v33 = vpop.xlane.xlu1 %3035 }
0x2f06   : > { %v3037_v34 = vmul.f32 0.03125, %v3036_v33 }
0x2f08   : > { %v3038_v36 = vadd.f32 1e-05, %v3037_v34 }
0x2f09   : > { %v3056_v41 = vpop.permute.xlu1 %3055 }
0x2f0a   : > { %4435 = vrsqrt.f32 %v3038_v36 }
0x2f14   : > { %v4436_v37 = vpop.eup %4435 }
0x2f15   : > { %v3040_v40 = vmul.f32 %v4436_v37, %v3028_v26 }
0x2f17   : > { %v3049_v43 = vmul.f32 %v3047_v14, %v3040_v40 }
0x2f19   : > { %v5427_v44 = vadd.f32 %v3056_v41, %v3049_v43 }
0x2f1b   : > { %4437 = vtanh.f32 %v5427_v44 }
0x2f25   : > { %v4438_v47 = vpop.eup %4437 }
0x2f26   : > { %3061 = vrot.lane.b32.xlu0 %v4438_v47, %s5661_s8 }
0x2f98   : > { %v3062_v48 = vpop.permute.xlu0 %3061 }
0x2f99   : > { %v5431_v49 = vmul.f32 %v4434_v11, %v3062_v48 }
0x2f9b   : > { %v3108_v50 = vrot.slane %v5431_v49, 6 }
0x2f9d   : > { %3109 = vrot.lane.b32.xlu0 %v3108_v50, %s5658_s7 }
0x2fbc   : > { %3082 = vadd.xlane.f32.xlu0 %v3081_v42 }
0x300f   : > { %v3110_v51 = vpop.permute.xlu0 %3109 }
0x3010   : > { %4101 = vmatmul.mubr.msk.f32.vlgmr.msra.gmra.mrb[32].mxu0 %vm835_vm0, %v3110_v51 }
0x3011   : > { %4139 = vmatpush3.msk.msra.mxu0 %vm1145_vm4, %v4555_v22  ;;  %4140 = vmatprep.mubr.msk.f32.mxu0 %vm4553_vm1, %v4554_v29  ;;  %vm3227_vm1 = vcmask 261127  }
0x3014   : > { %4141 = vmatmul.mubr.msk.f32.vlgmr.msra.gmra.mrb[34].mxu0 %vm1404_vm13, %v5005_v4 }
0x3049   : > { %v3083_v52 = vpop.xlane.xlu0 %3082 }
0x304a   : > { %v3084_v54 = vmul.f32 0.0078125, %v3083_v52  ;;  %v4453_v52 = vld [vmem:[%s4759_s29] sm:$0x1]  ;;  %s3777_s29 = sshll.u32 %s4708_s6, 4 }
0x304b   : > { %s5502_s25 = scalar_lea.hbm %s5599_s24, %s3777_s29 }
0x304c   : > { %v3085_v56 = vsub.f32 %v5091_v53, %v3084_v54  ;;  %v3412_v54 = vadd.s32 1, %v4453_v52 }
0x304e   : > { %v3086_v62 = vmul.f32 %v3085_v56, %v3085_v56 }
0x3050   : > { %v3087_v20 = vsel %vm3080_vm9, %v3086_v62, 0.0 }
0x30e3   : > { %v3179_v30 = vpop.f32.mrb[32].mxu0 }
0x30e4   : > { %v4102_v59 = vpop.f32.mrb[33].mxu0  ;;  %v3183_v60 = vsel %vm1674_vm2, %v3179_v30, 0.0 }
0x30e5   : > { %3184 = vadd.xlane.f32.xlu1 %v3183_v60 }
0x30e7   : > { %v5448_v35 = vpop.f32.mrb[34].mxu0 }
0x30e8   : > { %v4142_v22 = vpop.f32.mrb[35].mxu0 }
0x30e9   : > { %3088 = vadd.xlane.f32.xlu1 %v3087_v20 }
0x3172   : > { %v3185_v29 = vpop.xlane.xlu1 %3184 }
0x3173   : > { %v3186_v58 = vmul.f32 0.0078125, %v3185_v29 }
0x3175   : > { %v3187_v1 = vsub.f32 %v3179_v30, %v3186_v58 }
0x3176   : > { %v3089_v53 = vpop.xlane.xlu1 %3088 }
0x3177   : > { %v3188_v4 = vmul.f32 %v3187_v1, %v3187_v1  ;;  %v3090_v5 = vmul.f32 0.0078125, %v3089_v53 }
0x3179   : > { %v3189_v2 = vsel %vm1674_vm2, %v3188_v4, 0.0  ;;  %v3091_v61 = vadd.f32 1e-05, %v3090_v5 }
0x317a   : > { %3190 = vadd.xlane.f32.xlu0 %v3189_v2 }
0x317b   : > { %4439 = vrsqrt.f32 %v3091_v61 }
0x3185   : > { %v4440_v11 = vpop.eup %4439 }
0x3186   : > { %v3093_v12 = vmul.f32 %v4440_v11, %v3085_v56 }
0x3188   : > { %v3100_v38 = vmul.f32 %v5391_v57, %v3093_v12  ;;  %v3210_v57 = vrot.slane %v5427_v44, 7 }
0x318a   : > { %v3107_v15 = vadd.f32 %v5403_v0, %v3100_v38 }
0x3207   : > { %v3191_v6 = vpop.xlane.xlu0 %3190 }
0x3208   : > { %v3192_v7 = vmul.f32 0.0078125, %v3191_v6 }
0x320a   : > { %v3193_v10 = vadd.f32 1e-05, %v3192_v7 }
0x320c   : > { %4441 = vrsqrt.f32 %v3193_v10 }
0x3216   : > { %v4442_v13 = vpop.eup %4441 }
0x3217   : > { %v3195_v31 = vmul.f32 %v4442_v13, %v3187_v1 }
0x3219   : > { %v3196_v21 = vmul.f32 %v3195_v31, %v3076_v16 }
0x321b   : > { %v3197_v23 = vadd.f32 %v3196_v21, %v3077_v17 }
0x321d   : > { %v3199_v46 = vrot.slane %v3197_v23, 1 }
0x321f   : > { %v3201_v26 = vadd.f32 %v3199_v46, %v3107_v15 }
0x3221   : > { %4443 = vtanh.f32 %v3201_v26  ;;  %v3753_v28 = vmul.f32 -1.442695, %v3201_v26 }
0x3223   : > { %4445 = vpow2.f32 %v3753_v28 }
0x322b   : > { %v4444_v27 = vpop.eup %4443 }
0x322c   : > { %3214 = vrot.lane.b32.xlu0 %v4444_v27, %s5661_s8 }
0x322d   : > { %v4446_v3 = vpop.eup %4445 }
0x322e   : > { %v3205_v33 = vadd.f32 1.0, %v4446_v3 }
0x3230   : > { %4447 = vrcp.f32 %v3205_v33 }
0x323a   : > { %v4448_v34 = vpop.eup %4447 }
0x323b   : > { %v3212_v14 = vmul.f32 %v4448_v34, %v3210_v57 }
0x329e   : > { %v3215_v36 = vpop.permute.xlu0 %3214 }
0x329f   : > { %v3217_v37 = vmul.f32 %v4448_v34, %v3215_v36 }
0x32a1   : > { %3219 = vrot.lane.b32.xlu1 %v3217_v37, %s5658_s7 }
0x3313   : > { %v3220_v0 = vpop.permute.xlu1 %3219 }
0x3314   : > { %v3222_v40 = vadd.f32 %v3220_v0, %v3212_v14 }
0x3316   : > { %3224 = vrot.lane.b32.xlu1 %v3222_v40, %s5657_s28 }
0x3388   : > { %v3225_v41 = vpop.permute.xlu1 %3224 }
0x3389   : > { %v3228_v43 = vsel %vm3227_vm1, %v3225_v41, 0.0 }
0x338a   : > { %3229 = vadd.xlane.f32.xlu0 %v3228_v43 }
0x33a0   : > { %3250 = vrot.lane.b32.xlu0 %v5414_v24, %s5658_s7  ;;  %v3416_v24 = vrot.slane %v3412_v54, %v1080_v9 }
0x3417   : > { %v3230_v47 = vpop.xlane.xlu0 %3229 }
0x3418   : > { %v3231_v48 = vmul.f32 0.03125, %v3230_v47 }
0x341a   : > { %v3232_v50 = vsub.f32 %v3222_v40, %v3231_v48 }
0x341c   : > { %v3233_v42 = vmul.f32 %v3232_v50, %v3232_v50 }
0x341e   : > { %3235 = vrot.lane.b32.xlu1 %v3233_v42, %s5657_s28  ;;  %s5662_s28 = scalar_lea.vmem [#allocation6], %s5018_s5 }
0x3490   : > { %v3236_v44 = vpop.permute.xlu1 %3235 }
0x3491   : > { %v3238_v51 = vsel %vm3227_vm1, %v3236_v44, 0.0 }
0x3492   : > { %3239 = vadd.xlane.f32.xlu1 %v3238_v51 }
0x34a3   : > { %3259 = vrot.lane.b32.xlu1 %v5423_v32, %s5658_s7 }
0x34a7   : > { %2250 = vrot.lane.b32.xlu1 %v5222_v45, %s5658_s7 }
0x34ab   : > { %2658 = vrot.lane.b32.xlu1 %v5296_v25, %s5658_s7  ;;  %v3251_v25 = vpop.permute.xlu0 %3250 }
0x34af   : > { %3066 = vrot.lane.b32.xlu1 %v5431_v49, %s5658_s7 }
0x34b3   : > { %3418 = vperm.xlu1 %4340, %v3416_v24  }
0x351f   : > { %v3240_v56 = vpop.xlane.xlu1 %3239 }
0x3520   : > { %v3241_v30 = vmul.f32 0.03125, %v3240_v56 }
0x3522   : > { %v3242_v59 = vadd.f32 1e-05, %v3241_v30 }
0x3523   : > { %v3260_v60 = vpop.permute.xlu1 %3259 }
0x3524   : > { %4449 = vrsqrt.f32 %v3242_v59 }
0x3527   : > { %v2251_v32 = vpop.permute.xlu1 %2250 }
0x3528   : > { %2253 = vst.msk [vmem:[#allocation3] sm:$0x4] %vm2207_vm8, %v2251_v32 }
0x352b   : > { %v2659_v45 = vpop.permute.xlu1 %2658 }
0x352c   : > { %2661 = vst.msk [vmem:[#allocation3] sm:$0x10] %vm2615_vm14, %v2659_v45 }
0x352e   : > { %v4450_v62 = vpop.eup %4449 }
0x352f   : > { %v3067_v20 = vpop.permute.xlu1 %3066  ;;  %v3244_v22 = vmul.f32 %v4450_v62, %v3232_v50 }
0x3530   : > { %3069 = vst.msk [vmem:[#allocation3] sm:$0x40] %vm3023_vm6, %v3067_v20 }
0x3531   : > { %v3253_v9 = vmul.f32 %v3251_v25, %v3244_v22 }
0x3533   : > { %v3262_v49 = vadd.f32 %v3260_v60, %v3253_v9 }
0x3535   : > { %4451 = vtanh.f32 %v3262_v49 }
0x353f   : > { %v4452_v29 = vpop.eup %4451 }
0x3540   : > { %3265 = vrot.lane.b32.xlu0 %v4452_v29, %s5661_s8  ;;  %s3531_s8 = sshll.u32 %s5662_s28, 4  ;;  %s3532_s8 = int_to_ptr.vmem [resolvable:$true] %s3531_s8 }
0x3541   : > { %s4455_s2 = scalar_lea.vmem %s3532_s8, 16  ;;  %p4462_p0 = scmp.lt.s32.totalorder %s3532_s8, %s4460_s30 }
0x3542   : > { %p4456_p11 = scmp.ne.s32.totalorder %s3532_s8, %s4455_s2  ;;  %p4463_p1 = scmp.lt.s32.totalorder %s4461_s0, %s4455_s2 }
0x3544   : > { %2046 = vrot.lane.b32.xlu0 %v5182_v18, %s5658_s7  ;;  %p4457_p12 = pnand %p4456_p11, %p4725_p5  ;;  %p4464_p2 = por %p4463_p1, %p4462_p0 }
0x3546   : > { %p4458_p13 = pneg %p4457_p12 }
0x3548   : > { %2454 = vrot.lane.b32.xlu0 %v5262_v63, %s5658_s7  ;;  %p4465_p3 = pnand %p4464_p2, %p4458_p13 }
0x354c   : > { %2862 = vrot.lane.b32.xlu0 %v5346_v55, %s5658_s7 }
0x35b2   : > { %v3266_v58 = vpop.permute.xlu0 %3265 }
0x35b3   : > { %v3268_v1 = vmul.f32 %v4448_v34, %v3266_v58 }
0x35b5   : > { %3270 = vrot.lane.b32.xlu0 %v3268_v1, %s5658_s7 }
0x35b6   : > { %v2047_v4 = vpop.permute.xlu0 %2046 }
0x35b7   : > { %2049 = vst.msk [vmem:[#allocation3] sm:$0x2] %vm2003_vm5, %v2047_v4 }
0x35ba   : > { %v2455_v2 = vpop.permute.xlu0 %2454 }
0x35bb   : > { %2457 = vst.msk [vmem:[#allocation3] sm:$0x8] %vm2411_vm11, %v2455_v2 }
0x35be   : > { %v2863_v18 = vpop.permute.xlu0 %2862 }
0x35bf   : > { %2865 = vst.msk [vmem:[#allocation3] sm:$0x20] %vm2819_vm10, %v2863_v18 }
0x3627   : > { %v3271_v63 = vpop.permute.xlu0 %3270 }
0x3628   : > { %3273 = vst.msk [vmem:[#allocation3] sm:$0x80] %vm3227_vm1, %v3271_v63 }
0x362f   : > { %v3274_v53 = vld [vmem:[#allocation3] sm:$0xff] }
0x3630   : > { %4136 = vmatmul.mubr.msk.f32.vlgmr.msra.gmra.mrb[10].mxu1 %vm835_vm0, %v3274_v53 }
0x3631   : > { %4468 = shalt.err (!%p4465_p3)
}
0x3632   : > { %s4469_s29 = scalar_lea.hbm %s5502_s25, 16  ;;  %s4473_s27 = scalar_lea.hbm %s5599_s24, 32 }
0x3633   : > { %p4470_p4 = scmp.ne.s32.totalorder %s5502_s25, %s4469_s29  ;;  %p4474_p9 = scmp.lt.u32.totalorder %s5502_s25, %s5599_s24 }
0x3634   : > { %p4475_p10 = scmp.lt.u32.totalorder %s4473_s27, %s4469_s29  ;;  %p4477_p12 = scmp.lt.u32.totalorder %s4469_s29, %s5502_s25 }
0x3635   : > { %p4471_p7 = pnand %p4470_p4, %p4725_p5 }
0x3636   : > { %p4476_p11 = por %p4475_p10, %p4474_p9 }
0x3637   : > { %p4472_p8 = pneg %p4471_p7 }
0x3638   : > { %p4478_p13 = por %p4477_p12, %p4476_p11 }
0x363a   : > { %p4479_p0 = pnand %p4478_p13, %p4472_p8 }
0x363c   : > { %4482 = shalt.err (!%p4479_p0)
}
0x363d   : > { %4287 = dma.vmem_to_hbm [thread:$0]  (%p4725_p5), %s3532_s8, 16, %s5502_s25, %s3506_s1   ;;  %vm3492_vm0 = vcmp.eq.s32.totalorder %v4752_v8, 0  ;;  %vm3493_vm4 = vcmp.eq.s32.totalorder %v4940_v19, %v4823_v39  ;;  %vm3491_vm13 = vcmp.gt.f32.partialorder %v5448_v35, 0.0  ;;  %v3419_v55 = vpop.permute.xlu1 %3418  ;;  %vm4560_vm11 = vmmov 1  }
0x363e   : > { %s3661_s2 = sshll.u32 %s5018_s5, 3  ;;  %vm3494_vm2 = vmand %vm3492_vm0, %vm3493_vm4  ;;  %vm3420_vm8 = vcmp.lt.s32.totalorder %v4940_v19, %v3419_v55  ;;  %s3776_s28 = sshll.u32 %s4708_s6, 7 }
0x363f   : > { %vm3495_vm5 = vmor %vm3491_vm13, %vm3494_vm2  ;;  %s780_s0 = scalar_lea.vmem [#allocation4], %s3661_s2  ;;  %s5532_s1 = scalar_lea.hbm %s5598_s23, %s3776_s28 }
0x3640   : > { %s3518_s29 = sshll.u32 %s780_s0, 4  ;;  %vm3496_vm12 = vmxor %vm3495_vm5, %vm4560_vm11  ;;  %s3501_s7 = scalar_lea.sflag [#allocation5], %s5018_s5  ;;  %s5534_s29 = int_to_ptr.vmem [resolvable:$true] %s3518_s29 }
0x3641   : > { %vm3497_vm14 = vmand %vm3420_vm8, %vm3496_vm12  ;;  %s4483_s27 = scalar_lea.vmem %s5534_s29, 128  ;;  %s4561_s6 = smov [#allocation4]  }
0x3642   : > { %p4484_p1 = scmp.ne.s32.totalorder %s5534_s29, %s4483_s27  ;;  %s4487_s4 = sshll.u32 %s4561_s6, 4  ;;  %s4488_s4 = int_to_ptr.vmem [resolvable:$false] %s4487_s4 }
0x3643   : > { %s4489_s30 = scalar_lea.vmem %s4488_s4, 256  ;;  %p4490_p4 = scmp.lt.s32.totalorder %s5534_s29, %s4488_s4 }
0x3644   : > { %p4485_p2 = pnand %p4484_p1, %p4725_p5  ;;  %p4491_p7 = scmp.lt.s32.totalorder %s4489_s30, %s4483_s27 }
0x3646   : > { %p4486_p3 = pneg %p4485_p2  ;;  %p4492_p8 = por %p4491_p7, %p4490_p4 }
0x3648   : > { %p4493_p9 = pnand %p4492_p8, %p4486_p3 }
0x3703   : > { %v3408_v5 = vpop.f32.mrb[10].mxu1 }
0x3704   : > { %v3498_v8 = vsel %vm3497_vm14, %v3408_v5, -1e+09  ;;  %v4137_v39 = vpop.f32.mrb[11].mxu1 }
0x3705   : > { %3499 = vst [vmem:[%s780_s0] sm:$0xff] %v3498_v8 }
0x3706   : > { %4496 = shalt.err (!%p4493_p9)
}
0x3707   : > { %s4497_s5 = scalar_lea.hbm %s5532_s1, 128  ;;  %s4501_s28 = scalar_lea.hbm %s5598_s23, 256 }
0x3708   : > { %p4498_p10 = scmp.ne.s32.totalorder %s5532_s1, %s4497_s5  ;;  %p4502_p13 = scmp.lt.u32.totalorder %s5532_s1, %s5598_s23 }
0x3709   : > { %p4503_p0 = scmp.lt.u32.totalorder %s4501_s28, %s4497_s5  ;;  %p4505_p2 = scmp.lt.u32.totalorder %s4497_s5, %s5532_s1 }
0x370a   : > { %p4499_p11 = pnand %p4498_p10, %p4725_p5 }
0x370b   : > { %p4504_p1 = por %p4503_p0, %p4502_p13 }
0x370c   : > { %p4500_p12 = pneg %p4499_p11 }
0x370d   : > { %p4506_p3 = por %p4505_p2, %p4504_p1 }
0x370f   : > { %p4507_p4 = pnand %p4506_p3, %p4500_p12 }
0x3711   : > { %4510 = shalt.err (!%p4507_p4)
}
0x3712   : > { %4286 = dma.vmem_to_hbm [thread:$0]  (%p4725_p5), %s5534_s29, 128, %s5532_s1, %s3501_s7  }
0x3713 PF: > { %s5663_s27 = sld [smem:[#allocation12_spill]]  ;;  %s5664_s6 = sld [smem:[#allocation10_spill]] }
0x3719   : > { %p4297_p7 = scmp.ge.s32.totalorder %s5663_s27, 2  ;;  %s3543_s30 = sand.u32 1, %s5664_s6  }
0x371a   : > { %s3544_s2 = scalar_lea.sflag [#allocation5], %s3543_s30 }
0x371b   : > { %p4291_p8 = pnand %p4297_p7, %p4729_p6 }
0x371d   : > { %4528 = dma.done.wait (!%p4291_p8), %s3544_s2, 128  }
0x371e   : > { %4530 = vsyncadd (!%p4291_p8), %s3544_s2, 4294967168  ;;  %s3553_s5 = scalar_lea.sflag [#allocation7], %s3543_s30 }
0x371f   : > { %4532 = dma.done.wait (!%p4291_p8), %s3553_s5, 16  }
0x3720   : > { %4534 = vsyncadd (!%p4291_p8), %s3553_s5, 4294967280  ;;  %s5666_s28 = sld [smem:[#allocation13_spill]]  ;;  %s5667_s3 = sld [smem:[#allocation11_spill]] }
0x3721   : > { %s5668_s27 = sld [smem:[#allocation14_spill]]  ;;  %s5669_s5 = smov %s4541_s26 }
0x3726   : > { %p38_p5 = scmp.ge.s32.totalorder %s5666_s28, 4   ;;  %s5670_s26 = smov %s5667_s3 }
0x3728   :  { %40 = sbr.rel (!%p38_p5) target bundleno = 15 (0xf), region = 176 }
0x372f   :  { %3557 = vsyncpa [#allocation5], 1 }
0x3730   :  { %3559 = vsyncpa [#allocation5 + $0x1], 1 }
0x3731   :  { %3560 = vsyncpa [#allocation7], 1 }
0x3732   :  { %3562 = vsyncpa [#allocation7 + $0x1], 1 }

</bundles_post_ra>
